<compile_context>
chip_gen: v7x
topology: tpu7x:2x2x1
jax: 0.10.0
libtpu: 0.0.40
codegen_flags: <defaults>
</compile_context>

<pallas_src>
import functools
import math

import jax
import jax.numpy as jnp
from jax.experimental import pallas as pl
from jax.experimental.pallas import tpu as pltpu

# ---------------- small synthetic config ----------------
B = 2             # batch
NL_LEN = 8        # args.NlLen        (input_node length)
LINE_LEN = 8      # linenode length
L = NL_LEN + LINE_LEN
E = 32            # args.embedding_size
H = 8             # attention heads in TransformerBlock
DH = E // H
FF = 4 * E        # feed_forward_hidden
NL_VOCSIZE = 50   # args.Nl_Vocsize
NUM_BLOCKS = 5
PACK = 128        # lane-dense packed output width
NEG = -1000000000.0


# ---------------- fused encoder + scoring kernel ----------------
def nl_encoder_kernel(x_ref, neg_ref, resmask_ref, res_ref, seg_ref,
                      wqkv_ref, bqkv_ref, wo_ref, bo_ref, ln1g_ref, ln1b_ref,
                      w1_ref, b1_ref, w2_ref, b2_ref, ln2g_ref, ln2b_ref,
                      wsc_ref, bsc_ref,
                      out_ref, kblk_ref, vblk_ref):
    f32 = jnp.float32
    x = x_ref[0]                      # (L, E)
    Lq, Eq = x.shape
    n = resmask_ref.shape[-1]         # NL_LEN

    # Zero the block-diagonal K/V staging scratch once per grid step; the
    # per-head scatter below only ever rewrites the diagonal (L, DH) tiles,
    # so the off-diagonal zeros persist across the 5 blocks.
    kblk_ref[...] = jnp.zeros((H * Lq, Eq), f32)
    vblk_ref[...] = jnp.zeros((H * Lq, Eq), f32)

    def layer_norm(v, g, b, eps=1e-6):
        # TODO(synk): custom LayerNorm convention g*(x-mean)/(std+eps)+b with
        # unbiased std (matches the common BERT-pytorch LayerNorm); original
        # LayerNorm source was not provided.
        mu = jnp.mean(v, axis=-1, keepdims=True)
        d = v - mu
        var = jnp.sum(d * d, axis=-1, keepdims=True) * (1.0 / (v.shape[-1] - 1))
        inv = pl.reciprocal(jnp.sqrt(var) + eps, approx=False)
        return g * (d * inv) + b

    for i in range(NUM_BLOCKS):
        # ---- multi-head self-attention sublayer (pre-LN residual) ----
        xn = layer_norm(x, ln1g_ref[i], ln1b_ref[i])
        qkv = jnp.dot(xn, wqkv_ref[i], preferred_element_type=f32) + bqkv_ref[i]
        q = qkv[:, :Eq]               # 1/sqrt(DH) folded into Wq at init time
        k = qkv[:, Eq:2 * Eq]
        v = qkv[:, 2 * Eq:]

        # scatter K head slices into the block-diagonal scratch, then consume
        for hd in range(H):
            kblk_ref[hd * Lq:(hd + 1) * Lq, hd * DH:(hd + 1) * DH] = \
                k[:, hd * DH:(hd + 1) * DH]
        # one lane-dense score matmul for all heads: (L,E)x(H*L,E)->(L,H*L)
        s = jnp.einsum('qd,rd->qr', q, kblk_ref[...],
                       preferred_element_type=f32) + neg_ref[0]
        m = jnp.max(s, axis=-1, keepdims=True)   # global row max: valid stabilizer
        p = jnp.exp(s - m)
        denom = jnp.dot(p, seg_ref[...], preferred_element_type=f32)  # per-head sums
        p = p * pl.reciprocal(denom, approx=False)

        # scatter V only after K has been consumed (bounds live ranges)
        for hd in range(H):
            vblk_ref[hd * Lq:(hd + 1) * Lq, hd * DH:(hd + 1) * DH] = \
                v[:, hd * DH:(hd + 1) * DH]
        ctx = jnp.dot(p, vblk_ref[...], preferred_element_type=f32)   # (L, E)
        attn = jnp.dot(ctx, wo_ref[i], preferred_element_type=f32) + bo_ref[i]
        x = x + attn

        # ---- feed-forward sublayer (pre-LN residual), GELU (tanh approx) ----
        xn2 = layer_norm(x, ln2g_ref[i], ln2b_ref[i])
        h1 = jnp.dot(xn2, w1_ref[i], preferred_element_type=f32) + b1_ref[i]
        h1 = jax.nn.gelu(h1, approximate=True)
        x = x + jnp.dot(h1, w2_ref[i], preferred_element_type=f32) + b2_ref[i]

    # ---- fused scoring head (resLinear2 + masked softmax + NLL) ----
    x_head = x[:n, :]                                                 # (N, E)
    logits = jnp.einsum('oe,ne->on', wsc_ref[...], x_head,
                        preferred_element_type=f32) + bsc_ref[...]    # (1, N)
    logits = jnp.where(resmask_ref[0] == 0.0, NEG, logits)
    lm = jnp.max(logits, axis=-1, keepdims=True)
    e = jnp.exp(logits - lm)
    soft = e * pl.reciprocal(jnp.sum(e, axis=-1, keepdims=True), approx=False)
    nll = -jnp.log(jnp.clip(soft, 1e-10, 1.0)) * res_ref[0]
    loss = jnp.sum(nll, axis=-1, keepdims=True)                       # (1, 1)

    # ---- lane-dense packed output, built in-register, single full store ----
    rows = out_ref.shape[1]
    x_pad = jnp.concatenate([x_head, jnp.zeros((n, PACK - Eq), f32)], axis=-1)
    packrow = jnp.concatenate([soft, loss,
                               jnp.zeros((1, PACK - n - 1), f32)], axis=-1)
    tail = jnp.concatenate([packrow,
                            jnp.zeros((rows - n - 1, PACK), f32)], axis=0)
    out_ref[0] = jnp.concatenate([x_pad, tail], axis=0)               # (rows, 128)


def nl_encoder_fused(x, neg_tiled, resmask3, res3, params):
    Bq, Lq, Eq = x.shape
    Nq = resmask3.shape[-1]
    HL = H * Lq
    rows = ((Nq + 1 + 7) // 8) * 8   # x_head rows + 1 pack row, padded to 8

    # block-diagonal ones matrix for the per-head softmax denominator (constant)
    r = jnp.arange(HL)
    seg_ones = (r[:, None] // Lq == r[None, :] // Lq).astype(jnp.float32)

    weight_args = list(params['stacked']) + [params['resLinear2_w'],
                                             params['resLinear2_b']]

    def full_spec(a):
        zeros = (0,) * a.ndim
        return pl.BlockSpec(a.shape, lambda b, _z=zeros: _z)

    in_specs = ([pl.BlockSpec((1, Lq, Eq), lambda b: (b, 0, 0)),
                 pl.BlockSpec((1, Lq, HL), lambda b: (b, 0, 0)),
                 pl.BlockSpec((1, 1, Nq), lambda b: (b, 0, 0)),
                 pl.BlockSpec((1, 1, Nq), lambda b: (b, 0, 0)),
                 full_spec(seg_ones)]
                + [full_spec(a) for a in weight_args])
    out_specs = pl.BlockSpec((1, rows, PACK), lambda b: (b, 0, 0))
    out_shape = jax.ShapeDtypeStruct((Bq, rows, PACK), jnp.float32)

    return pl.pallas_call(
        nl_encoder_kernel,
        grid=(Bq,),
        in_specs=in_specs,
        out_specs=out_specs,
        out_shape=out_shape,
        scratch_shapes=[pltpu.VMEM((HL, Eq), jnp.float32),   # K block-diagonal
                        pltpu.VMEM((HL, Eq), jnp.float32)],  # V block-diagonal
        compiler_params=pltpu.CompilerParams(dimension_semantics=("parallel",)),
    )(x, neg_tiled, resmask3, res3, seg_ones, *weight_args)


# ---------------- deterministic parameter init ----------------
def init_params(key):
    keys = jax.random.split(key, 4 + NUM_BLOCKS)
    params = {
        'token_embedding': 0.02 * jax.random.normal(keys[0], (NL_VOCSIZE, E - 1), jnp.float32),
        'token_embedding1': 0.02 * jax.random.normal(keys[1], (NL_VOCSIZE, E - 2), jnp.float32),
        'resLinear2_w': 0.02 * jax.random.normal(keys[2], (1, E), jnp.float32),
        'resLinear2_b': jnp.zeros((1, 1), jnp.float32),
    }

    def lin(k, din, dout):
        return 0.02 * jax.random.normal(k, (din, dout), jnp.float32)

    scale = 1.0 / math.sqrt(DH)   # attention scale folded into Wq (free weight fold)
    wqkv, bqkv, wo, bo = [], [], [], []
    ln1g, ln1b, w1, b1, w2, b2, ln2g, ln2b = [], [], [], [], [], [], [], []
    for i in range(NUM_BLOCKS):
        bk = jax.random.split(keys[4 + i], 6)
        wq = lin(bk[0], E, E) * scale
        wk = lin(bk[1], E, E)
        wv = lin(bk[2], E, E)
        wqkv.append(jnp.concatenate([wq, wk, wv], axis=1))          # (E, 3E)
        bqkv.append(jnp.zeros((1, 3 * E), jnp.float32))
        wo.append(lin(bk[3], E, E)); bo.append(jnp.zeros((1, E), jnp.float32))
        ln1g.append(jnp.ones((1, E), jnp.float32)); ln1b.append(jnp.zeros((1, E), jnp.float32))
        w1.append(lin(bk[4], E, FF)); b1.append(jnp.zeros((1, FF), jnp.float32))
        w2.append(lin(bk[5], FF, E)); b2.append(jnp.zeros((1, E), jnp.float32))
        ln2g.append(jnp.ones((1, E), jnp.float32)); ln2b.append(jnp.zeros((1, E), jnp.float32))
    params['stacked'] = [jnp.stack(a) for a in
                         (wqkv, bqkv, wo, bo, ln1g, ln1b, w1, b1, w2, b2, ln2g, ln2b)]
    return params


# ---------------- forward (glue in plain JAX, hot path in one Pallas call) ----------------
def nl_encoder_forward(params, input_node, inputtype, inputad, res, inputtext,
                       linenode, linetype, linemus, modification, churn):
    del inputtype, linetype, linemus   # unused by the reference forward
    # TODO(synk): TransformerBlock / rightTransformerBlock sources were not
    # provided — implemented as standard pre-LN BERT-style blocks whose
    # attention is masked by the adjacency `inputad` (dropout = identity, eval).
    resmask = (input_node == 2).astype(jnp.float32)
    inputad = inputad.astype(jnp.float32)
    # head-tiled attention bias, precomputed once per batch in the wrapper:
    # neg_tiled[b, q, h*L + j] = -1e9 if inputad[b, q, j] == 0 else 0
    neg_tiled = jnp.where(jnp.tile(inputad, (1, 1, H)) == 0.0, NEG, 0.0
                          ).astype(jnp.float32)

    nodeem = jnp.take(params['token_embedding'], input_node, axis=0)        # (B,N,E-1)
    nodeem = jnp.concatenate(
        [nodeem, inputtext[..., None].astype(jnp.float32)], axis=-1)        # (B,N,E)
    lineem = jnp.take(params['token_embedding1'], linenode, axis=0)         # (B,M,E-2)
    lineem = jnp.concatenate(
        [lineem, modification[..., None].astype(jnp.float32),
         churn[..., None].astype(jnp.float32)], axis=-1)                    # (B,M,E)
    x = jnp.concatenate([nodeem, lineem], axis=1)                           # (B,L,E)

    slab = nl_encoder_fused(
        x, neg_tiled, resmask[:, None, :], res.astype(jnp.float32)[:, None, :], params)
    # unpack the lane-dense slab (free layout plumbing in the wrapper)
    xout = slab[:, :NL_LEN, :E]
    soft = slab[:, NL_LEN, :NL_LEN]
    loss = slab[:, NL_LEN, NL_LEN]
    return loss, soft, xout


if __name__ == "__main__":
    key = jax.random.PRNGKey(0)
    kp, k1, k2, k3, k4, k5, k6, k7 = jax.random.split(key, 8)
    params = init_params(kp)

    input_node = jax.random.randint(k1, (B, NL_LEN), 0, NL_VOCSIZE, dtype=jnp.int32)
    input_node = input_node.at[:, 1].set(2)          # ensure resmask has hits
    inputtype = jnp.zeros((B, NL_LEN), jnp.int32)    # unused
    adj = (jax.random.uniform(k2, (B, L, L)) < 0.5).astype(jnp.float32)
    inputad = jnp.maximum(adj, jnp.eye(L, dtype=jnp.float32)[None])
    res = (jax.random.uniform(k3, (B, NL_LEN)) < 0.3).astype(jnp.float32)
    inputtext = jax.random.randint(k4, (B, NL_LEN), 0, 5, dtype=jnp.int32)
    linenode = jax.random.randint(k5, (B, LINE_LEN), 0, NL_VOCSIZE, dtype=jnp.int32)
    linetype = jnp.zeros((B, LINE_LEN), jnp.int32)   # unused
    linemus = jnp.zeros((B, LINE_LEN), jnp.int32)    # unused
    modification = jax.random.randint(k6, (B, LINE_LEN), 0, 3, dtype=jnp.int32)
    churn = jax.random.randint(k7, (B, LINE_LEN), 0, 10, dtype=jnp.int32)

    fwd = jax.jit(functools.partial(nl_encoder_forward, params))
    loss, resSoftmax, xout = fwd(input_node, inputtype, inputad, res, inputtext,
                                 linenode, linetype, linemus, modification, churn)
    jax.block_until_ready((loss, resSoftmax, xout))

    assert loss.shape == (B,)
    assert resSoftmax.shape == (B, NL_LEN)
    assert xout.shape == (B, NL_LEN, E)
    assert bool(jnp.all(jnp.isfinite(loss)))
    assert bool(jnp.all(jnp.isfinite(resSoftmax)))
    assert bool(jnp.all(jnp.isfinite(xout)))
    # softmax rows should sum to ~1 (exact reciprocal now used)
    assert bool(jnp.all(jnp.abs(jnp.sum(resSoftmax, axis=-1) - 1.0) < 1e-4))
    print("KERNEL_OK")
</pallas_src>

<mosaic_0001>
module attributes {stable_mosaic.version = 11 : i64} {
  func.func @nl_encoder_kernel(%arg0: i32, %arg1: memref<1x16x32xf32, #tpu.memory_space<vmem>>, %arg2: memref<1x16x128xf32, #tpu.memory_space<vmem>>, %arg3: memref<1x1x8xf32, #tpu.memory_space<vmem>>, %arg4: memref<1x1x8xf32, #tpu.memory_space<vmem>>, %arg5: memref<128x128xf32, #tpu.memory_space<vmem>>, %arg6: memref<5x32x96xf32, #tpu.memory_space<vmem>>, %arg7: memref<5x1x96xf32, #tpu.memory_space<vmem>>, %arg8: memref<5x32x32xf32, #tpu.memory_space<vmem>>, %arg9: memref<5x1x32xf32, #tpu.memory_space<vmem>>, %arg10: memref<5x1x32xf32, #tpu.memory_space<vmem>>, %arg11: memref<5x1x32xf32, #tpu.memory_space<vmem>>, %arg12: memref<5x32x128xf32, #tpu.memory_space<vmem>>, %arg13: memref<5x1x128xf32, #tpu.memory_space<vmem>>, %arg14: memref<5x128x32xf32, #tpu.memory_space<vmem>>, %arg15: memref<5x1x32xf32, #tpu.memory_space<vmem>>, %arg16: memref<5x1x32xf32, #tpu.memory_space<vmem>>, %arg17: memref<5x1x32xf32, #tpu.memory_space<vmem>>, %arg18: memref<1x32xf32, #tpu.memory_space<vmem>>, %arg19: memref<1x1xf32, #tpu.memory_space<vmem>>, %arg20: memref<1x16x128xf32, #tpu.memory_space<vmem>>, %arg21: memref<128x32xf32, #tpu.memory_space<vmem>>, %arg22: memref<128x32xf32, #tpu.memory_space<vmem>>) attributes {dimension_semantics = [#tpu.dimension_semantics<parallel>], iteration_bounds = array<i64: 2>, scalar_prefetch = 0 : i64, scratch_operands = 2 : i64, tpu.core_type = #tpu.core_type<tc>, window_params = [{transform_indices = @transform_0, window_bounds = array<i64: 1, 16, 32>}, {transform_indices = @transform_1, window_bounds = array<i64: 1, 16, 128>}, {transform_indices = @transform_2, window_bounds = array<i64: 1, 1, 8>}, {transform_indices = @transform_3, window_bounds = array<i64: 1, 1, 8>}, {pipeline_mode = #tpu.pipeline_mode<synchronous>, transform_indices = @transform_4, window_bounds = array<i64: 128, 128>}, {pipeline_mode = #tpu.pipeline_mode<synchronous>, transform_indices = @transform_5, window_bounds = array<i64: 5, 32, 96>}, {pipeline_mode = #tpu.pipeline_mode<synchronous>, transform_indices = @transform_6, window_bounds = array<i64: 5, 1, 96>}, {pipeline_mode = #tpu.pipeline_mode<synchronous>, transform_indices = @transform_7, window_bounds = array<i64: 5, 32, 32>}, {pipeline_mode = #tpu.pipeline_mode<synchronous>, transform_indices = @transform_8, window_bounds = array<i64: 5, 1, 32>}, {pipeline_mode = #tpu.pipeline_mode<synchronous>, transform_indices = @transform_9, window_bounds = array<i64: 5, 1, 32>}, {pipeline_mode = #tpu.pipeline_mode<synchronous>, transform_indices = @transform_10, window_bounds = array<i64: 5, 1, 32>}, {pipeline_mode = #tpu.pipeline_mode<synchronous>, transform_indices = @transform_11, window_bounds = array<i64: 5, 32, 128>}, {pipeline_mode = #tpu.pipeline_mode<synchronous>, transform_indices = @transform_12, window_bounds = array<i64: 5, 1, 128>}, {pipeline_mode = #tpu.pipeline_mode<synchronous>, transform_indices = @transform_13, window_bounds = array<i64: 5, 128, 32>}, {pipeline_mode = #tpu.pipeline_mode<synchronous>, transform_indices = @transform_14, window_bounds = array<i64: 5, 1, 32>}, {pipeline_mode = #tpu.pipeline_mode<synchronous>, transform_indices = @transform_15, window_bounds = array<i64: 5, 1, 32>}, {pipeline_mode = #tpu.pipeline_mode<synchronous>, transform_indices = @transform_16, window_bounds = array<i64: 5, 1, 32>}, {pipeline_mode = #tpu.pipeline_mode<synchronous>, transform_indices = @transform_17, window_bounds = array<i64: 1, 32>}, {pipeline_mode = #tpu.pipeline_mode<synchronous>, transform_indices = @transform_18, window_bounds = array<i64: 1, 1>}, {transform_indices = @transform_19, window_bounds = array<i64: 1, 16, 128>}]} {
    %c0 = arith.constant 0 : index
    %c0_0 = arith.constant 0 : index
    %c0_1 = arith.constant 0 : index
    %0 = vector.load %arg1[%c0, %c0_0, %c0_1] : memref<1x16x32xf32, #tpu.memory_space<vmem>>, vector<1x16x32xf32>
    %1 = vector.shape_cast %0 : vector<1x16x32xf32> to vector<16x32xf32>
    %cst = arith.constant 0.000000e+00 : f32
    %2 = vector.broadcast %cst : f32 to vector<128x32xf32>
    %c0_2 = arith.constant 0 : index
    %c0_3 = arith.constant 0 : index
    %3 = vector.load %arg21[%c0_2, %c0_3] : memref<128x32xf32, #tpu.memory_space<vmem>>, vector<128x32xf32>
    tpu.vector_store %arg21[%c0_2, %c0_3], %2 {strides = array<i32>} : memref<128x32xf32, #tpu.memory_space<vmem>>, vector<128x32xf32>,
    %cst_4 = arith.constant 0.000000e+00 : f32
    %4 = vector.broadcast %cst_4 : f32 to vector<128x32xf32>
    %c0_5 = arith.constant 0 : index
    %c0_6 = arith.constant 0 : index
    %5 = vector.load %arg22[%c0_5, %c0_6] : memref<128x32xf32, #tpu.memory_space<vmem>>, vector<128x32xf32>
    tpu.vector_store %arg22[%c0_5, %c0_6], %4 {strides = array<i32>} : memref<128x32xf32, #tpu.memory_space<vmem>>, vector<128x32xf32>,
    %c0_7 = arith.constant 0 : index
    %c0_8 = arith.constant 0 : index
    %c0_9 = arith.constant 0 : index
    %6 = vector.load %arg10[%c0_7, %c0_8, %c0_9] : memref<5x1x32xf32, #tpu.memory_space<vmem>>, vector<1x1x32xf32>
    %7 = vector.shape_cast %6 : vector<1x1x32xf32> to vector<1x32xf32>
    %c0_10 = arith.constant 0 : index
    %c0_11 = arith.constant 0 : index
    %c0_12 = arith.constant 0 : index
    %8 = vector.load %arg11[%c0_10, %c0_11, %c0_12] : memref<5x1x32xf32, #tpu.memory_space<vmem>>, vector<1x1x32xf32>
    %9 = vector.shape_cast %8 : vector<1x1x32xf32> to vector<1x32xf32>
    %cst_13 = arith.constant dense<0.000000e+00> : vector<16xf32>
    %10 = vector.multi_reduction <add>, %1, %cst_13 [1] : vector<16x32xf32> to vector<16xf32>
    %11 = vector.shape_cast %10 : vector<16xf32> to vector<16x1xf32>
    %cst_14 = arith.constant 3.200000e+01 : f32
    %12 = vector.broadcast %cst_14 : f32 to vector<16x1xf32>
    %13 = arith.divf %11, %12 : vector<16x1xf32>
    %14 = vector.broadcast %13 : vector<16x1xf32> to vector<16x32xf32>
    %15 = arith.subf %1, %14 : vector<16x32xf32>
    %16 = arith.mulf %15, %15 : vector<16x32xf32>
    %cst_15 = arith.constant dense<0.000000e+00> : vector<16xf32>
    %17 = vector.multi_reduction <add>, %16, %cst_15 [1] : vector<16x32xf32> to vector<16xf32>
    %18 = vector.shape_cast %17 : vector<16xf32> to vector<16x1xf32>
    %cst_16 = arith.constant 0.0322580636 : f32
    %19 = vector.broadcast %cst_16 : f32 to vector<16x1xf32>
    %20 = arith.mulf %18, %19 : vector<16x1xf32>
    %21 = math.sqrt %20 : vector<16x1xf32>
    %cst_17 = arith.constant 9.99999997E-7 : f32
    %22 = vector.broadcast %cst_17 : f32 to vector<16x1xf32>
    %23 = arith.addf %21, %22 : vector<16x1xf32>
    %24 = tpu.reciprocal %23 : vector<16x1xf32> -> vector<16x1xf32>
    %25 = vector.broadcast %24 : vector<16x1xf32> to vector<16x32xf32>
    %26 = arith.mulf %15, %25 : vector<16x32xf32>
    %27 = vector.broadcast %7 : vector<1x32xf32> to vector<16x32xf32>
    %28 = arith.mulf %27, %26 : vector<16x32xf32>
    %29 = vector.broadcast %9 : vector<1x32xf32> to vector<16x32xf32>
    %30 = arith.addf %28, %29 : vector<16x32xf32>
    %c0_18 = arith.constant 0 : index
    %c0_19 = arith.constant 0 : index
    %c0_20 = arith.constant 0 : index
    %31 = vector.load %arg6[%c0_18, %c0_19, %c0_20] : memref<5x32x96xf32, #tpu.memory_space<vmem>>, vector<1x32x96xf32>
    %32 = vector.shape_cast %31 : vector<1x32x96xf32> to vector<32x96xf32>
    %cst_21 = arith.constant dense<0.000000e+00> : vector<16x96xf32>
    %33 = tpu.matmul %30, %32, %cst_21 {dimension_numbers = #tpu.dot_dimension_numbers<[1], [0], [0], [1], [0, 0, 1, 1], [], []>} : vector<16x32xf32>, vector<32x96xf32>, vector<16x96xf32> -> vector<16x96xf32>
    %c0_22 = arith.constant 0 : index
    %c0_23 = arith.constant 0 : index
    %c0_24 = arith.constant 0 : index
    %34 = vector.load %arg7[%c0_22, %c0_23, %c0_24] : memref<5x1x96xf32, #tpu.memory_space<vmem>>, vector<1x1x96xf32>
    %35 = vector.shape_cast %34 : vector<1x1x96xf32> to vector<1x96xf32>
    %36 = vector.broadcast %35 : vector<1x96xf32> to vector<16x96xf32>
    %37 = arith.addf %33, %36 : vector<16x96xf32>
    %38 = vector.extract_strided_slice %37 {offsets = [0, 0], sizes = [16, 32], strides = [1, 1]} : vector<16x96xf32> to vector<16x32xf32>
    %39 = vector.extract_strided_slice %37 {offsets = [0, 32], sizes = [16, 32], strides = [1, 1]} : vector<16x96xf32> to vector<16x32xf32>
    %40 = vector.extract_strided_slice %37 {offsets = [0, 64], sizes = [16, 32], strides = [1, 1]} : vector<16x96xf32> to vector<16x32xf32>
    %41 = vector.extract_strided_slice %39 {offsets = [0, 0], sizes = [16, 4], strides = [1, 1]} : vector<16x32xf32> to vector<16x4xf32>
    %c0_25 = arith.constant 0 : index
    %c0_26 = arith.constant 0 : index
    %42 = vector.load %arg21[%c0_25, %c0_26] : memref<128x32xf32, #tpu.memory_space<vmem>>, vector<16x4xf32>
    tpu.vector_store %arg21[%c0_25, %c0_26], %41 {strides = array<i32>} : memref<128x32xf32, #tpu.memory_space<vmem>>, vector<16x4xf32>,
    %43 = vector.extract_strided_slice %39 {offsets = [0, 4], sizes = [16, 4], strides = [1, 1]} : vector<16x32xf32> to vector<16x4xf32>
    %c16 = arith.constant 16 : index
    %c4 = arith.constant 4 : index
    %44 = vector.load %arg21[%c16, %c4] : memref<128x32xf32, #tpu.memory_space<vmem>>, vector<16x4xf32>
    tpu.vector_store %arg21[%c16, %c4], %43 {strides = array<i32>} : memref<128x32xf32, #tpu.memory_space<vmem>>, vector<16x4xf32>,
    %45 = vector.extract_strided_slice %39 {offsets = [0, 8], sizes = [16, 4], strides = [1, 1]} : vector<16x32xf32> to vector<16x4xf32>
    %c32 = arith.constant 32 : index
    %c8 = arith.constant 8 : index
    %46 = vector.load %arg21[%c32, %c8] : memref<128x32xf32, #tpu.memory_space<vmem>>, vector<16x4xf32>
    tpu.vector_store %arg21[%c32, %c8], %45 {strides = array<i32>} : memref<128x32xf32, #tpu.memory_space<vmem>>, vector<16x4xf32>,
    %47 = vector.extract_strided_slice %39 {offsets = [0, 12], sizes = [16, 4], strides = [1, 1]} : vector<16x32xf32> to vector<16x4xf32>
    %c48 = arith.constant 48 : index
    %c12 = arith.constant 12 : index
    %48 = vector.load %arg21[%c48, %c12] : memref<128x32xf32, #tpu.memory_space<vmem>>, vector<16x4xf32>
    tpu.vector_store %arg21[%c48, %c12], %47 {strides = array<i32>} : memref<128x32xf32, #tpu.memory_space<vmem>>, vector<16x4xf32>,
    %49 = vector.extract_strided_slice %39 {offsets = [0, 16], sizes = [16, 4], strides = [1, 1]} : vector<16x32xf32> to vector<16x4xf32>
    %c64 = arith.constant 64 : index
    %c16_27 = arith.constant 16 : index
    %50 = vector.load %arg21[%c64, %c16_27] : memref<128x32xf32, #tpu.memory_space<vmem>>, vector<16x4xf32>
    tpu.vector_store %arg21[%c64, %c16_27], %49 {strides = array<i32>} : memref<128x32xf32, #tpu.memory_space<vmem>>, vector<16x4xf32>,
    %51 = vector.extract_strided_slice %39 {offsets = [0, 20], sizes = [16, 4], strides = [1, 1]} : vector<16x32xf32> to vector<16x4xf32>
    %c80 = arith.constant 80 : index
    %c20 = arith.constant 20 : index
    %52 = vector.load %arg21[%c80, %c20] : memref<128x32xf32, #tpu.memory_space<vmem>>, vector<16x4xf32>
    tpu.vector_store %arg21[%c80, %c20], %51 {strides = array<i32>} : memref<128x32xf32, #tpu.memory_space<vmem>>, vector<16x4xf32>,
    %53 = vector.extract_strided_slice %39 {offsets = [0, 24], sizes = [16, 4], strides = [1, 1]} : vector<16x32xf32> to vector<16x4xf32>
    %c96 = arith.constant 96 : index
    %c24 = arith.constant 24 : index
    %54 = vector.load %arg21[%c96, %c24] : memref<128x32xf32, #tpu.memory_space<vmem>>, vector<16x4xf32>
    tpu.vector_store %arg21[%c96, %c24], %53 {strides = array<i32>} : memref<128x32xf32, #tpu.memory_space<vmem>>, vector<16x4xf32>,
    %55 = vector.extract_strided_slice %39 {offsets = [0, 28], sizes = [16, 4], strides = [1, 1]} : vector<16x32xf32> to vector<16x4xf32>
    %c112 = arith.constant 112 : index
    %c28 = arith.constant 28 : index
    %56 = vector.load %arg21[%c112, %c28] : memref<128x32xf32, #tpu.memory_space<vmem>>, vector<16x4xf32>
    tpu.vector_store %arg21[%c112, %c28], %55 {strides = array<i32>} : memref<128x32xf32, #tpu.memory_space<vmem>>, vector<16x4xf32>,
    %c0_28 = arith.constant 0 : index
    %c0_29 = arith.constant 0 : index
    %57 = vector.load %arg21[%c0_28, %c0_29] : memref<128x32xf32, #tpu.memory_space<vmem>>, vector<128x32xf32>
    "tpu.trace_start"() <{level = 10 : i32, message = "qd,rd->qr"}> : () -> ()
    %cst_30 = arith.constant dense<0.000000e+00> : vector<16x128xf32>
    %58 = tpu.matmul %38, %57, %cst_30 {dimension_numbers = #tpu.dot_dimension_numbers<[1], [1], [0], [0], [0, 0, 1, 0], [], []>} : vector<16x32xf32>, vector<128x32xf32>, vector<16x128xf32> -> vector<16x128xf32>
    "tpu.trace_stop"() : () -> ()
    %c0_31 = arith.constant 0 : index
    %c0_32 = arith.constant 0 : index
    %c0_33 = arith.constant 0 : index
    %59 = vector.load %arg2[%c0_31, %c0_32, %c0_33] : memref<1x16x128xf32, #tpu.memory_space<vmem>>, vector<1x16x128xf32>
    %60 = vector.shape_cast %59 : vector<1x16x128xf32> to vector<16x128xf32>
    %61 = arith.addf %58, %60 : vector<16x128xf32>
    %cst_34 = arith.constant dense<0xFF800000> : vector<16xf32>
    %62 = vector.multi_reduction <maximumf>, %61, %cst_34 [1] : vector<16x128xf32> to vector<16xf32>
    %63 = vector.shape_cast %62 : vector<16xf32> to vector<16x1xf32>
    %64 = vector.broadcast %63 : vector<16x1xf32> to vector<16x128xf32>
    %65 = arith.subf %61, %64 : vector<16x128xf32>
    %66 = math.exp %65 : vector<16x128xf32>
    %c0_35 = arith.constant 0 : index
    %c0_36 = arith.constant 0 : index
    %67 = vector.load %arg5[%c0_35, %c0_36] : memref<128x128xf32, #tpu.memory_space<vmem>>, vector<128x128xf32>
    %cst_37 = arith.constant dense<0.000000e+00> : vector<16x128xf32>
    %68 = tpu.matmul %66, %67, %cst_37 {dimension_numbers = #tpu.dot_dimension_numbers<[1], [0], [0], [1], [0, 0, 1, 1], [], []>} : vector<16x128xf32>, vector<128x128xf32>, vector<16x128xf32> -> vector<16x128xf32>
    %69 = tpu.reciprocal %68 : vector<16x128xf32> -> vector<16x128xf32>
    %70 = arith.mulf %66, %69 : vector<16x128xf32>
    %71 = vector.extract_strided_slice %40 {offsets = [0, 0], sizes = [16, 4], strides = [1, 1]} : vector<16x32xf32> to vector<16x4xf32>
    %c0_38 = arith.constant 0 : index
    %c0_39 = arith.constant 0 : index
    %72 = vector.load %arg22[%c0_38, %c0_39] : memref<128x32xf32, #tpu.memory_space<vmem>>, vector<16x4xf32>
    tpu.vector_store %arg22[%c0_38, %c0_39], %71 {strides = array<i32>} : memref<128x32xf32, #tpu.memory_space<vmem>>, vector<16x4xf32>,
    %73 = vector.extract_strided_slice %40 {offsets = [0, 4], sizes = [16, 4], strides = [1, 1]} : vector<16x32xf32> to vector<16x4xf32>
    %c16_40 = arith.constant 16 : index
    %c4_41 = arith.constant 4 : index
    %74 = vector.load %arg22[%c16_40, %c4_41] : memref<128x32xf32, #tpu.memory_space<vmem>>, vector<16x4xf32>
    tpu.vector_store %arg22[%c16_40, %c4_41], %73 {strides = array<i32>} : memref<128x32xf32, #tpu.memory_space<vmem>>, vector<16x4xf32>,
    %75 = vector.extract_strided_slice %40 {offsets = [0, 8], sizes = [16, 4], strides = [1, 1]} : vector<16x32xf32> to vector<16x4xf32>
    %c32_42 = arith.constant 32 : index
    %c8_43 = arith.constant 8 : index
    %76 = vector.load %arg22[%c32_42, %c8_43] : memref<128x32xf32, #tpu.memory_space<vmem>>, vector<16x4xf32>
    tpu.vector_store %arg22[%c32_42, %c8_43], %75 {strides = array<i32>} : memref<128x32xf32, #tpu.memory_space<vmem>>, vector<16x4xf32>,
    %77 = vector.extract_strided_slice %40 {offsets = [0, 12], sizes = [16, 4], strides = [1, 1]} : vector<16x32xf32> to vector<16x4xf32>
    %c48_44 = arith.constant 48 : index
    %c12_45 = arith.constant 12 : index
    %78 = vector.load %arg22[%c48_44, %c12_45] : memref<128x32xf32, #tpu.memory_space<vmem>>, vector<16x4xf32>
    tpu.vector_store %arg22[%c48_44, %c12_45], %77 {strides = array<i32>} : memref<128x32xf32, #tpu.memory_space<vmem>>, vector<16x4xf32>,
    %79 = vector.extract_strided_slice %40 {offsets = [0, 16], sizes = [16, 4], strides = [1, 1]} : vector<16x32xf32> to vector<16x4xf32>
    %c64_46 = arith.constant 64 : index
    %c16_47 = arith.constant 16 : index
    %80 = vector.load %arg22[%c64_46, %c16_47] : memref<128x32xf32, #tpu.memory_space<vmem>>, vector<16x4xf32>
    tpu.vector_store %arg22[%c64_46, %c16_47], %79 {strides = array<i32>} : memref<128x32xf32, #tpu.memory_space<vmem>>, vector<16x4xf32>,
    %81 = vector.extract_strided_slice %40 {offsets = [0, 20], sizes = [16, 4], strides = [1, 1]} : vector<16x32xf32> to vector<16x4xf32>
    %c80_48 = arith.constant 80 : index
    %c20_49 = arith.constant 20 : index
    %82 = vector.load %arg22[%c80_48, %c20_49] : memref<128x32xf32, #tpu.memory_space<vmem>>, vector<16x4xf32>
    tpu.vector_store %arg22[%c80_48, %c20_49], %81 {strides = array<i32>} : memref<128x32xf32, #tpu.memory_space<vmem>>, vector<16x4xf32>,
    %83 = vector.extract_strided_slice %40 {offsets = [0, 24], sizes = [16, 4], strides = [1, 1]} : vector<16x32xf32> to vector<16x4xf32>
    %c96_50 = arith.constant 96 : index
    %c24_51 = arith.constant 24 : index
    %84 = vector.load %arg22[%c96_50, %c24_51] : memref<128x32xf32, #tpu.memory_space<vmem>>, vector<16x4xf32>
    tpu.vector_store %arg22[%c96_50, %c24_51], %83 {strides = array<i32>} : memref<128x32xf32, #tpu.memory_space<vmem>>, vector<16x4xf32>,
    %85 = vector.extract_strided_slice %40 {offsets = [0, 28], sizes = [16, 4], strides = [1, 1]} : vector<16x32xf32> to vector<16x4xf32>
    %c112_52 = arith.constant 112 : index
    %c28_53 = arith.constant 28 : index
    %86 = vector.load %arg22[%c112_52, %c28_53] : memref<128x32xf32, #tpu.memory_space<vmem>>, vector<16x4xf32>
    tpu.vector_store %arg22[%c112_52, %c28_53], %85 {strides = array<i32>} : memref<128x32xf32, #tpu.memory_space<vmem>>, vector<16x4xf32>,
    %c0_54 = arith.constant 0 : index
    %c0_55 = arith.constant 0 : index
    %87 = vector.load %arg22[%c0_54, %c0_55] : memref<128x32xf32, #tpu.memory_space<vmem>>, vector<128x32xf32>
    %cst_56 = arith.constant dense<0.000000e+00> : vector<16x32xf32>
    %88 = tpu.matmul %70, %87, %cst_56 {dimension_numbers = #tpu.dot_dimension_numbers<[1], [0], [0], [1], [0, 0, 1, 1], [], []>} : vector<16x128xf32>, vector<128x32xf32>, vector<16x32xf32> -> vector<16x32xf32>
    %c0_57 = arith.constant 0 : index
    %c0_58 = arith.constant 0 : index
    %c0_59 = arith.constant 0 : index
    %89 = vector.load %arg8[%c0_57, %c0_58, %c0_59] : memref<5x32x32xf32, #tpu.memory_space<vmem>>, vector<1x32x32xf32>
    %90 = vector.shape_cast %89 : vector<1x32x32xf32> to vector<32x32xf32>
    %cst_60 = arith.constant dense<0.000000e+00> : vector<16x32xf32>
    %91 = tpu.matmul %88, %90, %cst_60 {dimension_numbers = #tpu.dot_dimension_numbers<[1], [0], [0], [1], [0, 0, 1, 1], [], []>} : vector<16x32xf32>, vector<32x32xf32>, vector<16x32xf32> -> vector<16x32xf32>
    %c0_61 = arith.constant 0 : index
    %c0_62 = arith.constant 0 : index
    %c0_63 = arith.constant 0 : index
    %92 = vector.load %arg9[%c0_61, %c0_62, %c0_63] : memref<5x1x32xf32, #tpu.memory_space<vmem>>, vector<1x1x32xf32>
    %93 = vector.shape_cast %92 : vector<1x1x32xf32> to vector<1x32xf32>
    %94 = vector.broadcast %93 : vector<1x32xf32> to vector<16x32xf32>
    %95 = arith.addf %91, %94 : vector<16x32xf32>
    %96 = arith.addf %1, %95 : vector<16x32xf32>
    %c0_64 = arith.constant 0 : index
    %c0_65 = arith.constant 0 : index
    %c0_66 = arith.constant 0 : index
    %97 = vector.load %arg16[%c0_64, %c0_65, %c0_66] : memref<5x1x32xf32, #tpu.memory_space<vmem>>, vector<1x1x32xf32>
    %98 = vector.shape_cast %97 : vector<1x1x32xf32> to vector<1x32xf32>
    %c0_67 = arith.constant 0 : index
    %c0_68 = arith.constant 0 : index
    %c0_69 = arith.constant 0 : index
    %99 = vector.load %arg17[%c0_67, %c0_68, %c0_69] : memref<5x1x32xf32, #tpu.memory_space<vmem>>, vector<1x1x32xf32>
    %100 = vector.shape_cast %99 : vector<1x1x32xf32> to vector<1x32xf32>
    %cst_70 = arith.constant dense<0.000000e+00> : vector<16xf32>
    %101 = vector.multi_reduction <add>, %96, %cst_70 [1] : vector<16x32xf32> to vector<16xf32>
    %102 = vector.shape_cast %101 : vector<16xf32> to vector<16x1xf32>
    %cst_71 = arith.constant 3.200000e+01 : f32
    %103 = vector.broadcast %cst_71 : f32 to vector<16x1xf32>
    %104 = arith.divf %102, %103 : vector<16x1xf32>
    %105 = vector.broadcast %104 : vector<16x1xf32> to vector<16x32xf32>
    %106 = arith.subf %96, %105 : vector<16x32xf32>
    %107 = arith.mulf %106, %106 : vector<16x32xf32>
    %cst_72 = arith.constant dense<0.000000e+00> : vector<16xf32>
    %108 = vector.multi_reduction <add>, %107, %cst_72 [1] : vector<16x32xf32> to vector<16xf32>
    %109 = vector.shape_cast %108 : vector<16xf32> to vector<16x1xf32>
    %cst_73 = arith.constant 0.0322580636 : f32
    %110 = vector.broadcast %cst_73 : f32 to vector<16x1xf32>
    %111 = arith.mulf %109, %110 : vector<16x1xf32>
    %112 = math.sqrt %111 : vector<16x1xf32>
    %cst_74 = arith.constant 9.99999997E-7 : f32
    %113 = vector.broadcast %cst_74 : f32 to vector<16x1xf32>
    %114 = arith.addf %112, %113 : vector<16x1xf32>
    %115 = tpu.reciprocal %114 : vector<16x1xf32> -> vector<16x1xf32>
    %116 = vector.broadcast %115 : vector<16x1xf32> to vector<16x32xf32>
    %117 = arith.mulf %106, %116 : vector<16x32xf32>
    %118 = vector.broadcast %98 : vector<1x32xf32> to vector<16x32xf32>
    %119 = arith.mulf %118, %117 : vector<16x32xf32>
    %120 = vector.broadcast %100 : vector<1x32xf32> to vector<16x32xf32>
    %121 = arith.addf %119, %120 : vector<16x32xf32>
    %c0_75 = arith.constant 0 : index
    %c0_76 = arith.constant 0 : index
    %c0_77 = arith.constant 0 : index
    %122 = vector.load %arg12[%c0_75, %c0_76, %c0_77] : memref<5x32x128xf32, #tpu.memory_space<vmem>>, vector<1x32x128xf32>
    %123 = vector.shape_cast %122 : vector<1x32x128xf32> to vector<32x128xf32>
    %cst_78 = arith.constant dense<0.000000e+00> : vector<16x128xf32>
    %124 = tpu.matmul %121, %123, %cst_78 {dimension_numbers = #tpu.dot_dimension_numbers<[1], [0], [0], [1], [0, 0, 1, 1], [], []>} : vector<16x32xf32>, vector<32x128xf32>, vector<16x128xf32> -> vector<16x128xf32>
    %c0_79 = arith.constant 0 : index
    %c0_80 = arith.constant 0 : index
    %c0_81 = arith.constant 0 : index
    %125 = vector.load %arg13[%c0_79, %c0_80, %c0_81] : memref<5x1x128xf32, #tpu.memory_space<vmem>>, vector<1x1x128xf32>
    %126 = vector.shape_cast %125 : vector<1x1x128xf32> to vector<1x128xf32>
    %127 = vector.broadcast %126 : vector<1x128xf32> to vector<16x128xf32>
    %128 = arith.addf %124, %127 : vector<16x128xf32>
    %129 = arith.mulf %128, %128 : vector<16x128xf32>
    %130 = arith.mulf %128, %129 : vector<16x128xf32>
    %cst_82 = arith.constant 4.471500e-02 : f32
    %131 = vector.broadcast %cst_82 : f32 to vector<16x128xf32>
    %132 = arith.mulf %131, %130 : vector<16x128xf32>
    %133 = arith.addf %128, %132 : vector<16x128xf32>
    %cst_83 = arith.constant 0.797884583 : f32
    %134 = vector.broadcast %cst_83 : f32 to vector<16x128xf32>
    %135 = arith.mulf %134, %133 : vector<16x128xf32>
    %136 = math.tanh %135 : vector<16x128xf32>
    %cst_84 = arith.constant 1.000000e+00 : f32
    %137 = vector.broadcast %cst_84 : f32 to vector<16x128xf32>
    %138 = arith.addf %137, %136 : vector<16x128xf32>
    %cst_85 = arith.constant 5.000000e-01 : f32
    %139 = vector.broadcast %cst_85 : f32 to vector<16x128xf32>
    %140 = arith.mulf %139, %138 : vector<16x128xf32>
    %141 = arith.mulf %128, %140 : vector<16x128xf32>
    %c0_86 = arith.constant 0 : index
    %c0_87 = arith.constant 0 : index
    %c0_88 = arith.constant 0 : index
    %142 = vector.load %arg14[%c0_86, %c0_87, %c0_88] : memref<5x128x32xf32, #tpu.memory_space<vmem>>, vector<1x128x32xf32>
    %143 = vector.shape_cast %142 : vector<1x128x32xf32> to vector<128x32xf32>
    %cst_89 = arith.constant dense<0.000000e+00> : vector<16x32xf32>
    %144 = tpu.matmul %141, %143, %cst_89 {dimension_numbers = #tpu.dot_dimension_numbers<[1], [0], [0], [1], [0, 0, 1, 1], [], []>} : vector<16x128xf32>, vector<128x32xf32>, vector<16x32xf32> -> vector<16x32xf32>
    %145 = arith.addf %96, %144 : vector<16x32xf32>
    %c0_90 = arith.constant 0 : index
    %c0_91 = arith.constant 0 : index
    %c0_92 = arith.constant 0 : index
    %146 = vector.load %arg15[%c0_90, %c0_91, %c0_92] : memref<5x1x32xf32, #tpu.memory_space<vmem>>, vector<1x1x32xf32>
    %147 = vector.shape_cast %146 : vector<1x1x32xf32> to vector<1x32xf32>
    %148 = vector.broadcast %147 : vector<1x32xf32> to vector<16x32xf32>
    %149 = arith.addf %145, %148 : vector<16x32xf32>
    %c1 = arith.constant 1 : index
    %c0_93 = arith.constant 0 : index
    %c0_94 = arith.constant 0 : index
    %150 = vector.load %arg10[%c1, %c0_93, %c0_94] : memref<5x1x32xf32, #tpu.memory_space<vmem>>, vector<1x1x32xf32>
    %151 = vector.shape_cast %150 : vector<1x1x32xf32> to vector<1x32xf32>
    %c1_95 = arith.constant 1 : index
    %c0_96 = arith.constant 0 : index
    %c0_97 = arith.constant 0 : index
    %152 = vector.load %arg11[%c1_95, %c0_96, %c0_97] : memref<5x1x32xf32, #tpu.memory_space<vmem>>, vector<1x1x32xf32>
    %153 = vector.shape_cast %152 : vector<1x1x32xf32> to vector<1x32xf32>
    %cst_98 = arith.constant dense<0.000000e+00> : vector<16xf32>
    %154 = vector.multi_reduction <add>, %149, %cst_98 [1] : vector<16x32xf32> to vector<16xf32>
    %155 = vector.shape_cast %154 : vector<16xf32> to vector<16x1xf32>
    %cst_99 = arith.constant 3.200000e+01 : f32
    %156 = vector.broadcast %cst_99 : f32 to vector<16x1xf32>
    %157 = arith.divf %155, %156 : vector<16x1xf32>
    %158 = vector.broadcast %157 : vector<16x1xf32> to vector<16x32xf32>
    %159 = arith.subf %149, %158 : vector<16x32xf32>
    %160 = arith.mulf %159, %159 : vector<16x32xf32>
    %cst_100 = arith.constant dense<0.000000e+00> : vector<16xf32>
    %161 = vector.multi_reduction <add>, %160, %cst_100 [1] : vector<16x32xf32> to vector<16xf32>
    %162 = vector.shape_cast %161 : vector<16xf32> to vector<16x1xf32>
    %cst_101 = arith.constant 0.0322580636 : f32
    %163 = vector.broadcast %cst_101 : f32 to vector<16x1xf32>
    %164 = arith.mulf %162, %163 : vector<16x1xf32>
    %165 = math.sqrt %164 : vector<16x1xf32>
    %cst_102 = arith.constant 9.99999997E-7 : f32
    %166 = vector.broadcast %cst_102 : f32 to vector<16x1xf32>
    %167 = arith.addf %165, %166 : vector<16x1xf32>
    %168 = tpu.reciprocal %167 : vector<16x1xf32> -> vector<16x1xf32>
    %169 = vector.broadcast %168 : vector<16x1xf32> to vector<16x32xf32>
    %170 = arith.mulf %159, %169 : vector<16x32xf32>
    %171 = vector.broadcast %151 : vector<1x32xf32> to vector<16x32xf32>
    %172 = arith.mulf %171, %170 : vector<16x32xf32>
    %173 = vector.broadcast %153 : vector<1x32xf32> to vector<16x32xf32>
    %174 = arith.addf %172, %173 : vector<16x32xf32>
    %c1_103 = arith.constant 1 : index
    %c0_104 = arith.constant 0 : index
    %c0_105 = arith.constant 0 : index
    %175 = vector.load %arg6[%c1_103, %c0_104, %c0_105] : memref<5x32x96xf32, #tpu.memory_space<vmem>>, vector<1x32x96xf32>
    %176 = vector.shape_cast %175 : vector<1x32x96xf32> to vector<32x96xf32>
    %cst_106 = arith.constant dense<0.000000e+00> : vector<16x96xf32>
    %177 = tpu.matmul %174, %176, %cst_106 {dimension_numbers = #tpu.dot_dimension_numbers<[1], [0], [0], [1], [0, 0, 1, 1], [], []>} : vector<16x32xf32>, vector<32x96xf32>, vector<16x96xf32> -> vector<16x96xf32>
    %c1_107 = arith.constant 1 : index
    %c0_108 = arith.constant 0 : index
    %c0_109 = arith.constant 0 : index
    %178 = vector.load %arg7[%c1_107, %c0_108, %c0_109] : memref<5x1x96xf32, #tpu.memory_space<vmem>>, vector<1x1x96xf32>
    %179 = vector.shape_cast %178 : vector<1x1x96xf32> to vector<1x96xf32>
    %180 = vector.broadcast %179 : vector<1x96xf32> to vector<16x96xf32>
    %181 = arith.addf %177, %180 : vector<16x96xf32>
    %182 = vector.extract_strided_slice %181 {offsets = [0, 0], sizes = [16, 32], strides = [1, 1]} : vector<16x96xf32> to vector<16x32xf32>
    %183 = vector.extract_strided_slice %181 {offsets = [0, 32], sizes = [16, 32], strides = [1, 1]} : vector<16x96xf32> to vector<16x32xf32>
    %184 = vector.extract_strided_slice %181 {offsets = [0, 64], sizes = [16, 32], strides = [1, 1]} : vector<16x96xf32> to vector<16x32xf32>
    %185 = vector.extract_strided_slice %183 {offsets = [0, 0], sizes = [16, 4], strides = [1, 1]} : vector<16x32xf32> to vector<16x4xf32>
    %c0_110 = arith.constant 0 : index
    %c0_111 = arith.constant 0 : index
    %186 = vector.load %arg21[%c0_110, %c0_111] : memref<128x32xf32, #tpu.memory_space<vmem>>, vector<16x4xf32>
    tpu.vector_store %arg21[%c0_110, %c0_111], %185 {strides = array<i32>} : memref<128x32xf32, #tpu.memory_space<vmem>>, vector<16x4xf32>,
    %187 = vector.extract_strided_slice %183 {offsets = [0, 4], sizes = [16, 4], strides = [1, 1]} : vector<16x32xf32> to vector<16x4xf32>
    %c16_112 = arith.constant 16 : index
    %c4_113 = arith.constant 4 : index
    %188 = vector.load %arg21[%c16_112, %c4_113] : memref<128x32xf32, #tpu.memory_space<vmem>>, vector<16x4xf32>
    tpu.vector_store %arg21[%c16_112, %c4_113], %187 {strides = array<i32>} : memref<128x32xf32, #tpu.memory_space<vmem>>, vector<16x4xf32>,
    %189 = vector.extract_strided_slice %183 {offsets = [0, 8], sizes = [16, 4], strides = [1, 1]} : vector<16x32xf32> to vector<16x4xf32>
    %c32_114 = arith.constant 32 : index
    %c8_115 = arith.constant 8 : index
    %190 = vector.load %arg21[%c32_114, %c8_115] : memref<128x32xf32, #tpu.memory_space<vmem>>, vector<16x4xf32>
    tpu.vector_store %arg21[%c32_114, %c8_115], %189 {strides = array<i32>} : memref<128x32xf32, #tpu.memory_space<vmem>>, vector<16x4xf32>,
    %191 = vector.extract_strided_slice %183 {offsets = [0, 12], sizes = [16, 4], strides = [1, 1]} : vector<16x32xf32> to vector<16x4xf32>
    %c48_116 = arith.constant 48 : index
    %c12_117 = arith.constant 12 : index
    %192 = vector.load %arg21[%c48_116, %c12_117] : memref<128x32xf32, #tpu.memory_space<vmem>>, vector<16x4xf32>
    tpu.vector_store %arg21[%c48_116, %c12_117], %191 {strides = array<i32>} : memref<128x32xf32, #tpu.memory_space<vmem>>, vector<16x4xf32>,
    %193 = vector.extract_strided_slice %183 {offsets = [0, 16], sizes = [16, 4], strides = [1, 1]} : vector<16x32xf32> to vector<16x4xf32>
    %c64_118 = arith.constant 64 : index
    %c16_119 = arith.constant 16 : index
    %194 = vector.load %arg21[%c64_118, %c16_119] : memref<128x32xf32, #tpu.memory_space<vmem>>, vector<16x4xf32>
    tpu.vector_store %arg21[%c64_118, %c16_119], %193 {strides = array<i32>} : memref<128x32xf32, #tpu.memory_space<vmem>>, vector<16x4xf32>,
    %195 = vector.extract_strided_slice %183 {offsets = [0, 20], sizes = [16, 4], strides = [1, 1]} : vector<16x32xf32> to vector<16x4xf32>
    %c80_120 = arith.constant 80 : index
    %c20_121 = arith.constant 20 : index
    %196 = vector.load %arg21[%c80_120, %c20_121] : memref<128x32xf32, #tpu.memory_space<vmem>>, vector<16x4xf32>
    tpu.vector_store %arg21[%c80_120, %c20_121], %195 {strides = array<i32>} : memref<128x32xf32, #tpu.memory_space<vmem>>, vector<16x4xf32>,
    %197 = vector.extract_strided_slice %183 {offsets = [0, 24], sizes = [16, 4], strides = [1, 1]} : vector<16x32xf32> to vector<16x4xf32>
    %c96_122 = arith.constant 96 : index
    %c24_123 = arith.constant 24 : index
    %198 = vector.load %arg21[%c96_122, %c24_123] : memref<128x32xf32, #tpu.memory_space<vmem>>, vector<16x4xf32>
    tpu.vector_store %arg21[%c96_122, %c24_123], %197 {strides = array<i32>} : memref<128x32xf32, #tpu.memory_space<vmem>>, vector<16x4xf32>,
    %199 = vector.extract_strided_slice %183 {offsets = [0, 28], sizes = [16, 4], strides = [1, 1]} : vector<16x32xf32> to vector<16x4xf32>
    %c112_124 = arith.constant 112 : index
    %c28_125 = arith.constant 28 : index
    %200 = vector.load %arg21[%c112_124, %c28_125] : memref<128x32xf32, #tpu.memory_space<vmem>>, vector<16x4xf32>
    tpu.vector_store %arg21[%c112_124, %c28_125], %199 {strides = array<i32>} : memref<128x32xf32, #tpu.memory_space<vmem>>, vector<16x4xf32>,
    %c0_126 = arith.constant 0 : index
    %c0_127 = arith.constant 0 : index
    %201 = vector.load %arg21[%c0_126, %c0_127] : memref<128x32xf32, #tpu.memory_space<vmem>>, vector<128x32xf32>
    "tpu.trace_start"() <{level = 10 : i32, message = "qd,rd->qr"}> : () -> ()
    %cst_128 = arith.constant dense<0.000000e+00> : vector<16x128xf32>
    %202 = tpu.matmul %182, %201, %cst_128 {dimension_numbers = #tpu.dot_dimension_numbers<[1], [1], [0], [0], [0, 0, 1, 0], [], []>} : vector<16x32xf32>, vector<128x32xf32>, vector<16x128xf32> -> vector<16x128xf32>
    "tpu.trace_stop"() : () -> ()
    %c0_129 = arith.constant 0 : index
    %c0_130 = arith.constant 0 : index
    %c0_131 = arith.constant 0 : index
    %203 = vector.load %arg2[%c0_129, %c0_130, %c0_131] : memref<1x16x128xf32, #tpu.memory_space<vmem>>, vector<1x16x128xf32>
    %204 = vector.shape_cast %203 : vector<1x16x128xf32> to vector<16x128xf32>
    %205 = arith.addf %202, %204 : vector<16x128xf32>
    %cst_132 = arith.constant dense<0xFF800000> : vector<16xf32>
    %206 = vector.multi_reduction <maximumf>, %205, %cst_132 [1] : vector<16x128xf32> to vector<16xf32>
    %207 = vector.shape_cast %206 : vector<16xf32> to vector<16x1xf32>
    %208 = vector.broadcast %207 : vector<16x1xf32> to vector<16x128xf32>
    %209 = arith.subf %205, %208 : vector<16x128xf32>
    %210 = math.exp %209 : vector<16x128xf32>
    %c0_133 = arith.constant 0 : index
    %c0_134 = arith.constant 0 : index
    %211 = vector.load %arg5[%c0_133, %c0_134] : memref<128x128xf32, #tpu.memory_space<vmem>>, vector<128x128xf32>
    %cst_135 = arith.constant dense<0.000000e+00> : vector<16x128xf32>
    %212 = tpu.matmul %210, %211, %cst_135 {dimension_numbers = #tpu.dot_dimension_numbers<[1], [0], [0], [1], [0, 0, 1, 1], [], []>} : vector<16x128xf32>, vector<128x128xf32>, vector<16x128xf32> -> vector<16x128xf32>
    %213 = tpu.reciprocal %212 : vector<16x128xf32> -> vector<16x128xf32>
    %214 = arith.mulf %210, %213 : vector<16x128xf32>
    %215 = vector.extract_strided_slice %184 {offsets = [0, 0], sizes = [16, 4], strides = [1, 1]} : vector<16x32xf32> to vector<16x4xf32>
    %c0_136 = arith.constant 0 : index
    %c0_137 = arith.constant 0 : index
    %216 = vector.load %arg22[%c0_136, %c0_137] : memref<128x32xf32, #tpu.memory_space<vmem>>, vector<16x4xf32>
    tpu.vector_store %arg22[%c0_136, %c0_137], %215 {strides = array<i32>} : memref<128x32xf32, #tpu.memory_space<vmem>>, vector<16x4xf32>,
    %217 = vector.extract_strided_slice %184 {offsets = [0, 4], sizes = [16, 4], strides = [1, 1]} : vector<16x32xf32> to vector<16x4xf32>
    %c16_138 = arith.constant 16 : index
    %c4_139 = arith.constant 4 : index
    %218 = vector.load %arg22[%c16_138, %c4_139] : memref<128x32xf32, #tpu.memory_space<vmem>>, vector<16x4xf32>
    tpu.vector_store %arg22[%c16_138, %c4_139], %217 {strides = array<i32>} : memref<128x32xf32, #tpu.memory_space<vmem>>, vector<16x4xf32>,
    %219 = vector.extract_strided_slice %184 {offsets = [0, 8], sizes = [16, 4], strides = [1, 1]} : vector<16x32xf32> to vector<16x4xf32>
    %c32_140 = arith.constant 32 : index
    %c8_141 = arith.constant 8 : index
    %220 = vector.load %arg22[%c32_140, %c8_141] : memref<128x32xf32, #tpu.memory_space<vmem>>, vector<16x4xf32>
    tpu.vector_store %arg22[%c32_140, %c8_141], %219 {strides = array<i32>} : memref<128x32xf32, #tpu.memory_space<vmem>>, vector<16x4xf32>,
    %221 = vector.extract_strided_slice %184 {offsets = [0, 12], sizes = [16, 4], strides = [1, 1]} : vector<16x32xf32> to vector<16x4xf32>
    %c48_142 = arith.constant 48 : index
    %c12_143 = arith.constant 12 : index
    %222 = vector.load %arg22[%c48_142, %c12_143] : memref<128x32xf32, #tpu.memory_space<vmem>>, vector<16x4xf32>
    tpu.vector_store %arg22[%c48_142, %c12_143], %221 {strides = array<i32>} : memref<128x32xf32, #tpu.memory_space<vmem>>, vector<16x4xf32>,
    %223 = vector.extract_strided_slice %184 {offsets = [0, 16], sizes = [16, 4], strides = [1, 1]} : vector<16x32xf32> to vector<16x4xf32>
    %c64_144 = arith.constant 64 : index
    %c16_145 = arith.constant 16 : index
    %224 = vector.load %arg22[%c64_144, %c16_145] : memref<128x32xf32, #tpu.memory_space<vmem>>, vector<16x4xf32>
    tpu.vector_store %arg22[%c64_144, %c16_145], %223 {strides = array<i32>} : memref<128x32xf32, #tpu.memory_space<vmem>>, vector<16x4xf32>,
    %225 = vector.extract_strided_slice %184 {offsets = [0, 20], sizes = [16, 4], strides = [1, 1]} : vector<16x32xf32> to vector<16x4xf32>
    %c80_146 = arith.constant 80 : index
    %c20_147 = arith.constant 20 : index
    %226 = vector.load %arg22[%c80_146, %c20_147] : memref<128x32xf32, #tpu.memory_space<vmem>>, vector<16x4xf32>
    tpu.vector_store %arg22[%c80_146, %c20_147], %225 {strides = array<i32>} : memref<128x32xf32, #tpu.memory_space<vmem>>, vector<16x4xf32>,
    %227 = vector.extract_strided_slice %184 {offsets = [0, 24], sizes = [16, 4], strides = [1, 1]} : vector<16x32xf32> to vector<16x4xf32>
    %c96_148 = arith.constant 96 : index
    %c24_149 = arith.constant 24 : index
    %228 = vector.load %arg22[%c96_148, %c24_149] : memref<128x32xf32, #tpu.memory_space<vmem>>, vector<16x4xf32>
    tpu.vector_store %arg22[%c96_148, %c24_149], %227 {strides = array<i32>} : memref<128x32xf32, #tpu.memory_space<vmem>>, vector<16x4xf32>,
    %229 = vector.extract_strided_slice %184 {offsets = [0, 28], sizes = [16, 4], strides = [1, 1]} : vector<16x32xf32> to vector<16x4xf32>
    %c112_150 = arith.constant 112 : index
    %c28_151 = arith.constant 28 : index
    %230 = vector.load %arg22[%c112_150, %c28_151] : memref<128x32xf32, #tpu.memory_space<vmem>>, vector<16x4xf32>
    tpu.vector_store %arg22[%c112_150, %c28_151], %229 {strides = array<i32>} : memref<128x32xf32, #tpu.memory_space<vmem>>, vector<16x4xf32>,
    %c0_152 = arith.constant 0 : index
    %c0_153 = arith.constant 0 : index
    %231 = vector.load %arg22[%c0_152, %c0_153] : memref<128x32xf32, #tpu.memory_space<vmem>>, vector<128x32xf32>
    %cst_154 = arith.constant dense<0.000000e+00> : vector<16x32xf32>
    %232 = tpu.matmul %214, %231, %cst_154 {dimension_numbers = #tpu.dot_dimension_numbers<[1], [0], [0], [1], [0, 0, 1, 1], [], []>} : vector<16x128xf32>, vector<128x32xf32>, vector<16x32xf32> -> vector<16x32xf32>
    %c1_155 = arith.constant 1 : index
    %c0_156 = arith.constant 0 : index
    %c0_157 = arith.constant 0 : index
    %233 = vector.load %arg8[%c1_155, %c0_156, %c0_157] : memref<5x32x32xf32, #tpu.memory_space<vmem>>, vector<1x32x32xf32>
    %234 = vector.shape_cast %233 : vector<1x32x32xf32> to vector<32x32xf32>
    %cst_158 = arith.constant dense<0.000000e+00> : vector<16x32xf32>
    %235 = tpu.matmul %232, %234, %cst_158 {dimension_numbers = #tpu.dot_dimension_numbers<[1], [0], [0], [1], [0, 0, 1, 1], [], []>} : vector<16x32xf32>, vector<32x32xf32>, vector<16x32xf32> -> vector<16x32xf32>
    %c1_159 = arith.constant 1 : index
    %c0_160 = arith.constant 0 : index
    %c0_161 = arith.constant 0 : index
    %236 = vector.load %arg9[%c1_159, %c0_160, %c0_161] : memref<5x1x32xf32, #tpu.memory_space<vmem>>, vector<1x1x32xf32>
    %237 = vector.shape_cast %236 : vector<1x1x32xf32> to vector<1x32xf32>
    %238 = vector.broadcast %237 : vector<1x32xf32> to vector<16x32xf32>
    %239 = arith.addf %235, %238 : vector<16x32xf32>
    %240 = arith.addf %149, %239 : vector<16x32xf32>
    %c1_162 = arith.constant 1 : index
    %c0_163 = arith.constant 0 : index
    %c0_164 = arith.constant 0 : index
    %241 = vector.load %arg16[%c1_162, %c0_163, %c0_164] : memref<5x1x32xf32, #tpu.memory_space<vmem>>, vector<1x1x32xf32>
    %242 = vector.shape_cast %241 : vector<1x1x32xf32> to vector<1x32xf32>
    %c1_165 = arith.constant 1 : index
    %c0_166 = arith.constant 0 : index
    %c0_167 = arith.constant 0 : index
    %243 = vector.load %arg17[%c1_165, %c0_166, %c0_167] : memref<5x1x32xf32, #tpu.memory_space<vmem>>, vector<1x1x32xf32>
    %244 = vector.shape_cast %243 : vector<1x1x32xf32> to vector<1x32xf32>
    %cst_168 = arith.constant dense<0.000000e+00> : vector<16xf32>
    %245 = vector.multi_reduction <add>, %240, %cst_168 [1] : vector<16x32xf32> to vector<16xf32>
    %246 = vector.shape_cast %245 : vector<16xf32> to vector<16x1xf32>
    %cst_169 = arith.constant 3.200000e+01 : f32
    %247 = vector.broadcast %cst_169 : f32 to vector<16x1xf32>
    %248 = arith.divf %246, %247 : vector<16x1xf32>
    %249 = vector.broadcast %248 : vector<16x1xf32> to vector<16x32xf32>
    %250 = arith.subf %240, %249 : vector<16x32xf32>
    %251 = arith.mulf %250, %250 : vector<16x32xf32>
    %cst_170 = arith.constant dense<0.000000e+00> : vector<16xf32>
    %252 = vector.multi_reduction <add>, %251, %cst_170 [1] : vector<16x32xf32> to vector<16xf32>
    %253 = vector.shape_cast %252 : vector<16xf32> to vector<16x1xf32>
    %cst_171 = arith.constant 0.0322580636 : f32
    %254 = vector.broadcast %cst_171 : f32 to vector<16x1xf32>
    %255 = arith.mulf %253, %254 : vector<16x1xf32>
    %256 = math.sqrt %255 : vector<16x1xf32>
    %cst_172 = arith.constant 9.99999997E-7 : f32
    %257 = vector.broadcast %cst_172 : f32 to vector<16x1xf32>
    %258 = arith.addf %256, %257 : vector<16x1xf32>
    %259 = tpu.reciprocal %258 : vector<16x1xf32> -> vector<16x1xf32>
    %260 = vector.broadcast %259 : vector<16x1xf32> to vector<16x32xf32>
    %261 = arith.mulf %250, %260 : vector<16x32xf32>
    %262 = vector.broadcast %242 : vector<1x32xf32> to vector<16x32xf32>
    %263 = arith.mulf %262, %261 : vector<16x32xf32>
    %264 = vector.broadcast %244 : vector<1x32xf32> to vector<16x32xf32>
    %265 = arith.addf %263, %264 : vector<16x32xf32>
    %c1_173 = arith.constant 1 : index
    %c0_174 = arith.constant 0 : index
    %c0_175 = arith.constant 0 : index
    %266 = vector.load %arg12[%c1_173, %c0_174, %c0_175] : memref<5x32x128xf32, #tpu.memory_space<vmem>>, vector<1x32x128xf32>
    %267 = vector.shape_cast %266 : vector<1x32x128xf32> to vector<32x128xf32>
    %cst_176 = arith.constant dense<0.000000e+00> : vector<16x128xf32>
    %268 = tpu.matmul %265, %267, %cst_176 {dimension_numbers = #tpu.dot_dimension_numbers<[1], [0], [0], [1], [0, 0, 1, 1], [], []>} : vector<16x32xf32>, vector<32x128xf32>, vector<16x128xf32> -> vector<16x128xf32>
    %c1_177 = arith.constant 1 : index
    %c0_178 = arith.constant 0 : index
    %c0_179 = arith.constant 0 : index
    %269 = vector.load %arg13[%c1_177, %c0_178, %c0_179] : memref<5x1x128xf32, #tpu.memory_space<vmem>>, vector<1x1x128xf32>
    %270 = vector.shape_cast %269 : vector<1x1x128xf32> to vector<1x128xf32>
    %271 = vector.broadcast %270 : vector<1x128xf32> to vector<16x128xf32>
    %272 = arith.addf %268, %271 : vector<16x128xf32>
    %273 = arith.mulf %272, %272 : vector<16x128xf32>
    %274 = arith.mulf %272, %273 : vector<16x128xf32>
    %cst_180 = arith.constant 4.471500e-02 : f32
    %275 = vector.broadcast %cst_180 : f32 to vector<16x128xf32>
    %276 = arith.mulf %275, %274 : vector<16x128xf32>
    %277 = arith.addf %272, %276 : vector<16x128xf32>
    %cst_181 = arith.constant 0.797884583 : f32
    %278 = vector.broadcast %cst_181 : f32 to vector<16x128xf32>
    %279 = arith.mulf %278, %277 : vector<16x128xf32>
    %280 = math.tanh %279 : vector<16x128xf32>
    %cst_182 = arith.constant 1.000000e+00 : f32
    %281 = vector.broadcast %cst_182 : f32 to vector<16x128xf32>
    %282 = arith.addf %281, %280 : vector<16x128xf32>
    %cst_183 = arith.constant 5.000000e-01 : f32
    %283 = vector.broadcast %cst_183 : f32 to vector<16x128xf32>
    %284 = arith.mulf %283, %282 : vector<16x128xf32>
    %285 = arith.mulf %272, %284 : vector<16x128xf32>
    %c1_184 = arith.constant 1 : index
    %c0_185 = arith.constant 0 : index
    %c0_186 = arith.constant 0 : index
    %286 = vector.load %arg14[%c1_184, %c0_185, %c0_186] : memref<5x128x32xf32, #tpu.memory_space<vmem>>, vector<1x128x32xf32>
    %287 = vector.shape_cast %286 : vector<1x128x32xf32> to vector<128x32xf32>
    %cst_187 = arith.constant dense<0.000000e+00> : vector<16x32xf32>
    %288 = tpu.matmul %285, %287, %cst_187 {dimension_numbers = #tpu.dot_dimension_numbers<[1], [0], [0], [1], [0, 0, 1, 1], [], []>} : vector<16x128xf32>, vector<128x32xf32>, vector<16x32xf32> -> vector<16x32xf32>
    %289 = arith.addf %240, %288 : vector<16x32xf32>
    %c1_188 = arith.constant 1 : index
    %c0_189 = arith.constant 0 : index
    %c0_190 = arith.constant 0 : index
    %290 = vector.load %arg15[%c1_188, %c0_189, %c0_190] : memref<5x1x32xf32, #tpu.memory_space<vmem>>, vector<1x1x32xf32>
    %291 = vector.shape_cast %290 : vector<1x1x32xf32> to vector<1x32xf32>
    %292 = vector.broadcast %291 : vector<1x32xf32> to vector<16x32xf32>
    %293 = arith.addf %289, %292 : vector<16x32xf32>
    %c2 = arith.constant 2 : index
    %c0_191 = arith.constant 0 : index
    %c0_192 = arith.constant 0 : index
    %294 = vector.load %arg10[%c2, %c0_191, %c0_192] : memref<5x1x32xf32, #tpu.memory_space<vmem>>, vector<1x1x32xf32>
    %295 = vector.shape_cast %294 : vector<1x1x32xf32> to vector<1x32xf32>
    %c2_193 = arith.constant 2 : index
    %c0_194 = arith.constant 0 : index
    %c0_195 = arith.constant 0 : index
    %296 = vector.load %arg11[%c2_193, %c0_194, %c0_195] : memref<5x1x32xf32, #tpu.memory_space<vmem>>, vector<1x1x32xf32>
    %297 = vector.shape_cast %296 : vector<1x1x32xf32> to vector<1x32xf32>
    %cst_196 = arith.constant dense<0.000000e+00> : vector<16xf32>
    %298 = vector.multi_reduction <add>, %293, %cst_196 [1] : vector<16x32xf32> to vector<16xf32>
    %299 = vector.shape_cast %298 : vector<16xf32> to vector<16x1xf32>
    %cst_197 = arith.constant 3.200000e+01 : f32
    %300 = vector.broadcast %cst_197 : f32 to vector<16x1xf32>
    %301 = arith.divf %299, %300 : vector<16x1xf32>
    %302 = vector.broadcast %301 : vector<16x1xf32> to vector<16x32xf32>
    %303 = arith.subf %293, %302 : vector<16x32xf32>
    %304 = arith.mulf %303, %303 : vector<16x32xf32>
    %cst_198 = arith.constant dense<0.000000e+00> : vector<16xf32>
    %305 = vector.multi_reduction <add>, %304, %cst_198 [1] : vector<16x32xf32> to vector<16xf32>
    %306 = vector.shape_cast %305 : vector<16xf32> to vector<16x1xf32>
    %cst_199 = arith.constant 0.0322580636 : f32
    %307 = vector.broadcast %cst_199 : f32 to vector<16x1xf32>
    %308 = arith.mulf %306, %307 : vector<16x1xf32>
    %309 = math.sqrt %308 : vector<16x1xf32>
    %cst_200 = arith.constant 9.99999997E-7 : f32
    %310 = vector.broadcast %cst_200 : f32 to vector<16x1xf32>
    %311 = arith.addf %309, %310 : vector<16x1xf32>
    %312 = tpu.reciprocal %311 : vector<16x1xf32> -> vector<16x1xf32>
    %313 = vector.broadcast %312 : vector<16x1xf32> to vector<16x32xf32>
    %314 = arith.mulf %303, %313 : vector<16x32xf32>
    %315 = vector.broadcast %295 : vector<1x32xf32> to vector<16x32xf32>
    %316 = arith.mulf %315, %314 : vector<16x32xf32>
    %317 = vector.broadcast %297 : vector<1x32xf32> to vector<16x32xf32>
    %318 = arith.addf %316, %317 : vector<16x32xf32>
    %c2_201 = arith.constant 2 : index
    %c0_202 = arith.constant 0 : index
    %c0_203 = arith.constant 0 : index
    %319 = vector.load %arg6[%c2_201, %c0_202, %c0_203] : memref<5x32x96xf32, #tpu.memory_space<vmem>>, vector<1x32x96xf32>
    %320 = vector.shape_cast %319 : vector<1x32x96xf32> to vector<32x96xf32>
    %cst_204 = arith.constant dense<0.000000e+00> : vector<16x96xf32>
    %321 = tpu.matmul %318, %320, %cst_204 {dimension_numbers = #tpu.dot_dimension_numbers<[1], [0], [0], [1], [0, 0, 1, 1], [], []>} : vector<16x32xf32>, vector<32x96xf32>, vector<16x96xf32> -> vector<16x96xf32>
    %c2_205 = arith.constant 2 : index
    %c0_206 = arith.constant 0 : index
    %c0_207 = arith.constant 0 : index
    %322 = vector.load %arg7[%c2_205, %c0_206, %c0_207] : memref<5x1x96xf32, #tpu.memory_space<vmem>>, vector<1x1x96xf32>
    %323 = vector.shape_cast %322 : vector<1x1x96xf32> to vector<1x96xf32>
    %324 = vector.broadcast %323 : vector<1x96xf32> to vector<16x96xf32>
    %325 = arith.addf %321, %324 : vector<16x96xf32>
    %326 = vector.extract_strided_slice %325 {offsets = [0, 0], sizes = [16, 32], strides = [1, 1]} : vector<16x96xf32> to vector<16x32xf32>
    %327 = vector.extract_strided_slice %325 {offsets = [0, 32], sizes = [16, 32], strides = [1, 1]} : vector<16x96xf32> to vector<16x32xf32>
    %328 = vector.extract_strided_slice %325 {offsets = [0, 64], sizes = [16, 32], strides = [1, 1]} : vector<16x96xf32> to vector<16x32xf32>
    %329 = vector.extract_strided_slice %327 {offsets = [0, 0], sizes = [16, 4], strides = [1, 1]} : vector<16x32xf32> to vector<16x4xf32>
    %c0_208 = arith.constant 0 : index
    %c0_209 = arith.constant 0 : index
    %330 = vector.load %arg21[%c0_208, %c0_209] : memref<128x32xf32, #tpu.memory_space<vmem>>, vector<16x4xf32>
    tpu.vector_store %arg21[%c0_208, %c0_209], %329 {strides = array<i32>} : memref<128x32xf32, #tpu.memory_space<vmem>>, vector<16x4xf32>,
    %331 = vector.extract_strided_slice %327 {offsets = [0, 4], sizes = [16, 4], strides = [1, 1]} : vector<16x32xf32> to vector<16x4xf32>
    %c16_210 = arith.constant 16 : index
    %c4_211 = arith.constant 4 : index
    %332 = vector.load %arg21[%c16_210, %c4_211] : memref<128x32xf32, #tpu.memory_space<vmem>>, vector<16x4xf32>
    tpu.vector_store %arg21[%c16_210, %c4_211], %331 {strides = array<i32>} : memref<128x32xf32, #tpu.memory_space<vmem>>, vector<16x4xf32>,
    %333 = vector.extract_strided_slice %327 {offsets = [0, 8], sizes = [16, 4], strides = [1, 1]} : vector<16x32xf32> to vector<16x4xf32>
    %c32_212 = arith.constant 32 : index
    %c8_213 = arith.constant 8 : index
    %334 = vector.load %arg21[%c32_212, %c8_213] : memref<128x32xf32, #tpu.memory_space<vmem>>, vector<16x4xf32>
    tpu.vector_store %arg21[%c32_212, %c8_213], %333 {strides = array<i32>} : memref<128x32xf32, #tpu.memory_space<vmem>>, vector<16x4xf32>,
    %335 = vector.extract_strided_slice %327 {offsets = [0, 12], sizes = [16, 4], strides = [1, 1]} : vector<16x32xf32> to vector<16x4xf32>
    %c48_214 = arith.constant 48 : index
    %c12_215 = arith.constant 12 : index
    %336 = vector.load %arg21[%c48_214, %c12_215] : memref<128x32xf32, #tpu.memory_space<vmem>>, vector<16x4xf32>
    tpu.vector_store %arg21[%c48_214, %c12_215], %335 {strides = array<i32>} : memref<128x32xf32, #tpu.memory_space<vmem>>, vector<16x4xf32>,
    %337 = vector.extract_strided_slice %327 {offsets = [0, 16], sizes = [16, 4], strides = [1, 1]} : vector<16x32xf32> to vector<16x4xf32>
    %c64_216 = arith.constant 64 : index
    %c16_217 = arith.constant 16 : index
    %338 = vector.load %arg21[%c64_216, %c16_217] : memref<128x32xf32, #tpu.memory_space<vmem>>, vector<16x4xf32>
    tpu.vector_store %arg21[%c64_216, %c16_217], %337 {strides = array<i32>} : memref<128x32xf32, #tpu.memory_space<vmem>>, vector<16x4xf32>,
    %339 = vector.extract_strided_slice %327 {offsets = [0, 20], sizes = [16, 4], strides = [1, 1]} : vector<16x32xf32> to vector<16x4xf32>
    %c80_218 = arith.constant 80 : index
    %c20_219 = arith.constant 20 : index
    %340 = vector.load %arg21[%c80_218, %c20_219] : memref<128x32xf32, #tpu.memory_space<vmem>>, vector<16x4xf32>
    tpu.vector_store %arg21[%c80_218, %c20_219], %339 {strides = array<i32>} : memref<128x32xf32, #tpu.memory_space<vmem>>, vector<16x4xf32>,
    %341 = vector.extract_strided_slice %327 {offsets = [0, 24], sizes = [16, 4], strides = [1, 1]} : vector<16x32xf32> to vector<16x4xf32>
    %c96_220 = arith.constant 96 : index
    %c24_221 = arith.constant 24 : index
    %342 = vector.load %arg21[%c96_220, %c24_221] : memref<128x32xf32, #tpu.memory_space<vmem>>, vector<16x4xf32>
    tpu.vector_store %arg21[%c96_220, %c24_221], %341 {strides = array<i32>} : memref<128x32xf32, #tpu.memory_space<vmem>>, vector<16x4xf32>,
    %343 = vector.extract_strided_slice %327 {offsets = [0, 28], sizes = [16, 4], strides = [1, 1]} : vector<16x32xf32> to vector<16x4xf32>
    %c112_222 = arith.constant 112 : index
    %c28_223 = arith.constant 28 : index
    %344 = vector.load %arg21[%c112_222, %c28_223] : memref<128x32xf32, #tpu.memory_space<vmem>>, vector<16x4xf32>
    tpu.vector_store %arg21[%c112_222, %c28_223], %343 {strides = array<i32>} : memref<128x32xf32, #tpu.memory_space<vmem>>, vector<16x4xf32>,
    %c0_224 = arith.constant 0 : index
    %c0_225 = arith.constant 0 : index
    %345 = vector.load %arg21[%c0_224, %c0_225] : memref<128x32xf32, #tpu.memory_space<vmem>>, vector<128x32xf32>
    "tpu.trace_start"() <{level = 10 : i32, message = "qd,rd->qr"}> : () -> ()
    %cst_226 = arith.constant dense<0.000000e+00> : vector<16x128xf32>
    %346 = tpu.matmul %326, %345, %cst_226 {dimension_numbers = #tpu.dot_dimension_numbers<[1], [1], [0], [0], [0, 0, 1, 0], [], []>} : vector<16x32xf32>, vector<128x32xf32>, vector<16x128xf32> -> vector<16x128xf32>
    "tpu.trace_stop"() : () -> ()
    %c0_227 = arith.constant 0 : index
    %c0_228 = arith.constant 0 : index
    %c0_229 = arith.constant 0 : index
    %347 = vector.load %arg2[%c0_227, %c0_228, %c0_229] : memref<1x16x128xf32, #tpu.memory_space<vmem>>, vector<1x16x128xf32>
    %348 = vector.shape_cast %347 : vector<1x16x128xf32> to vector<16x128xf32>
    %349 = arith.addf %346, %348 : vector<16x128xf32>
    %cst_230 = arith.constant dense<0xFF800000> : vector<16xf32>
    %350 = vector.multi_reduction <maximumf>, %349, %cst_230 [1] : vector<16x128xf32> to vector<16xf32>
    %351 = vector.shape_cast %350 : vector<16xf32> to vector<16x1xf32>
    %352 = vector.broadcast %351 : vector<16x1xf32> to vector<16x128xf32>
    %353 = arith.subf %349, %352 : vector<16x128xf32>
    %354 = math.exp %353 : vector<16x128xf32>
    %c0_231 = arith.constant 0 : index
    %c0_232 = arith.constant 0 : index
    %355 = vector.load %arg5[%c0_231, %c0_232] : memref<128x128xf32, #tpu.memory_space<vmem>>, vector<128x128xf32>
    %cst_233 = arith.constant dense<0.000000e+00> : vector<16x128xf32>
    %356 = tpu.matmul %354, %355, %cst_233 {dimension_numbers = #tpu.dot_dimension_numbers<[1], [0], [0], [1], [0, 0, 1, 1], [], []>} : vector<16x128xf32>, vector<128x128xf32>, vector<16x128xf32> -> vector<16x128xf32>
    %357 = tpu.reciprocal %356 : vector<16x128xf32> -> vector<16x128xf32>
    %358 = arith.mulf %354, %357 : vector<16x128xf32>
    %359 = vector.extract_strided_slice %328 {offsets = [0, 0], sizes = [16, 4], strides = [1, 1]} : vector<16x32xf32> to vector<16x4xf32>
    %c0_234 = arith.constant 0 : index
    %c0_235 = arith.constant 0 : index
    %360 = vector.load %arg22[%c0_234, %c0_235] : memref<128x32xf32, #tpu.memory_space<vmem>>, vector<16x4xf32>
    tpu.vector_store %arg22[%c0_234, %c0_235], %359 {strides = array<i32>} : memref<128x32xf32, #tpu.memory_space<vmem>>, vector<16x4xf32>,
    %361 = vector.extract_strided_slice %328 {offsets = [0, 4], sizes = [16, 4], strides = [1, 1]} : vector<16x32xf32> to vector<16x4xf32>
    %c16_236 = arith.constant 16 : index
    %c4_237 = arith.constant 4 : index
    %362 = vector.load %arg22[%c16_236, %c4_237] : memref<128x32xf32, #tpu.memory_space<vmem>>, vector<16x4xf32>
    tpu.vector_store %arg22[%c16_236, %c4_237], %361 {strides = array<i32>} : memref<128x32xf32, #tpu.memory_space<vmem>>, vector<16x4xf32>,
    %363 = vector.extract_strided_slice %328 {offsets = [0, 8], sizes = [16, 4], strides = [1, 1]} : vector<16x32xf32> to vector<16x4xf32>
    %c32_238 = arith.constant 32 : index
    %c8_239 = arith.constant 8 : index
    %364 = vector.load %arg22[%c32_238, %c8_239] : memref<128x32xf32, #tpu.memory_space<vmem>>, vector<16x4xf32>
    tpu.vector_store %arg22[%c32_238, %c8_239], %363 {strides = array<i32>} : memref<128x32xf32, #tpu.memory_space<vmem>>, vector<16x4xf32>,
    %365 = vector.extract_strided_slice %328 {offsets = [0, 12], sizes = [16, 4], strides = [1, 1]} : vector<16x32xf32> to vector<16x4xf32>
    %c48_240 = arith.constant 48 : index
    %c12_241 = arith.constant 12 : index
    %366 = vector.load %arg22[%c48_240, %c12_241] : memref<128x32xf32, #tpu.memory_space<vmem>>, vector<16x4xf32>
    tpu.vector_store %arg22[%c48_240, %c12_241], %365 {strides = array<i32>} : memref<128x32xf32, #tpu.memory_space<vmem>>, vector<16x4xf32>,
    %367 = vector.extract_strided_slice %328 {offsets = [0, 16], sizes = [16, 4], strides = [1, 1]} : vector<16x32xf32> to vector<16x4xf32>
    %c64_242 = arith.constant 64 : index
    %c16_243 = arith.constant 16 : index
    %368 = vector.load %arg22[%c64_242, %c16_243] : memref<128x32xf32, #tpu.memory_space<vmem>>, vector<16x4xf32>
    tpu.vector_store %arg22[%c64_242, %c16_243], %367 {strides = array<i32>} : memref<128x32xf32, #tpu.memory_space<vmem>>, vector<16x4xf32>,
    %369 = vector.extract_strided_slice %328 {offsets = [0, 20], sizes = [16, 4], strides = [1, 1]} : vector<16x32xf32> to vector<16x4xf32>
    %c80_244 = arith.constant 80 : index
    %c20_245 = arith.constant 20 : index
    %370 = vector.load %arg22[%c80_244, %c20_245] : memref<128x32xf32, #tpu.memory_space<vmem>>, vector<16x4xf32>
    tpu.vector_store %arg22[%c80_244, %c20_245], %369 {strides = array<i32>} : memref<128x32xf32, #tpu.memory_space<vmem>>, vector<16x4xf32>,
    %371 = vector.extract_strided_slice %328 {offsets = [0, 24], sizes = [16, 4], strides = [1, 1]} : vector<16x32xf32> to vector<16x4xf32>
    %c96_246 = arith.constant 96 : index
    %c24_247 = arith.constant 24 : index
    %372 = vector.load %arg22[%c96_246, %c24_247] : memref<128x32xf32, #tpu.memory_space<vmem>>, vector<16x4xf32>
    tpu.vector_store %arg22[%c96_246, %c24_247], %371 {strides = array<i32>} : memref<128x32xf32, #tpu.memory_space<vmem>>, vector<16x4xf32>,
    %373 = vector.extract_strided_slice %328 {offsets = [0, 28], sizes = [16, 4], strides = [1, 1]} : vector<16x32xf32> to vector<16x4xf32>
    %c112_248 = arith.constant 112 : index
    %c28_249 = arith.constant 28 : index
    %374 = vector.load %arg22[%c112_248, %c28_249] : memref<128x32xf32, #tpu.memory_space<vmem>>, vector<16x4xf32>
    tpu.vector_store %arg22[%c112_248, %c28_249], %373 {strides = array<i32>} : memref<128x32xf32, #tpu.memory_space<vmem>>, vector<16x4xf32>,
    %c0_250 = arith.constant 0 : index
    %c0_251 = arith.constant 0 : index
    %375 = vector.load %arg22[%c0_250, %c0_251] : memref<128x32xf32, #tpu.memory_space<vmem>>, vector<128x32xf32>
    %cst_252 = arith.constant dense<0.000000e+00> : vector<16x32xf32>
    %376 = tpu.matmul %358, %375, %cst_252 {dimension_numbers = #tpu.dot_dimension_numbers<[1], [0], [0], [1], [0, 0, 1, 1], [], []>} : vector<16x128xf32>, vector<128x32xf32>, vector<16x32xf32> -> vector<16x32xf32>
    %c2_253 = arith.constant 2 : index
    %c0_254 = arith.constant 0 : index
    %c0_255 = arith.constant 0 : index
    %377 = vector.load %arg8[%c2_253, %c0_254, %c0_255] : memref<5x32x32xf32, #tpu.memory_space<vmem>>, vector<1x32x32xf32>
    %378 = vector.shape_cast %377 : vector<1x32x32xf32> to vector<32x32xf32>
    %cst_256 = arith.constant dense<0.000000e+00> : vector<16x32xf32>
    %379 = tpu.matmul %376, %378, %cst_256 {dimension_numbers = #tpu.dot_dimension_numbers<[1], [0], [0], [1], [0, 0, 1, 1], [], []>} : vector<16x32xf32>, vector<32x32xf32>, vector<16x32xf32> -> vector<16x32xf32>
    %c2_257 = arith.constant 2 : index
    %c0_258 = arith.constant 0 : index
    %c0_259 = arith.constant 0 : index
    %380 = vector.load %arg9[%c2_257, %c0_258, %c0_259] : memref<5x1x32xf32, #tpu.memory_space<vmem>>, vector<1x1x32xf32>
    %381 = vector.shape_cast %380 : vector<1x1x32xf32> to vector<1x32xf32>
    %382 = vector.broadcast %381 : vector<1x32xf32> to vector<16x32xf32>
    %383 = arith.addf %379, %382 : vector<16x32xf32>
    %384 = arith.addf %293, %383 : vector<16x32xf32>
    %c2_260 = arith.constant 2 : index
    %c0_261 = arith.constant 0 : index
    %c0_262 = arith.constant 0 : index
    %385 = vector.load %arg16[%c2_260, %c0_261, %c0_262] : memref<5x1x32xf32, #tpu.memory_space<vmem>>, vector<1x1x32xf32>
    %386 = vector.shape_cast %385 : vector<1x1x32xf32> to vector<1x32xf32>
    %c2_263 = arith.constant 2 : index
    %c0_264 = arith.constant 0 : index
    %c0_265 = arith.constant 0 : index
    %387 = vector.load %arg17[%c2_263, %c0_264, %c0_265] : memref<5x1x32xf32, #tpu.memory_space<vmem>>, vector<1x1x32xf32>
    %388 = vector.shape_cast %387 : vector<1x1x32xf32> to vector<1x32xf32>
    %cst_266 = arith.constant dense<0.000000e+00> : vector<16xf32>
    %389 = vector.multi_reduction <add>, %384, %cst_266 [1] : vector<16x32xf32> to vector<16xf32>
    %390 = vector.shape_cast %389 : vector<16xf32> to vector<16x1xf32>
    %cst_267 = arith.constant 3.200000e+01 : f32
    %391 = vector.broadcast %cst_267 : f32 to vector<16x1xf32>
    %392 = arith.divf %390, %391 : vector<16x1xf32>
    %393 = vector.broadcast %392 : vector<16x1xf32> to vector<16x32xf32>
    %394 = arith.subf %384, %393 : vector<16x32xf32>
    %395 = arith.mulf %394, %394 : vector<16x32xf32>
    %cst_268 = arith.constant dense<0.000000e+00> : vector<16xf32>
    %396 = vector.multi_reduction <add>, %395, %cst_268 [1] : vector<16x32xf32> to vector<16xf32>
    %397 = vector.shape_cast %396 : vector<16xf32> to vector<16x1xf32>
    %cst_269 = arith.constant 0.0322580636 : f32
    %398 = vector.broadcast %cst_269 : f32 to vector<16x1xf32>
    %399 = arith.mulf %397, %398 : vector<16x1xf32>
    %400 = math.sqrt %399 : vector<16x1xf32>
    %cst_270 = arith.constant 9.99999997E-7 : f32
    %401 = vector.broadcast %cst_270 : f32 to vector<16x1xf32>
    %402 = arith.addf %400, %401 : vector<16x1xf32>
    %403 = tpu.reciprocal %402 : vector<16x1xf32> -> vector<16x1xf32>
    %404 = vector.broadcast %403 : vector<16x1xf32> to vector<16x32xf32>
    %405 = arith.mulf %394, %404 : vector<16x32xf32>
    %406 = vector.broadcast %386 : vector<1x32xf32> to vector<16x32xf32>
    %407 = arith.mulf %406, %405 : vector<16x32xf32>
    %408 = vector.broadcast %388 : vector<1x32xf32> to vector<16x32xf32>
    %409 = arith.addf %407, %408 : vector<16x32xf32>
    %c2_271 = arith.constant 2 : index
    %c0_272 = arith.constant 0 : index
    %c0_273 = arith.constant 0 : index
    %410 = vector.load %arg12[%c2_271, %c0_272, %c0_273] : memref<5x32x128xf32, #tpu.memory_space<vmem>>, vector<1x32x128xf32>
    %411 = vector.shape_cast %410 : vector<1x32x128xf32> to vector<32x128xf32>
    %cst_274 = arith.constant dense<0.000000e+00> : vector<16x128xf32>
    %412 = tpu.matmul %409, %411, %cst_274 {dimension_numbers = #tpu.dot_dimension_numbers<[1], [0], [0], [1], [0, 0, 1, 1], [], []>} : vector<16x32xf32>, vector<32x128xf32>, vector<16x128xf32> -> vector<16x128xf32>
    %c2_275 = arith.constant 2 : index
    %c0_276 = arith.constant 0 : index
    %c0_277 = arith.constant 0 : index
    %413 = vector.load %arg13[%c2_275, %c0_276, %c0_277] : memref<5x1x128xf32, #tpu.memory_space<vmem>>, vector<1x1x128xf32>
    %414 = vector.shape_cast %413 : vector<1x1x128xf32> to vector<1x128xf32>
    %415 = vector.broadcast %414 : vector<1x128xf32> to vector<16x128xf32>
    %416 = arith.addf %412, %415 : vector<16x128xf32>
    %417 = arith.mulf %416, %416 : vector<16x128xf32>
    %418 = arith.mulf %416, %417 : vector<16x128xf32>
    %cst_278 = arith.constant 4.471500e-02 : f32
    %419 = vector.broadcast %cst_278 : f32 to vector<16x128xf32>
    %420 = arith.mulf %419, %418 : vector<16x128xf32>
    %421 = arith.addf %416, %420 : vector<16x128xf32>
    %cst_279 = arith.constant 0.797884583 : f32
    %422 = vector.broadcast %cst_279 : f32 to vector<16x128xf32>
    %423 = arith.mulf %422, %421 : vector<16x128xf32>
    %424 = math.tanh %423 : vector<16x128xf32>
    %cst_280 = arith.constant 1.000000e+00 : f32
    %425 = vector.broadcast %cst_280 : f32 to vector<16x128xf32>
    %426 = arith.addf %425, %424 : vector<16x128xf32>
    %cst_281 = arith.constant 5.000000e-01 : f32
    %427 = vector.broadcast %cst_281 : f32 to vector<16x128xf32>
    %428 = arith.mulf %427, %426 : vector<16x128xf32>
    %429 = arith.mulf %416, %428 : vector<16x128xf32>
    %c2_282 = arith.constant 2 : index
    %c0_283 = arith.constant 0 : index
    %c0_284 = arith.constant 0 : index
    %430 = vector.load %arg14[%c2_282, %c0_283, %c0_284] : memref<5x128x32xf32, #tpu.memory_space<vmem>>, vector<1x128x32xf32>
    %431 = vector.shape_cast %430 : vector<1x128x32xf32> to vector<128x32xf32>
    %cst_285 = arith.constant dense<0.000000e+00> : vector<16x32xf32>
    %432 = tpu.matmul %429, %431, %cst_285 {dimension_numbers = #tpu.dot_dimension_numbers<[1], [0], [0], [1], [0, 0, 1, 1], [], []>} : vector<16x128xf32>, vector<128x32xf32>, vector<16x32xf32> -> vector<16x32xf32>
    %433 = arith.addf %384, %432 : vector<16x32xf32>
    %c2_286 = arith.constant 2 : index
    %c0_287 = arith.constant 0 : index
    %c0_288 = arith.constant 0 : index
    %434 = vector.load %arg15[%c2_286, %c0_287, %c0_288] : memref<5x1x32xf32, #tpu.memory_space<vmem>>, vector<1x1x32xf32>
    %435 = vector.shape_cast %434 : vector<1x1x32xf32> to vector<1x32xf32>
    %436 = vector.broadcast %435 : vector<1x32xf32> to vector<16x32xf32>
    %437 = arith.addf %433, %436 : vector<16x32xf32>
    %c3 = arith.constant 3 : index
    %c0_289 = arith.constant 0 : index
    %c0_290 = arith.constant 0 : index
    %438 = vector.load %arg10[%c3, %c0_289, %c0_290] : memref<5x1x32xf32, #tpu.memory_space<vmem>>, vector<1x1x32xf32>
    %439 = vector.shape_cast %438 : vector<1x1x32xf32> to vector<1x32xf32>
    %c3_291 = arith.constant 3 : index
    %c0_292 = arith.constant 0 : index
    %c0_293 = arith.constant 0 : index
    %440 = vector.load %arg11[%c3_291, %c0_292, %c0_293] : memref<5x1x32xf32, #tpu.memory_space<vmem>>, vector<1x1x32xf32>
    %441 = vector.shape_cast %440 : vector<1x1x32xf32> to vector<1x32xf32>
    %cst_294 = arith.constant dense<0.000000e+00> : vector<16xf32>
    %442 = vector.multi_reduction <add>, %437, %cst_294 [1] : vector<16x32xf32> to vector<16xf32>
    %443 = vector.shape_cast %442 : vector<16xf32> to vector<16x1xf32>
    %cst_295 = arith.constant 3.200000e+01 : f32
    %444 = vector.broadcast %cst_295 : f32 to vector<16x1xf32>
    %445 = arith.divf %443, %444 : vector<16x1xf32>
    %446 = vector.broadcast %445 : vector<16x1xf32> to vector<16x32xf32>
    %447 = arith.subf %437, %446 : vector<16x32xf32>
    %448 = arith.mulf %447, %447 : vector<16x32xf32>
    %cst_296 = arith.constant dense<0.000000e+00> : vector<16xf32>
    %449 = vector.multi_reduction <add>, %448, %cst_296 [1] : vector<16x32xf32> to vector<16xf32>
    %450 = vector.shape_cast %449 : vector<16xf32> to vector<16x1xf32>
    %cst_297 = arith.constant 0.0322580636 : f32
    %451 = vector.broadcast %cst_297 : f32 to vector<16x1xf32>
    %452 = arith.mulf %450, %451 : vector<16x1xf32>
    %453 = math.sqrt %452 : vector<16x1xf32>
    %cst_298 = arith.constant 9.99999997E-7 : f32
    %454 = vector.broadcast %cst_298 : f32 to vector<16x1xf32>
    %455 = arith.addf %453, %454 : vector<16x1xf32>
    %456 = tpu.reciprocal %455 : vector<16x1xf32> -> vector<16x1xf32>
    %457 = vector.broadcast %456 : vector<16x1xf32> to vector<16x32xf32>
    %458 = arith.mulf %447, %457 : vector<16x32xf32>
    %459 = vector.broadcast %439 : vector<1x32xf32> to vector<16x32xf32>
    %460 = arith.mulf %459, %458 : vector<16x32xf32>
    %461 = vector.broadcast %441 : vector<1x32xf32> to vector<16x32xf32>
    %462 = arith.addf %460, %461 : vector<16x32xf32>
    %c3_299 = arith.constant 3 : index
    %c0_300 = arith.constant 0 : index
    %c0_301 = arith.constant 0 : index
    %463 = vector.load %arg6[%c3_299, %c0_300, %c0_301] : memref<5x32x96xf32, #tpu.memory_space<vmem>>, vector<1x32x96xf32>
    %464 = vector.shape_cast %463 : vector<1x32x96xf32> to vector<32x96xf32>
    %cst_302 = arith.constant dense<0.000000e+00> : vector<16x96xf32>
    %465 = tpu.matmul %462, %464, %cst_302 {dimension_numbers = #tpu.dot_dimension_numbers<[1], [0], [0], [1], [0, 0, 1, 1], [], []>} : vector<16x32xf32>, vector<32x96xf32>, vector<16x96xf32> -> vector<16x96xf32>
    %c3_303 = arith.constant 3 : index
    %c0_304 = arith.constant 0 : index
    %c0_305 = arith.constant 0 : index
    %466 = vector.load %arg7[%c3_303, %c0_304, %c0_305] : memref<5x1x96xf32, #tpu.memory_space<vmem>>, vector<1x1x96xf32>
    %467 = vector.shape_cast %466 : vector<1x1x96xf32> to vector<1x96xf32>
    %468 = vector.broadcast %467 : vector<1x96xf32> to vector<16x96xf32>
    %469 = arith.addf %465, %468 : vector<16x96xf32>
    %470 = vector.extract_strided_slice %469 {offsets = [0, 0], sizes = [16, 32], strides = [1, 1]} : vector<16x96xf32> to vector<16x32xf32>
    %471 = vector.extract_strided_slice %469 {offsets = [0, 32], sizes = [16, 32], strides = [1, 1]} : vector<16x96xf32> to vector<16x32xf32>
    %472 = vector.extract_strided_slice %469 {offsets = [0, 64], sizes = [16, 32], strides = [1, 1]} : vector<16x96xf32> to vector<16x32xf32>
    %473 = vector.extract_strided_slice %471 {offsets = [0, 0], sizes = [16, 4], strides = [1, 1]} : vector<16x32xf32> to vector<16x4xf32>
    %c0_306 = arith.constant 0 : index
    %c0_307 = arith.constant 0 : index
    %474 = vector.load %arg21[%c0_306, %c0_307] : memref<128x32xf32, #tpu.memory_space<vmem>>, vector<16x4xf32>
    tpu.vector_store %arg21[%c0_306, %c0_307], %473 {strides = array<i32>} : memref<128x32xf32, #tpu.memory_space<vmem>>, vector<16x4xf32>,
    %475 = vector.extract_strided_slice %471 {offsets = [0, 4], sizes = [16, 4], strides = [1, 1]} : vector<16x32xf32> to vector<16x4xf32>
    %c16_308 = arith.constant 16 : index
    %c4_309 = arith.constant 4 : index
    %476 = vector.load %arg21[%c16_308, %c4_309] : memref<128x32xf32, #tpu.memory_space<vmem>>, vector<16x4xf32>
    tpu.vector_store %arg21[%c16_308, %c4_309], %475 {strides = array<i32>} : memref<128x32xf32, #tpu.memory_space<vmem>>, vector<16x4xf32>,
    %477 = vector.extract_strided_slice %471 {offsets = [0, 8], sizes = [16, 4], strides = [1, 1]} : vector<16x32xf32> to vector<16x4xf32>
    %c32_310 = arith.constant 32 : index
    %c8_311 = arith.constant 8 : index
    %478 = vector.load %arg21[%c32_310, %c8_311] : memref<128x32xf32, #tpu.memory_space<vmem>>, vector<16x4xf32>
    tpu.vector_store %arg21[%c32_310, %c8_311], %477 {strides = array<i32>} : memref<128x32xf32, #tpu.memory_space<vmem>>, vector<16x4xf32>,
    %479 = vector.extract_strided_slice %471 {offsets = [0, 12], sizes = [16, 4], strides = [1, 1]} : vector<16x32xf32> to vector<16x4xf32>
    %c48_312 = arith.constant 48 : index
    %c12_313 = arith.constant 12 : index
    %480 = vector.load %arg21[%c48_312, %c12_313] : memref<128x32xf32, #tpu.memory_space<vmem>>, vector<16x4xf32>
    tpu.vector_store %arg21[%c48_312, %c12_313], %479 {strides = array<i32>} : memref<128x32xf32, #tpu.memory_space<vmem>>, vector<16x4xf32>,
    %481 = vector.extract_strided_slice %471 {offsets = [0, 16], sizes = [16, 4], strides = [1, 1]} : vector<16x32xf32> to vector<16x4xf32>
    %c64_314 = arith.constant 64 : index
    %c16_315 = arith.constant 16 : index
    %482 = vector.load %arg21[%c64_314, %c16_315] : memref<128x32xf32, #tpu.memory_space<vmem>>, vector<16x4xf32>
    tpu.vector_store %arg21[%c64_314, %c16_315], %481 {strides = array<i32>} : memref<128x32xf32, #tpu.memory_space<vmem>>, vector<16x4xf32>,
    %483 = vector.extract_strided_slice %471 {offsets = [0, 20], sizes = [16, 4], strides = [1, 1]} : vector<16x32xf32> to vector<16x4xf32>
    %c80_316 = arith.constant 80 : index
    %c20_317 = arith.constant 20 : index
    %484 = vector.load %arg21[%c80_316, %c20_317] : memref<128x32xf32, #tpu.memory_space<vmem>>, vector<16x4xf32>
    tpu.vector_store %arg21[%c80_316, %c20_317], %483 {strides = array<i32>} : memref<128x32xf32, #tpu.memory_space<vmem>>, vector<16x4xf32>,
    %485 = vector.extract_strided_slice %471 {offsets = [0, 24], sizes = [16, 4], strides = [1, 1]} : vector<16x32xf32> to vector<16x4xf32>
    %c96_318 = arith.constant 96 : index
    %c24_319 = arith.constant 24 : index
    %486 = vector.load %arg21[%c96_318, %c24_319] : memref<128x32xf32, #tpu.memory_space<vmem>>, vector<16x4xf32>
    tpu.vector_store %arg21[%c96_318, %c24_319], %485 {strides = array<i32>} : memref<128x32xf32, #tpu.memory_space<vmem>>, vector<16x4xf32>,
    %487 = vector.extract_strided_slice %471 {offsets = [0, 28], sizes = [16, 4], strides = [1, 1]} : vector<16x32xf32> to vector<16x4xf32>
    %c112_320 = arith.constant 112 : index
    %c28_321 = arith.constant 28 : index
    %488 = vector.load %arg21[%c112_320, %c28_321] : memref<128x32xf32, #tpu.memory_space<vmem>>, vector<16x4xf32>
    tpu.vector_store %arg21[%c112_320, %c28_321], %487 {strides = array<i32>} : memref<128x32xf32, #tpu.memory_space<vmem>>, vector<16x4xf32>,
    %c0_322 = arith.constant 0 : index
    %c0_323 = arith.constant 0 : index
    %489 = vector.load %arg21[%c0_322, %c0_323] : memref<128x32xf32, #tpu.memory_space<vmem>>, vector<128x32xf32>
    "tpu.trace_start"() <{level = 10 : i32, message = "qd,rd->qr"}> : () -> ()
    %cst_324 = arith.constant dense<0.000000e+00> : vector<16x128xf32>
    %490 = tpu.matmul %470, %489, %cst_324 {dimension_numbers = #tpu.dot_dimension_numbers<[1], [1], [0], [0], [0, 0, 1, 0], [], []>} : vector<16x32xf32>, vector<128x32xf32>, vector<16x128xf32> -> vector<16x128xf32>
    "tpu.trace_stop"() : () -> ()
    %c0_325 = arith.constant 0 : index
    %c0_326 = arith.constant 0 : index
    %c0_327 = arith.constant 0 : index
    %491 = vector.load %arg2[%c0_325, %c0_326, %c0_327] : memref<1x16x128xf32, #tpu.memory_space<vmem>>, vector<1x16x128xf32>
    %492 = vector.shape_cast %491 : vector<1x16x128xf32> to vector<16x128xf32>
    %493 = arith.addf %490, %492 : vector<16x128xf32>
    %cst_328 = arith.constant dense<0xFF800000> : vector<16xf32>
    %494 = vector.multi_reduction <maximumf>, %493, %cst_328 [1] : vector<16x128xf32> to vector<16xf32>
    %495 = vector.shape_cast %494 : vector<16xf32> to vector<16x1xf32>
    %496 = vector.broadcast %495 : vector<16x1xf32> to vector<16x128xf32>
    %497 = arith.subf %493, %496 : vector<16x128xf32>
    %498 = math.exp %497 : vector<16x128xf32>
    %c0_329 = arith.constant 0 : index
    %c0_330 = arith.constant 0 : index
    %499 = vector.load %arg5[%c0_329, %c0_330] : memref<128x128xf32, #tpu.memory_space<vmem>>, vector<128x128xf32>
    %cst_331 = arith.constant dense<0.000000e+00> : vector<16x128xf32>
    %500 = tpu.matmul %498, %499, %cst_331 {dimension_numbers = #tpu.dot_dimension_numbers<[1], [0], [0], [1], [0, 0, 1, 1], [], []>} : vector<16x128xf32>, vector<128x128xf32>, vector<16x128xf32> -> vector<16x128xf32>
    %501 = tpu.reciprocal %500 : vector<16x128xf32> -> vector<16x128xf32>
    %502 = arith.mulf %498, %501 : vector<16x128xf32>
    %503 = vector.extract_strided_slice %472 {offsets = [0, 0], sizes = [16, 4], strides = [1, 1]} : vector<16x32xf32> to vector<16x4xf32>
    %c0_332 = arith.constant 0 : index
    %c0_333 = arith.constant 0 : index
    %504 = vector.load %arg22[%c0_332, %c0_333] : memref<128x32xf32, #tpu.memory_space<vmem>>, vector<16x4xf32>
    tpu.vector_store %arg22[%c0_332, %c0_333], %503 {strides = array<i32>} : memref<128x32xf32, #tpu.memory_space<vmem>>, vector<16x4xf32>,
    %505 = vector.extract_strided_slice %472 {offsets = [0, 4], sizes = [16, 4], strides = [1, 1]} : vector<16x32xf32> to vector<16x4xf32>
    %c16_334 = arith.constant 16 : index
    %c4_335 = arith.constant 4 : index
    %506 = vector.load %arg22[%c16_334, %c4_335] : memref<128x32xf32, #tpu.memory_space<vmem>>, vector<16x4xf32>
    tpu.vector_store %arg22[%c16_334, %c4_335], %505 {strides = array<i32>} : memref<128x32xf32, #tpu.memory_space<vmem>>, vector<16x4xf32>,
    %507 = vector.extract_strided_slice %472 {offsets = [0, 8], sizes = [16, 4], strides = [1, 1]} : vector<16x32xf32> to vector<16x4xf32>
    %c32_336 = arith.constant 32 : index
    %c8_337 = arith.constant 8 : index
    %508 = vector.load %arg22[%c32_336, %c8_337] : memref<128x32xf32, #tpu.memory_space<vmem>>, vector<16x4xf32>
    tpu.vector_store %arg22[%c32_336, %c8_337], %507 {strides = array<i32>} : memref<128x32xf32, #tpu.memory_space<vmem>>, vector<16x4xf32>,
    %509 = vector.extract_strided_slice %472 {offsets = [0, 12], sizes = [16, 4], strides = [1, 1]} : vector<16x32xf32> to vector<16x4xf32>
    %c48_338 = arith.constant 48 : index
    %c12_339 = arith.constant 12 : index
    %510 = vector.load %arg22[%c48_338, %c12_339] : memref<128x32xf32, #tpu.memory_space<vmem>>, vector<16x4xf32>
    tpu.vector_store %arg22[%c48_338, %c12_339], %509 {strides = array<i32>} : memref<128x32xf32, #tpu.memory_space<vmem>>, vector<16x4xf32>,
    %511 = vector.extract_strided_slice %472 {offsets = [0, 16], sizes = [16, 4], strides = [1, 1]} : vector<16x32xf32> to vector<16x4xf32>
    %c64_340 = arith.constant 64 : index
    %c16_341 = arith.constant 16 : index
    %512 = vector.load %arg22[%c64_340, %c16_341] : memref<128x32xf32, #tpu.memory_space<vmem>>, vector<16x4xf32>
    tpu.vector_store %arg22[%c64_340, %c16_341], %511 {strides = array<i32>} : memref<128x32xf32, #tpu.memory_space<vmem>>, vector<16x4xf32>,
    %513 = vector.extract_strided_slice %472 {offsets = [0, 20], sizes = [16, 4], strides = [1, 1]} : vector<16x32xf32> to vector<16x4xf32>
    %c80_342 = arith.constant 80 : index
    %c20_343 = arith.constant 20 : index
    %514 = vector.load %arg22[%c80_342, %c20_343] : memref<128x32xf32, #tpu.memory_space<vmem>>, vector<16x4xf32>
    tpu.vector_store %arg22[%c80_342, %c20_343], %513 {strides = array<i32>} : memref<128x32xf32, #tpu.memory_space<vmem>>, vector<16x4xf32>,
    %515 = vector.extract_strided_slice %472 {offsets = [0, 24], sizes = [16, 4], strides = [1, 1]} : vector<16x32xf32> to vector<16x4xf32>
    %c96_344 = arith.constant 96 : index
    %c24_345 = arith.constant 24 : index
    %516 = vector.load %arg22[%c96_344, %c24_345] : memref<128x32xf32, #tpu.memory_space<vmem>>, vector<16x4xf32>
    tpu.vector_store %arg22[%c96_344, %c24_345], %515 {strides = array<i32>} : memref<128x32xf32, #tpu.memory_space<vmem>>, vector<16x4xf32>,
    %517 = vector.extract_strided_slice %472 {offsets = [0, 28], sizes = [16, 4], strides = [1, 1]} : vector<16x32xf32> to vector<16x4xf32>
    %c112_346 = arith.constant 112 : index
    %c28_347 = arith.constant 28 : index
    %518 = vector.load %arg22[%c112_346, %c28_347] : memref<128x32xf32, #tpu.memory_space<vmem>>, vector<16x4xf32>
    tpu.vector_store %arg22[%c112_346, %c28_347], %517 {strides = array<i32>} : memref<128x32xf32, #tpu.memory_space<vmem>>, vector<16x4xf32>,
    %c0_348 = arith.constant 0 : index
    %c0_349 = arith.constant 0 : index
    %519 = vector.load %arg22[%c0_348, %c0_349] : memref<128x32xf32, #tpu.memory_space<vmem>>, vector<128x32xf32>
    %cst_350 = arith.constant dense<0.000000e+00> : vector<16x32xf32>
    %520 = tpu.matmul %502, %519, %cst_350 {dimension_numbers = #tpu.dot_dimension_numbers<[1], [0], [0], [1], [0, 0, 1, 1], [], []>} : vector<16x128xf32>, vector<128x32xf32>, vector<16x32xf32> -> vector<16x32xf32>
    %c3_351 = arith.constant 3 : index
    %c0_352 = arith.constant 0 : index
    %c0_353 = arith.constant 0 : index
    %521 = vector.load %arg8[%c3_351, %c0_352, %c0_353] : memref<5x32x32xf32, #tpu.memory_space<vmem>>, vector<1x32x32xf32>
    %522 = vector.shape_cast %521 : vector<1x32x32xf32> to vector<32x32xf32>
    %cst_354 = arith.constant dense<0.000000e+00> : vector<16x32xf32>
    %523 = tpu.matmul %520, %522, %cst_354 {dimension_numbers = #tpu.dot_dimension_numbers<[1], [0], [0], [1], [0, 0, 1, 1], [], []>} : vector<16x32xf32>, vector<32x32xf32>, vector<16x32xf32> -> vector<16x32xf32>
    %c3_355 = arith.constant 3 : index
    %c0_356 = arith.constant 0 : index
    %c0_357 = arith.constant 0 : index
    %524 = vector.load %arg9[%c3_355, %c0_356, %c0_357] : memref<5x1x32xf32, #tpu.memory_space<vmem>>, vector<1x1x32xf32>
    %525 = vector.shape_cast %524 : vector<1x1x32xf32> to vector<1x32xf32>
    %526 = vector.broadcast %525 : vector<1x32xf32> to vector<16x32xf32>
    %527 = arith.addf %523, %526 : vector<16x32xf32>
    %528 = arith.addf %437, %527 : vector<16x32xf32>
    %c3_358 = arith.constant 3 : index
    %c0_359 = arith.constant 0 : index
    %c0_360 = arith.constant 0 : index
    %529 = vector.load %arg16[%c3_358, %c0_359, %c0_360] : memref<5x1x32xf32, #tpu.memory_space<vmem>>, vector<1x1x32xf32>
    %530 = vector.shape_cast %529 : vector<1x1x32xf32> to vector<1x32xf32>
    %c3_361 = arith.constant 3 : index
    %c0_362 = arith.constant 0 : index
    %c0_363 = arith.constant 0 : index
    %531 = vector.load %arg17[%c3_361, %c0_362, %c0_363] : memref<5x1x32xf32, #tpu.memory_space<vmem>>, vector<1x1x32xf32>
    %532 = vector.shape_cast %531 : vector<1x1x32xf32> to vector<1x32xf32>
    %cst_364 = arith.constant dense<0.000000e+00> : vector<16xf32>
    %533 = vector.multi_reduction <add>, %528, %cst_364 [1] : vector<16x32xf32> to vector<16xf32>
    %534 = vector.shape_cast %533 : vector<16xf32> to vector<16x1xf32>
    %cst_365 = arith.constant 3.200000e+01 : f32
    %535 = vector.broadcast %cst_365 : f32 to vector<16x1xf32>
    %536 = arith.divf %534, %535 : vector<16x1xf32>
    %537 = vector.broadcast %536 : vector<16x1xf32> to vector<16x32xf32>
    %538 = arith.subf %528, %537 : vector<16x32xf32>
    %539 = arith.mulf %538, %538 : vector<16x32xf32>
    %cst_366 = arith.constant dense<0.000000e+00> : vector<16xf32>
    %540 = vector.multi_reduction <add>, %539, %cst_366 [1] : vector<16x32xf32> to vector<16xf32>
    %541 = vector.shape_cast %540 : vector<16xf32> to vector<16x1xf32>
    %cst_367 = arith.constant 0.0322580636 : f32
    %542 = vector.broadcast %cst_367 : f32 to vector<16x1xf32>
    %543 = arith.mulf %541, %542 : vector<16x1xf32>
    %544 = math.sqrt %543 : vector<16x1xf32>
    %cst_368 = arith.constant 9.99999997E-7 : f32
    %545 = vector.broadcast %cst_368 : f32 to vector<16x1xf32>
    %546 = arith.addf %544, %545 : vector<16x1xf32>
    %547 = tpu.reciprocal %546 : vector<16x1xf32> -> vector<16x1xf32>
    %548 = vector.broadcast %547 : vector<16x1xf32> to vector<16x32xf32>
    %549 = arith.mulf %538, %548 : vector<16x32xf32>
    %550 = vector.broadcast %530 : vector<1x32xf32> to vector<16x32xf32>
    %551 = arith.mulf %550, %549 : vector<16x32xf32>
    %552 = vector.broadcast %532 : vector<1x32xf32> to vector<16x32xf32>
    %553 = arith.addf %551, %552 : vector<16x32xf32>
    %c3_369 = arith.constant 3 : index
    %c0_370 = arith.constant 0 : index
    %c0_371 = arith.constant 0 : index
    %554 = vector.load %arg12[%c3_369, %c0_370, %c0_371] : memref<5x32x128xf32, #tpu.memory_space<vmem>>, vector<1x32x128xf32>
    %555 = vector.shape_cast %554 : vector<1x32x128xf32> to vector<32x128xf32>
    %cst_372 = arith.constant dense<0.000000e+00> : vector<16x128xf32>
    %556 = tpu.matmul %553, %555, %cst_372 {dimension_numbers = #tpu.dot_dimension_numbers<[1], [0], [0], [1], [0, 0, 1, 1], [], []>} : vector<16x32xf32>, vector<32x128xf32>, vector<16x128xf32> -> vector<16x128xf32>
    %c3_373 = arith.constant 3 : index
    %c0_374 = arith.constant 0 : index
    %c0_375 = arith.constant 0 : index
    %557 = vector.load %arg13[%c3_373, %c0_374, %c0_375] : memref<5x1x128xf32, #tpu.memory_space<vmem>>, vector<1x1x128xf32>
    %558 = vector.shape_cast %557 : vector<1x1x128xf32> to vector<1x128xf32>
    %559 = vector.broadcast %558 : vector<1x128xf32> to vector<16x128xf32>
    %560 = arith.addf %556, %559 : vector<16x128xf32>
    %561 = arith.mulf %560, %560 : vector<16x128xf32>
    %562 = arith.mulf %560, %561 : vector<16x128xf32>
    %cst_376 = arith.constant 4.471500e-02 : f32
    %563 = vector.broadcast %cst_376 : f32 to vector<16x128xf32>
    %564 = arith.mulf %563, %562 : vector<16x128xf32>
    %565 = arith.addf %560, %564 : vector<16x128xf32>
    %cst_377 = arith.constant 0.797884583 : f32
    %566 = vector.broadcast %cst_377 : f32 to vector<16x128xf32>
    %567 = arith.mulf %566, %565 : vector<16x128xf32>
    %568 = math.tanh %567 : vector<16x128xf32>
    %cst_378 = arith.constant 1.000000e+00 : f32
    %569 = vector.broadcast %cst_378 : f32 to vector<16x128xf32>
    %570 = arith.addf %569, %568 : vector<16x128xf32>
    %cst_379 = arith.constant 5.000000e-01 : f32
    %571 = vector.broadcast %cst_379 : f32 to vector<16x128xf32>
    %572 = arith.mulf %571, %570 : vector<16x128xf32>
    %573 = arith.mulf %560, %572 : vector<16x128xf32>
    %c3_380 = arith.constant 3 : index
    %c0_381 = arith.constant 0 : index
    %c0_382 = arith.constant 0 : index
    %574 = vector.load %arg14[%c3_380, %c0_381, %c0_382] : memref<5x128x32xf32, #tpu.memory_space<vmem>>, vector<1x128x32xf32>
    %575 = vector.shape_cast %574 : vector<1x128x32xf32> to vector<128x32xf32>
    %cst_383 = arith.constant dense<0.000000e+00> : vector<16x32xf32>
    %576 = tpu.matmul %573, %575, %cst_383 {dimension_numbers = #tpu.dot_dimension_numbers<[1], [0], [0], [1], [0, 0, 1, 1], [], []>} : vector<16x128xf32>, vector<128x32xf32>, vector<16x32xf32> -> vector<16x32xf32>
    %577 = arith.addf %528, %576 : vector<16x32xf32>
    %c3_384 = arith.constant 3 : index
    %c0_385 = arith.constant 0 : index
    %c0_386 = arith.constant 0 : index
    %578 = vector.load %arg15[%c3_384, %c0_385, %c0_386] : memref<5x1x32xf32, #tpu.memory_space<vmem>>, vector<1x1x32xf32>
    %579 = vector.shape_cast %578 : vector<1x1x32xf32> to vector<1x32xf32>
    %580 = vector.broadcast %579 : vector<1x32xf32> to vector<16x32xf32>
    %581 = arith.addf %577, %580 : vector<16x32xf32>
    %c4_387 = arith.constant 4 : index
    %c0_388 = arith.constant 0 : index
    %c0_389 = arith.constant 0 : index
    %582 = vector.load %arg10[%c4_387, %c0_388, %c0_389] : memref<5x1x32xf32, #tpu.memory_space<vmem>>, vector<1x1x32xf32>
    %583 = vector.shape_cast %582 : vector<1x1x32xf32> to vector<1x32xf32>
    %c4_390 = arith.constant 4 : index
    %c0_391 = arith.constant 0 : index
    %c0_392 = arith.constant 0 : index
    %584 = vector.load %arg11[%c4_390, %c0_391, %c0_392] : memref<5x1x32xf32, #tpu.memory_space<vmem>>, vector<1x1x32xf32>
    %585 = vector.shape_cast %584 : vector<1x1x32xf32> to vector<1x32xf32>
    %cst_393 = arith.constant dense<0.000000e+00> : vector<16xf32>
    %586 = vector.multi_reduction <add>, %581, %cst_393 [1] : vector<16x32xf32> to vector<16xf32>
    %587 = vector.shape_cast %586 : vector<16xf32> to vector<16x1xf32>
    %cst_394 = arith.constant 3.200000e+01 : f32
    %588 = vector.broadcast %cst_394 : f32 to vector<16x1xf32>
    %589 = arith.divf %587, %588 : vector<16x1xf32>
    %590 = vector.broadcast %589 : vector<16x1xf32> to vector<16x32xf32>
    %591 = arith.subf %581, %590 : vector<16x32xf32>
    %592 = arith.mulf %591, %591 : vector<16x32xf32>
    %cst_395 = arith.constant dense<0.000000e+00> : vector<16xf32>
    %593 = vector.multi_reduction <add>, %592, %cst_395 [1] : vector<16x32xf32> to vector<16xf32>
    %594 = vector.shape_cast %593 : vector<16xf32> to vector<16x1xf32>
    %cst_396 = arith.constant 0.0322580636 : f32
    %595 = vector.broadcast %cst_396 : f32 to vector<16x1xf32>
    %596 = arith.mulf %594, %595 : vector<16x1xf32>
    %597 = math.sqrt %596 : vector<16x1xf32>
    %cst_397 = arith.constant 9.99999997E-7 : f32
    %598 = vector.broadcast %cst_397 : f32 to vector<16x1xf32>
    %599 = arith.addf %597, %598 : vector<16x1xf32>
    %600 = tpu.reciprocal %599 : vector<16x1xf32> -> vector<16x1xf32>
    %601 = vector.broadcast %600 : vector<16x1xf32> to vector<16x32xf32>
    %602 = arith.mulf %591, %601 : vector<16x32xf32>
    %603 = vector.broadcast %583 : vector<1x32xf32> to vector<16x32xf32>
    %604 = arith.mulf %603, %602 : vector<16x32xf32>
    %605 = vector.broadcast %585 : vector<1x32xf32> to vector<16x32xf32>
    %606 = arith.addf %604, %605 : vector<16x32xf32>
    %c4_398 = arith.constant 4 : index
    %c0_399 = arith.constant 0 : index
    %c0_400 = arith.constant 0 : index
    %607 = vector.load %arg6[%c4_398, %c0_399, %c0_400] : memref<5x32x96xf32, #tpu.memory_space<vmem>>, vector<1x32x96xf32>
    %608 = vector.shape_cast %607 : vector<1x32x96xf32> to vector<32x96xf32>
    %cst_401 = arith.constant dense<0.000000e+00> : vector<16x96xf32>
    %609 = tpu.matmul %606, %608, %cst_401 {dimension_numbers = #tpu.dot_dimension_numbers<[1], [0], [0], [1], [0, 0, 1, 1], [], []>} : vector<16x32xf32>, vector<32x96xf32>, vector<16x96xf32> -> vector<16x96xf32>
    %c4_402 = arith.constant 4 : index
    %c0_403 = arith.constant 0 : index
    %c0_404 = arith.constant 0 : index
    %610 = vector.load %arg7[%c4_402, %c0_403, %c0_404] : memref<5x1x96xf32, #tpu.memory_space<vmem>>, vector<1x1x96xf32>
    %611 = vector.shape_cast %610 : vector<1x1x96xf32> to vector<1x96xf32>
    %612 = vector.broadcast %611 : vector<1x96xf32> to vector<16x96xf32>
    %613 = arith.addf %609, %612 : vector<16x96xf32>
    %614 = vector.extract_strided_slice %613 {offsets = [0, 0], sizes = [16, 32], strides = [1, 1]} : vector<16x96xf32> to vector<16x32xf32>
    %615 = vector.extract_strided_slice %613 {offsets = [0, 32], sizes = [16, 32], strides = [1, 1]} : vector<16x96xf32> to vector<16x32xf32>
    %616 = vector.extract_strided_slice %613 {offsets = [0, 64], sizes = [16, 32], strides = [1, 1]} : vector<16x96xf32> to vector<16x32xf32>
    %617 = vector.extract_strided_slice %615 {offsets = [0, 0], sizes = [16, 4], strides = [1, 1]} : vector<16x32xf32> to vector<16x4xf32>
    %c0_405 = arith.constant 0 : index
    %c0_406 = arith.constant 0 : index
    %618 = vector.load %arg21[%c0_405, %c0_406] : memref<128x32xf32, #tpu.memory_space<vmem>>, vector<16x4xf32>
    tpu.vector_store %arg21[%c0_405, %c0_406], %617 {strides = array<i32>} : memref<128x32xf32, #tpu.memory_space<vmem>>, vector<16x4xf32>,
    %619 = vector.extract_strided_slice %615 {offsets = [0, 4], sizes = [16, 4], strides = [1, 1]} : vector<16x32xf32> to vector<16x4xf32>
    %c16_407 = arith.constant 16 : index
    %c4_408 = arith.constant 4 : index
    %620 = vector.load %arg21[%c16_407, %c4_408] : memref<128x32xf32, #tpu.memory_space<vmem>>, vector<16x4xf32>
    tpu.vector_store %arg21[%c16_407, %c4_408], %619 {strides = array<i32>} : memref<128x32xf32, #tpu.memory_space<vmem>>, vector<16x4xf32>,
    %621 = vector.extract_strided_slice %615 {offsets = [0, 8], sizes = [16, 4], strides = [1, 1]} : vector<16x32xf32> to vector<16x4xf32>
    %c32_409 = arith.constant 32 : index
    %c8_410 = arith.constant 8 : index
    %622 = vector.load %arg21[%c32_409, %c8_410] : memref<128x32xf32, #tpu.memory_space<vmem>>, vector<16x4xf32>
    tpu.vector_store %arg21[%c32_409, %c8_410], %621 {strides = array<i32>} : memref<128x32xf32, #tpu.memory_space<vmem>>, vector<16x4xf32>,
    %623 = vector.extract_strided_slice %615 {offsets = [0, 12], sizes = [16, 4], strides = [1, 1]} : vector<16x32xf32> to vector<16x4xf32>
    %c48_411 = arith.constant 48 : index
    %c12_412 = arith.constant 12 : index
    %624 = vector.load %arg21[%c48_411, %c12_412] : memref<128x32xf32, #tpu.memory_space<vmem>>, vector<16x4xf32>
    tpu.vector_store %arg21[%c48_411, %c12_412], %623 {strides = array<i32>} : memref<128x32xf32, #tpu.memory_space<vmem>>, vector<16x4xf32>,
    %625 = vector.extract_strided_slice %615 {offsets = [0, 16], sizes = [16, 4], strides = [1, 1]} : vector<16x32xf32> to vector<16x4xf32>
    %c64_413 = arith.constant 64 : index
    %c16_414 = arith.constant 16 : index
    %626 = vector.load %arg21[%c64_413, %c16_414] : memref<128x32xf32, #tpu.memory_space<vmem>>, vector<16x4xf32>
    tpu.vector_store %arg21[%c64_413, %c16_414], %625 {strides = array<i32>} : memref<128x32xf32, #tpu.memory_space<vmem>>, vector<16x4xf32>,
    %627 = vector.extract_strided_slice %615 {offsets = [0, 20], sizes = [16, 4], strides = [1, 1]} : vector<16x32xf32> to vector<16x4xf32>
    %c80_415 = arith.constant 80 : index
    %c20_416 = arith.constant 20 : index
    %628 = vector.load %arg21[%c80_415, %c20_416] : memref<128x32xf32, #tpu.memory_space<vmem>>, vector<16x4xf32>
    tpu.vector_store %arg21[%c80_415, %c20_416], %627 {strides = array<i32>} : memref<128x32xf32, #tpu.memory_space<vmem>>, vector<16x4xf32>,
    %629 = vector.extract_strided_slice %615 {offsets = [0, 24], sizes = [16, 4], strides = [1, 1]} : vector<16x32xf32> to vector<16x4xf32>
    %c96_417 = arith.constant 96 : index
    %c24_418 = arith.constant 24 : index
    %630 = vector.load %arg21[%c96_417, %c24_418] : memref<128x32xf32, #tpu.memory_space<vmem>>, vector<16x4xf32>
    tpu.vector_store %arg21[%c96_417, %c24_418], %629 {strides = array<i32>} : memref<128x32xf32, #tpu.memory_space<vmem>>, vector<16x4xf32>,
    %631 = vector.extract_strided_slice %615 {offsets = [0, 28], sizes = [16, 4], strides = [1, 1]} : vector<16x32xf32> to vector<16x4xf32>
    %c112_419 = arith.constant 112 : index
    %c28_420 = arith.constant 28 : index
    %632 = vector.load %arg21[%c112_419, %c28_420] : memref<128x32xf32, #tpu.memory_space<vmem>>, vector<16x4xf32>
    tpu.vector_store %arg21[%c112_419, %c28_420], %631 {strides = array<i32>} : memref<128x32xf32, #tpu.memory_space<vmem>>, vector<16x4xf32>,
    %c0_421 = arith.constant 0 : index
    %c0_422 = arith.constant 0 : index
    %633 = vector.load %arg21[%c0_421, %c0_422] : memref<128x32xf32, #tpu.memory_space<vmem>>, vector<128x32xf32>
    "tpu.trace_start"() <{level = 10 : i32, message = "qd,rd->qr"}> : () -> ()
    %cst_423 = arith.constant dense<0.000000e+00> : vector<16x128xf32>
    %634 = tpu.matmul %614, %633, %cst_423 {dimension_numbers = #tpu.dot_dimension_numbers<[1], [1], [0], [0], [0, 0, 1, 0], [], []>} : vector<16x32xf32>, vector<128x32xf32>, vector<16x128xf32> -> vector<16x128xf32>
    "tpu.trace_stop"() : () -> ()
    %c0_424 = arith.constant 0 : index
    %c0_425 = arith.constant 0 : index
    %c0_426 = arith.constant 0 : index
    %635 = vector.load %arg2[%c0_424, %c0_425, %c0_426] : memref<1x16x128xf32, #tpu.memory_space<vmem>>, vector<1x16x128xf32>
    %636 = vector.shape_cast %635 : vector<1x16x128xf32> to vector<16x128xf32>
    %637 = arith.addf %634, %636 : vector<16x128xf32>
    %cst_427 = arith.constant dense<0xFF800000> : vector<16xf32>
    %638 = vector.multi_reduction <maximumf>, %637, %cst_427 [1] : vector<16x128xf32> to vector<16xf32>
    %639 = vector.shape_cast %638 : vector<16xf32> to vector<16x1xf32>
    %640 = vector.broadcast %639 : vector<16x1xf32> to vector<16x128xf32>
    %641 = arith.subf %637, %640 : vector<16x128xf32>
    %642 = math.exp %641 : vector<16x128xf32>
    %c0_428 = arith.constant 0 : index
    %c0_429 = arith.constant 0 : index
    %643 = vector.load %arg5[%c0_428, %c0_429] : memref<128x128xf32, #tpu.memory_space<vmem>>, vector<128x128xf32>
    %cst_430 = arith.constant dense<0.000000e+00> : vector<16x128xf32>
    %644 = tpu.matmul %642, %643, %cst_430 {dimension_numbers = #tpu.dot_dimension_numbers<[1], [0], [0], [1], [0, 0, 1, 1], [], []>} : vector<16x128xf32>, vector<128x128xf32>, vector<16x128xf32> -> vector<16x128xf32>
    %645 = tpu.reciprocal %644 : vector<16x128xf32> -> vector<16x128xf32>
    %646 = arith.mulf %642, %645 : vector<16x128xf32>
    %647 = vector.extract_strided_slice %616 {offsets = [0, 0], sizes = [16, 4], strides = [1, 1]} : vector<16x32xf32> to vector<16x4xf32>
    %c0_431 = arith.constant 0 : index
    %c0_432 = arith.constant 0 : index
    %648 = vector.load %arg22[%c0_431, %c0_432] : memref<128x32xf32, #tpu.memory_space<vmem>>, vector<16x4xf32>
    tpu.vector_store %arg22[%c0_431, %c0_432], %647 {strides = array<i32>} : memref<128x32xf32, #tpu.memory_space<vmem>>, vector<16x4xf32>,
    %649 = vector.extract_strided_slice %616 {offsets = [0, 4], sizes = [16, 4], strides = [1, 1]} : vector<16x32xf32> to vector<16x4xf32>
    %c16_433 = arith.constant 16 : index
    %c4_434 = arith.constant 4 : index
    %650 = vector.load %arg22[%c16_433, %c4_434] : memref<128x32xf32, #tpu.memory_space<vmem>>, vector<16x4xf32>
    tpu.vector_store %arg22[%c16_433, %c4_434], %649 {strides = array<i32>} : memref<128x32xf32, #tpu.memory_space<vmem>>, vector<16x4xf32>,
    %651 = vector.extract_strided_slice %616 {offsets = [0, 8], sizes = [16, 4], strides = [1, 1]} : vector<16x32xf32> to vector<16x4xf32>
    %c32_435 = arith.constant 32 : index
    %c8_436 = arith.constant 8 : index
    %652 = vector.load %arg22[%c32_435, %c8_436] : memref<128x32xf32, #tpu.memory_space<vmem>>, vector<16x4xf32>
    tpu.vector_store %arg22[%c32_435, %c8_436], %651 {strides = array<i32>} : memref<128x32xf32, #tpu.memory_space<vmem>>, vector<16x4xf32>,
    %653 = vector.extract_strided_slice %616 {offsets = [0, 12], sizes = [16, 4], strides = [1, 1]} : vector<16x32xf32> to vector<16x4xf32>
    %c48_437 = arith.constant 48 : index
    %c12_438 = arith.constant 12 : index
    %654 = vector.load %arg22[%c48_437, %c12_438] : memref<128x32xf32, #tpu.memory_space<vmem>>, vector<16x4xf32>
    tpu.vector_store %arg22[%c48_437, %c12_438], %653 {strides = array<i32>} : memref<128x32xf32, #tpu.memory_space<vmem>>, vector<16x4xf32>,
    %655 = vector.extract_strided_slice %616 {offsets = [0, 16], sizes = [16, 4], strides = [1, 1]} : vector<16x32xf32> to vector<16x4xf32>
    %c64_439 = arith.constant 64 : index
    %c16_440 = arith.constant 16 : index
    %656 = vector.load %arg22[%c64_439, %c16_440] : memref<128x32xf32, #tpu.memory_space<vmem>>, vector<16x4xf32>
    tpu.vector_store %arg22[%c64_439, %c16_440], %655 {strides = array<i32>} : memref<128x32xf32, #tpu.memory_space<vmem>>, vector<16x4xf32>,
    %657 = vector.extract_strided_slice %616 {offsets = [0, 20], sizes = [16, 4], strides = [1, 1]} : vector<16x32xf32> to vector<16x4xf32>
    %c80_441 = arith.constant 80 : index
    %c20_442 = arith.constant 20 : index
    %658 = vector.load %arg22[%c80_441, %c20_442] : memref<128x32xf32, #tpu.memory_space<vmem>>, vector<16x4xf32>
    tpu.vector_store %arg22[%c80_441, %c20_442], %657 {strides = array<i32>} : memref<128x32xf32, #tpu.memory_space<vmem>>, vector<16x4xf32>,
    %659 = vector.extract_strided_slice %616 {offsets = [0, 24], sizes = [16, 4], strides = [1, 1]} : vector<16x32xf32> to vector<16x4xf32>
    %c96_443 = arith.constant 96 : index
    %c24_444 = arith.constant 24 : index
    %660 = vector.load %arg22[%c96_443, %c24_444] : memref<128x32xf32, #tpu.memory_space<vmem>>, vector<16x4xf32>
    tpu.vector_store %arg22[%c96_443, %c24_444], %659 {strides = array<i32>} : memref<128x32xf32, #tpu.memory_space<vmem>>, vector<16x4xf32>,
    %661 = vector.extract_strided_slice %616 {offsets = [0, 28], sizes = [16, 4], strides = [1, 1]} : vector<16x32xf32> to vector<16x4xf32>
    %c112_445 = arith.constant 112 : index
    %c28_446 = arith.constant 28 : index
    %662 = vector.load %arg22[%c112_445, %c28_446] : memref<128x32xf32, #tpu.memory_space<vmem>>, vector<16x4xf32>
    tpu.vector_store %arg22[%c112_445, %c28_446], %661 {strides = array<i32>} : memref<128x32xf32, #tpu.memory_space<vmem>>, vector<16x4xf32>,
    %c0_447 = arith.constant 0 : index
    %c0_448 = arith.constant 0 : index
    %663 = vector.load %arg22[%c0_447, %c0_448] : memref<128x32xf32, #tpu.memory_space<vmem>>, vector<128x32xf32>
    %cst_449 = arith.constant dense<0.000000e+00> : vector<16x32xf32>
    %664 = tpu.matmul %646, %663, %cst_449 {dimension_numbers = #tpu.dot_dimension_numbers<[1], [0], [0], [1], [0, 0, 1, 1], [], []>} : vector<16x128xf32>, vector<128x32xf32>, vector<16x32xf32> -> vector<16x32xf32>
    %c4_450 = arith.constant 4 : index
    %c0_451 = arith.constant 0 : index
    %c0_452 = arith.constant 0 : index
    %665 = vector.load %arg8[%c4_450, %c0_451, %c0_452] : memref<5x32x32xf32, #tpu.memory_space<vmem>>, vector<1x32x32xf32>
    %666 = vector.shape_cast %665 : vector<1x32x32xf32> to vector<32x32xf32>
    %cst_453 = arith.constant dense<0.000000e+00> : vector<16x32xf32>
    %667 = tpu.matmul %664, %666, %cst_453 {dimension_numbers = #tpu.dot_dimension_numbers<[1], [0], [0], [1], [0, 0, 1, 1], [], []>} : vector<16x32xf32>, vector<32x32xf32>, vector<16x32xf32> -> vector<16x32xf32>
    %c4_454 = arith.constant 4 : index
    %c0_455 = arith.constant 0 : index
    %c0_456 = arith.constant 0 : index
    %668 = vector.load %arg9[%c4_454, %c0_455, %c0_456] : memref<5x1x32xf32, #tpu.memory_space<vmem>>, vector<1x1x32xf32>
    %669 = vector.shape_cast %668 : vector<1x1x32xf32> to vector<1x32xf32>
    %670 = vector.broadcast %669 : vector<1x32xf32> to vector<16x32xf32>
    %671 = arith.addf %667, %670 : vector<16x32xf32>
    %672 = arith.addf %581, %671 : vector<16x32xf32>
    %c4_457 = arith.constant 4 : index
    %c0_458 = arith.constant 0 : index
    %c0_459 = arith.constant 0 : index
    %673 = vector.load %arg16[%c4_457, %c0_458, %c0_459] : memref<5x1x32xf32, #tpu.memory_space<vmem>>, vector<1x1x32xf32>
    %674 = vector.shape_cast %673 : vector<1x1x32xf32> to vector<1x32xf32>
    %c4_460 = arith.constant 4 : index
    %c0_461 = arith.constant 0 : index
    %c0_462 = arith.constant 0 : index
    %675 = vector.load %arg17[%c4_460, %c0_461, %c0_462] : memref<5x1x32xf32, #tpu.memory_space<vmem>>, vector<1x1x32xf32>
    %676 = vector.shape_cast %675 : vector<1x1x32xf32> to vector<1x32xf32>
    %cst_463 = arith.constant dense<0.000000e+00> : vector<16xf32>
    %677 = vector.multi_reduction <add>, %672, %cst_463 [1] : vector<16x32xf32> to vector<16xf32>
    %678 = vector.shape_cast %677 : vector<16xf32> to vector<16x1xf32>
    %cst_464 = arith.constant 3.200000e+01 : f32
    %679 = vector.broadcast %cst_464 : f32 to vector<16x1xf32>
    %680 = arith.divf %678, %679 : vector<16x1xf32>
    %681 = vector.broadcast %680 : vector<16x1xf32> to vector<16x32xf32>
    %682 = arith.subf %672, %681 : vector<16x32xf32>
    %683 = arith.mulf %682, %682 : vector<16x32xf32>
    %cst_465 = arith.constant dense<0.000000e+00> : vector<16xf32>
    %684 = vector.multi_reduction <add>, %683, %cst_465 [1] : vector<16x32xf32> to vector<16xf32>
    %685 = vector.shape_cast %684 : vector<16xf32> to vector<16x1xf32>
    %cst_466 = arith.constant 0.0322580636 : f32
    %686 = vector.broadcast %cst_466 : f32 to vector<16x1xf32>
    %687 = arith.mulf %685, %686 : vector<16x1xf32>
    %688 = math.sqrt %687 : vector<16x1xf32>
    %cst_467 = arith.constant 9.99999997E-7 : f32
    %689 = vector.broadcast %cst_467 : f32 to vector<16x1xf32>
    %690 = arith.addf %688, %689 : vector<16x1xf32>
    %691 = tpu.reciprocal %690 : vector<16x1xf32> -> vector<16x1xf32>
    %692 = vector.broadcast %691 : vector<16x1xf32> to vector<16x32xf32>
    %693 = arith.mulf %682, %692 : vector<16x32xf32>
    %694 = vector.broadcast %674 : vector<1x32xf32> to vector<16x32xf32>
    %695 = arith.mulf %694, %693 : vector<16x32xf32>
    %696 = vector.broadcast %676 : vector<1x32xf32> to vector<16x32xf32>
    %697 = arith.addf %695, %696 : vector<16x32xf32>
    %c4_468 = arith.constant 4 : index
    %c0_469 = arith.constant 0 : index
    %c0_470 = arith.constant 0 : index
    %698 = vector.load %arg12[%c4_468, %c0_469, %c0_470] : memref<5x32x128xf32, #tpu.memory_space<vmem>>, vector<1x32x128xf32>
    %699 = vector.shape_cast %698 : vector<1x32x128xf32> to vector<32x128xf32>
    %cst_471 = arith.constant dense<0.000000e+00> : vector<16x128xf32>
    %700 = tpu.matmul %697, %699, %cst_471 {dimension_numbers = #tpu.dot_dimension_numbers<[1], [0], [0], [1], [0, 0, 1, 1], [], []>} : vector<16x32xf32>, vector<32x128xf32>, vector<16x128xf32> -> vector<16x128xf32>
    %c4_472 = arith.constant 4 : index
    %c0_473 = arith.constant 0 : index
    %c0_474 = arith.constant 0 : index
    %701 = vector.load %arg13[%c4_472, %c0_473, %c0_474] : memref<5x1x128xf32, #tpu.memory_space<vmem>>, vector<1x1x128xf32>
    %702 = vector.shape_cast %701 : vector<1x1x128xf32> to vector<1x128xf32>
    %703 = vector.broadcast %702 : vector<1x128xf32> to vector<16x128xf32>
    %704 = arith.addf %700, %703 : vector<16x128xf32>
    %705 = arith.mulf %704, %704 : vector<16x128xf32>
    %706 = arith.mulf %704, %705 : vector<16x128xf32>
    %cst_475 = arith.constant 4.471500e-02 : f32
    %707 = vector.broadcast %cst_475 : f32 to vector<16x128xf32>
    %708 = arith.mulf %707, %706 : vector<16x128xf32>
    %709 = arith.addf %704, %708 : vector<16x128xf32>
    %cst_476 = arith.constant 0.797884583 : f32
    %710 = vector.broadcast %cst_476 : f32 to vector<16x128xf32>
    %711 = arith.mulf %710, %709 : vector<16x128xf32>
    %712 = math.tanh %711 : vector<16x128xf32>
    %cst_477 = arith.constant 1.000000e+00 : f32
    %713 = vector.broadcast %cst_477 : f32 to vector<16x128xf32>
    %714 = arith.addf %713, %712 : vector<16x128xf32>
    %cst_478 = arith.constant 5.000000e-01 : f32
    %715 = vector.broadcast %cst_478 : f32 to vector<16x128xf32>
    %716 = arith.mulf %715, %714 : vector<16x128xf32>
    %717 = arith.mulf %704, %716 : vector<16x128xf32>
    %c4_479 = arith.constant 4 : index
    %c0_480 = arith.constant 0 : index
    %c0_481 = arith.constant 0 : index
    %718 = vector.load %arg14[%c4_479, %c0_480, %c0_481] : memref<5x128x32xf32, #tpu.memory_space<vmem>>, vector<1x128x32xf32>
    %719 = vector.shape_cast %718 : vector<1x128x32xf32> to vector<128x32xf32>
    %cst_482 = arith.constant dense<0.000000e+00> : vector<16x32xf32>
    %720 = tpu.matmul %717, %719, %cst_482 {dimension_numbers = #tpu.dot_dimension_numbers<[1], [0], [0], [1], [0, 0, 1, 1], [], []>} : vector<16x128xf32>, vector<128x32xf32>, vector<16x32xf32> -> vector<16x32xf32>
    %721 = arith.addf %672, %720 : vector<16x32xf32>
    %c4_483 = arith.constant 4 : index
    %c0_484 = arith.constant 0 : index
    %c0_485 = arith.constant 0 : index
    %722 = vector.load %arg15[%c4_483, %c0_484, %c0_485] : memref<5x1x32xf32, #tpu.memory_space<vmem>>, vector<1x1x32xf32>
    %723 = vector.shape_cast %722 : vector<1x1x32xf32> to vector<1x32xf32>
    %724 = vector.broadcast %723 : vector<1x32xf32> to vector<16x32xf32>
    %725 = arith.addf %721, %724 : vector<16x32xf32>
    %726 = vector.extract_strided_slice %725 {offsets = [0, 0], sizes = [8, 32], strides = [1, 1]} : vector<16x32xf32> to vector<8x32xf32>
    %c0_486 = arith.constant 0 : index
    %c0_487 = arith.constant 0 : index
    %727 = vector.load %arg18[%c0_486, %c0_487] : memref<1x32xf32, #tpu.memory_space<vmem>>, vector<1x32xf32>
    "tpu.trace_start"() <{level = 10 : i32, message = "oe,ne->on"}> : () -> ()
    %cst_488 = arith.constant dense<0.000000e+00> : vector<1x8xf32>
    %728 = tpu.matmul %727, %726, %cst_488 {dimension_numbers = #tpu.dot_dimension_numbers<[1], [1], [0], [0], [0, 0, 1, 0], [], []>} : vector<1x32xf32>, vector<8x32xf32>, vector<1x8xf32> -> vector<1x8xf32>
    "tpu.trace_stop"() : () -> ()
    %c0_489 = arith.constant 0 : index
    %c0_490 = arith.constant 0 : index
    %729 = vector.load %arg19[%c0_489, %c0_490] : memref<1x1xf32, #tpu.memory_space<vmem>>, vector<1x1xf32>
    %730 = vector.broadcast %729 : vector<1x1xf32> to vector<1x8xf32>
    %731 = arith.addf %728, %730 : vector<1x8xf32>
    %c0_491 = arith.constant 0 : index
    %c0_492 = arith.constant 0 : index
    %c0_493 = arith.constant 0 : index
    %732 = vector.load %arg3[%c0_491, %c0_492, %c0_493] : memref<1x1x8xf32, #tpu.memory_space<vmem>>, vector<1x1x8xf32>
    %733 = vector.shape_cast %732 : vector<1x1x8xf32> to vector<1x8xf32>
    %cst_494 = arith.constant 0.000000e+00 : f32
    %734 = vector.broadcast %cst_494 : f32 to vector<1x8xf32>
    %735 = arith.cmpf oeq, %733, %734 : vector<1x8xf32>
    %cst_495 = arith.constant -1.000000e+09 : f32
    %736 = vector.broadcast %cst_495 : f32 to vector<1x8xf32>
    %737 = arith.select %735, %736, %731 : vector<1x8xi1>, vector<1x8xf32>
    %cst_496 = arith.constant dense<0xFF800000> : vector<1xf32>
    %738 = vector.multi_reduction <maximumf>, %737, %cst_496 [1] : vector<1x8xf32> to vector<1xf32>
    %739 = vector.shape_cast %738 : vector<1xf32> to vector<1x1xf32>
    %740 = vector.broadcast %739 : vector<1x1xf32> to vector<1x8xf32>
    %741 = arith.subf %737, %740 : vector<1x8xf32>
    %742 = math.exp %741 : vector<1x8xf32>
    %cst_497 = arith.constant dense<0.000000e+00> : vector<1xf32>
    %743 = vector.multi_reduction <add>, %742, %cst_497 [1] : vector<1x8xf32> to vector<1xf32>
    %744 = vector.shape_cast %743 : vector<1xf32> to vector<1x1xf32>
    %745 = tpu.reciprocal %744 : vector<1x1xf32> -> vector<1x1xf32>
    %746 = vector.broadcast %745 : vector<1x1xf32> to vector<1x8xf32>
    %747 = arith.mulf %742, %746 : vector<1x8xf32>
    %cst_498 = arith.constant 1.000000e-10 : f32
    %cst_499 = arith.constant 1.000000e+00 : f32
    %748 = vector.broadcast %cst_498 : f32 to vector<1x8xf32>
    %749 = arith.maximumf %748, %747 : vector<1x8xf32>
    %750 = vector.broadcast %cst_499 : f32 to vector<1x8xf32>
    %751 = arith.minimumf %750, %749 : vector<1x8xf32>
    %752 = math.log %751 : vector<1x8xf32>
    %cst_500 = arith.constant 0.000000e+00 : f32
    %753 = vector.broadcast %cst_500 : f32 to vector<1x8xf32>
    %754 = arith.subf %753, %752 : vector<1x8xf32>
    %c0_501 = arith.constant 0 : index
    %c0_502 = arith.constant 0 : index
    %c0_503 = arith.constant 0 : index
    %755 = vector.load %arg4[%c0_501, %c0_502, %c0_503] : memref<1x1x8xf32, #tpu.memory_space<vmem>>, vector<1x1x8xf32>
    %756 = vector.shape_cast %755 : vector<1x1x8xf32> to vector<1x8xf32>
    %757 = arith.mulf %754, %756 : vector<1x8xf32>
    %cst_504 = arith.constant dense<0.000000e+00> : vector<1xf32>
    %758 = vector.multi_reduction <add>, %757, %cst_504 [1] : vector<1x8xf32> to vector<1xf32>
    %759 = vector.shape_cast %758 : vector<1xf32> to vector<1x1xf32>
    %cst_505 = arith.constant 0.000000e+00 : f32
    %760 = vector.broadcast %cst_505 : f32 to vector<8x96xf32>
    %761 = tpu.concatenate %726, %760 in 1 : vector<8x32xf32>, vector<8x96xf32> -> vector<8x128xf32>
    %cst_506 = arith.constant 0.000000e+00 : f32
    %762 = vector.broadcast %cst_506 : f32 to vector<1x119xf32>
    %763 = tpu.concatenate %747, %759, %762 in 1 : vector<1x8xf32>, vector<1x1xf32>, vector<1x119xf32> -> vector<1x128xf32>
    %cst_507 = arith.constant 0.000000e+00 : f32
    %764 = vector.broadcast %cst_507 : f32 to vector<7x128xf32>
    %765 = tpu.concatenate %763, %764 in 0 : vector<1x128xf32>, vector<7x128xf32> -> vector<8x128xf32>
    %766 = tpu.concatenate %761, %765 in 0 : vector<8x128xf32>, vector<8x128xf32> -> vector<16x128xf32>
    %c0_508 = arith.constant 0 : index
    %c0_509 = arith.constant 0 : index
    %c0_510 = arith.constant 0 : index
    %767 = vector.load %arg20[%c0_508, %c0_509, %c0_510] : memref<1x16x128xf32, #tpu.memory_space<vmem>>, vector<1x16x128xf32>
    %768 = vector.shape_cast %767 : vector<1x16x128xf32> to vector<16x128xf32>
    %769 = vector.shape_cast %766 : vector<16x128xf32> to vector<1x16x128xf32>
    tpu.vector_store %arg20[%c0_508, %c0_509, %c0_510], %769 {strides = array<i32>} : memref<1x16x128xf32, #tpu.memory_space<vmem>>, vector<1x16x128xf32>,
    return
  }
  func.func @transform_0(%arg0: i32) -> (i32, i32, i32) {
    %c0_i32 = arith.constant 0 : i32
    %c0_i32_0 = arith.constant 0 : i32
    %c0_i32_1 = arith.constant 0 : i32
    return %arg0, %c0_i32, %c0_i32_0 : i32, i32, i32
  }
  func.func @transform_1(%arg0: i32) -> (i32, i32, i32) {
    %c0_i32 = arith.constant 0 : i32
    %c0_i32_0 = arith.constant 0 : i32
    %c0_i32_1 = arith.constant 0 : i32
    return %arg0, %c0_i32, %c0_i32_0 : i32, i32, i32
  }
  func.func @transform_2(%arg0: i32) -> (i32, i32, i32) {
    %c0_i32 = arith.constant 0 : i32
    %c0_i32_0 = arith.constant 0 : i32
    %c0_i32_1 = arith.constant 0 : i32
    return %arg0, %c0_i32, %c0_i32_0 : i32, i32, i32
  }
  func.func @transform_3(%arg0: i32) -> (i32, i32, i32) {
    %c0_i32 = arith.constant 0 : i32
    %c0_i32_0 = arith.constant 0 : i32
    %c0_i32_1 = arith.constant 0 : i32
    return %arg0, %c0_i32, %c0_i32_0 : i32, i32, i32
  }
  func.func @transform_4(%arg0: i32) -> (i32, i32) {
    %c0_i32 = arith.constant 0 : i32
    %c0_i32_0 = arith.constant 0 : i32
    %c0_i32_1 = arith.constant 0 : i32
    return %c0_i32, %c0_i32_0 : i32, i32
  }
  func.func @transform_5(%arg0: i32) -> (i32, i32, i32) {
    %c0_i32 = arith.constant 0 : i32
    %c0_i32_0 = arith.constant 0 : i32
    %c0_i32_1 = arith.constant 0 : i32
    %c0_i32_2 = arith.constant 0 : i32
    return %c0_i32, %c0_i32_0, %c0_i32_1 : i32, i32, i32
  }
  func.func @transform_6(%arg0: i32) -> (i32, i32, i32) {
    %c0_i32 = arith.constant 0 : i32
    %c0_i32_0 = arith.constant 0 : i32
    %c0_i32_1 = arith.constant 0 : i32
    %c0_i32_2 = arith.constant 0 : i32
    return %c0_i32, %c0_i32_0, %c0_i32_1 : i32, i32, i32
  }
  func.func @transform_7(%arg0: i32) -> (i32, i32, i32) {
    %c0_i32 = arith.constant 0 : i32
    %c0_i32_0 = arith.constant 0 : i32
    %c0_i32_1 = arith.constant 0 : i32
    %c0_i32_2 = arith.constant 0 : i32
    return %c0_i32, %c0_i32_0, %c0_i32_1 : i32, i32, i32
  }
  func.func @transform_8(%arg0: i32) -> (i32, i32, i32) {
    %c0_i32 = arith.constant 0 : i32
    %c0_i32_0 = arith.constant 0 : i32
    %c0_i32_1 = arith.constant 0 : i32
    %c0_i32_2 = arith.constant 0 : i32
    return %c0_i32, %c0_i32_0, %c0_i32_1 : i32, i32, i32
  }
  func.func @transform_9(%arg0: i32) -> (i32, i32, i32) {
    %c0_i32 = arith.constant 0 : i32
    %c0_i32_0 = arith.constant 0 : i32
    %c0_i32_1 = arith.constant 0 : i32
    %c0_i32_2 = arith.constant 0 : i32
    return %c0_i32, %c0_i32_0, %c0_i32_1 : i32, i32, i32
  }
  func.func @transform_10(%arg0: i32) -> (i32, i32, i32) {
    %c0_i32 = arith.constant 0 : i32
    %c0_i32_0 = arith.constant 0 : i32
    %c0_i32_1 = arith.constant 0 : i32
    %c0_i32_2 = arith.constant 0 : i32
    return %c0_i32, %c0_i32_0, %c0_i32_1 : i32, i32, i32
  }
  func.func @transform_11(%arg0: i32) -> (i32, i32, i32) {
    %c0_i32 = arith.constant 0 : i32
    %c0_i32_0 = arith.constant 0 : i32
    %c0_i32_1 = arith.constant 0 : i32
    %c0_i32_2 = arith.constant 0 : i32
    return %c0_i32, %c0_i32_0, %c0_i32_1 : i32, i32, i32
  }
  func.func @transform_12(%arg0: i32) -> (i32, i32, i32) {
    %c0_i32 = arith.constant 0 : i32
    %c0_i32_0 = arith.constant 0 : i32
    %c0_i32_1 = arith.constant 0 : i32
    %c0_i32_2 = arith.constant 0 : i32
    return %c0_i32, %c0_i32_0, %c0_i32_1 : i32, i32, i32
  }
  func.func @transform_13(%arg0: i32) -> (i32, i32, i32) {
    %c0_i32 = arith.constant 0 : i32
    %c0_i32_0 = arith.constant 0 : i32
    %c0_i32_1 = arith.constant 0 : i32
    %c0_i32_2 = arith.constant 0 : i32
    return %c0_i32, %c0_i32_0, %c0_i32_1 : i32, i32, i32
  }
  func.func @transform_14(%arg0: i32) -> (i32, i32, i32) {
    %c0_i32 = arith.constant 0 : i32
    %c0_i32_0 = arith.constant 0 : i32
    %c0_i32_1 = arith.constant 0 : i32
    %c0_i32_2 = arith.constant 0 : i32
    return %c0_i32, %c0_i32_0, %c0_i32_1 : i32, i32, i32
  }
  func.func @transform_15(%arg0: i32) -> (i32, i32, i32) {
    %c0_i32 = arith.constant 0 : i32
    %c0_i32_0 = arith.constant 0 : i32
    %c0_i32_1 = arith.constant 0 : i32
    %c0_i32_2 = arith.constant 0 : i32
    return %c0_i32, %c0_i32_0, %c0_i32_1 : i32, i32, i32
  }
  func.func @transform_16(%arg0: i32) -> (i32, i32, i32) {
    %c0_i32 = arith.constant 0 : i32
    %c0_i32_0 = arith.constant 0 : i32
    %c0_i32_1 = arith.constant 0 : i32
    %c0_i32_2 = arith.constant 0 : i32
    return %c0_i32, %c0_i32_0, %c0_i32_1 : i32, i32, i32
  }
  func.func @transform_17(%arg0: i32) -> (i32, i32) {
    %c0_i32 = arith.constant 0 : i32
    %c0_i32_0 = arith.constant 0 : i32
    %c0_i32_1 = arith.constant 0 : i32
    return %c0_i32, %c0_i32_0 : i32, i32
  }
  func.func @transform_18(%arg0: i32) -> (i32, i32) {
    %c0_i32 = arith.constant 0 : i32
    %c0_i32_0 = arith.constant 0 : i32
    %c0_i32_1 = arith.constant 0 : i32
    return %c0_i32, %c0_i32_0 : i32, i32
  }
  func.func @transform_19(%arg0: i32) -> (i32, i32, i32) {
    %c0_i32 = arith.constant 0 : i32
    %c0_i32_0 = arith.constant 0 : i32
    %c0_i32_1 = arith.constant 0 : i32
    return %arg0, %c0_i32, %c0_i32_0 : i32, i32, i32
  }
}

</mosaic_0001>

<bundles_post_ra>
// kernel: nl_encoder_forward.1
= control target key start
LH: loop header
LB: loop body
LE: loop exit
PB: predicated region body
PF: predicated region fallthrough
CT: control target
= control target key end

     0   :  { %s8213_s20 = smov 0   ;;  %s9703_s0 = inlined_call_operand.vmem [shape: f32[2,16,32], index: 0, kind: input, shape index: {}]   ;;  %s9704_s1 = inlined_call_operand.vmem [shape: f32[2,16,128], index: 1, kind: input, shape index: {}]   ;;  %s9705_s2 = inlined_call_operand.vmem [shape: f32[2,1,8], index: 2, kind: input, shape index: {}]   ;;  %s9706_s3 = inlined_call_operand.vmem [shape: f32[2,1,8], index: 3, kind: input, shape index: {}]   ;;  %s9707_s4 = inlined_call_operand.vmem [shape: f32[128,128], index: 4, kind: input, shape index: {}]   ;;  %s9708_s5 = inlined_call_operand.vmem [shape: f32[5,32,96], index: 5, kind: input, shape index: {}]   ;;  %s9709_s6 = inlined_call_operand.vmem [shape: f32[5,1,96], index: 6, kind: input, shape index: {}]   ;;  %s9710_s7 = inlined_call_operand.vmem [shape: f32[5,32,32], index: 7, kind: input, shape index: {}]   ;;  %s9711_s8 = inlined_call_operand.vmem [shape: f32[5,1,32], index: 8, kind: input, shape index: {}, may-alias: {8,10,14,16}]   ;;  %s9712_s9 = inlined_call_operand.vmem [shape: f32[5,1,32], index: 9, kind: input, shape index: {}, may-alias: {9,15}]   ;;  %s9713_s10 = inlined_call_operand.vmem [shape: f32[5,1,32], index: 10, kind: input, shape index: {}, may-alias: {8,10,14,16}]   ;;  %s9714_s11 = inlined_call_operand.vmem [shape: f32[5,32,128], index: 11, kind: input, shape index: {}]   ;;  %s9715_s12 = inlined_call_operand.vmem [shape: f32[5,1,128], index: 12, kind: input, shape index: {}]   ;;  %s9716_s13 = inlined_call_operand.vmem [shape: f32[5,128,32], index: 13, kind: input, shape index: {}]   ;;  %s9717_s14 = inlined_call_operand.vmem [shape: f32[5,1,32], index: 14, kind: input, shape index: {}, may-alias: {8,10,14,16}]   ;;  %s9718_s15 = inlined_call_operand.vmem [shape: f32[5,1,32], index: 15, kind: input, shape index: {}, may-alias: {9,15}]   ;;  %s9719_s16 = inlined_call_operand.vmem [shape: f32[5,1,32], index: 16, kind: input, shape index: {}, may-alias: {8,10,14,16}]   ;;  %s9720_s17 = inlined_call_operand.vmem [shape: f32[1,32], index: 17, kind: input, shape index: {}]   ;;  %s9721_s18 = inlined_call_operand.<no memory space> [shape: f32[1,1], index: 18, kind: input, shape index: {}]   ;;  %s9722_s19 = inlined_call_operand.vmem [shape: f32[2,16,128], index: 19, kind: output, shape index: {}]  }
   0x1   :  { %9723 = sst [smem:[#allocation5_spill]] %s9703_s0  ;;  %v24_v0 = vstv %s9721_s18 }
   0x2   :  { %9724 = sst [smem:[#allocation6_spill]] %s9704_s1  ;;  %25 = vst [vmem:[#allocation4] sm:$0x1] %v24_v0 }
   0x3   :  { %9725 = sst [smem:[#allocation7_spill]] %s9705_s2 }
   0x4   :  { %9726 = sst [smem:[#allocation8_spill]] %s9706_s3 }
   0x5 LB: > { %s5453_s21 = sadd.s32 4294967295, %s8103_s20   ;;  %p5457_p0 = scmp.ge.s32.totalorder %s8103_s20, 1  ;;  %s8103_s20 = sphi %s8213_s20, %s31_s20  }
   0x6   : > { %p565_p1 = scmp.lt.s32.totalorder %s8103_s20, 3 }
   0x8   : > { %p566_p2 = pnand %p5457_p0, %p565_p1 }
   0x9   : > { %p632_p3 = scmp.lt.s32.totalorder (!%p566_p2), %s5453_s21, 1  ;;  %vm655_vm0 = vcmask (!%p566_p2), 261120   ;;  %s9727_s2 = sld [smem:[#allocation5_spill]] (!%p566_p2)  ;;  %v747_v15 = vld [vmem:[%s9708_s5] sm:$0xff] (!%p566_p2)  ;;  %v748_v16 = vld [vmem:[%s9708_s5 + $0x8] sm:$0xff] (!%p566_p2)  ;;  %v749_v17 = vld [vmem:[%s9708_s5 + $0x10] sm:$0xff] (!%p566_p2) }
   0xa   : > { %569 = sbr.rel (%p566_p2) target bundleno = 13524 (0x34d4), region = 96  ;;  %v7097_v18 = vpack.c.bf16 (!%p566_p2), %v748_v16, %v747_v15  ;;  %v750_v19 = vld [vmem:[%s9708_s5 + $0x18] sm:$0xff] (!%p566_p2)  ;;  %v5464_v38 = vld [vmem:[%s9712_s9] ss:$0 sm:$0xff] (!%p566_p2)  ;;  %v8105_v47 = vmov (!%p566_p2), 0.0   ;;  %s8106_s25 = smov (!%p566_p2), 96   ;;  %vm8357_vm13 = vmpackc.low (!%p566_p2), %vm655_vm0, %vm655_vm0 }
   0xb   : > { %v7101_v20 = vpack.c.bf16 (!%p566_p2), %v750_v19, %v749_v17  ;;  %v5465_v40 = vld [vmem:[%s9713_s10] ss:$0 sm:$0xff] (!%p566_p2)  ;;  %657 = vst.msk [vmem:[#allocation2 + $0x8] sm:$0xff] (!%p566_p2), %vm655_vm0, %v8105_v47  ;;  %659 = vst.msk [vmem:[#allocation2 + $0x18] sm:$0xff] (!%p566_p2), %vm655_vm0, %v8105_v47  ;;  %vm847_vm5 = vcmask (!%p566_p2), 31744   ;;  %vm850_vm6 = vcmask (!%p566_p2), 64544  }
   0xc   : > { %7098 = vmatprep.subr.bf16.mxu0 (!%p566_p2), %v7097_v18  ;;  %661 = vst.msk [vmem:[#allocation2 + $0x28] sm:$0xff] (!%p566_p2), %vm655_vm0, %v8105_v47  ;;  %663 = vst.msk [vmem:[#allocation2 + $0x38] sm:$0xff] (!%p566_p2), %vm655_vm0, %v8105_v47  ;;  %v5466_v48 = vld [vmem:[%s9709_s6] ss:$0 sm:$0xff] (!%p566_p2)  ;;  %vm853_vm7 = vcmask (!%p566_p2), 97344   ;;  %vm856_vm8 = vcmask (!%p566_p2), 130144  }
   0xd   : > { %7100 = vmatpush3.bf16.msra.mxu0 (!%p566_p2), %v7097_v18  ;;  %665 = vst.msk [vmem:[#allocation2 + $0x48] sm:$0xff] (!%p566_p2), %vm655_vm0, %v8105_v47  ;;  %667 = vst.msk [vmem:[#allocation2 + $0x58] sm:$0xff] (!%p566_p2), %vm655_vm0, %v8105_v47  ;;  %vm859_vm9 = vcmask (!%p566_p2), 162944   ;;  %vm862_vm10 = vcmask (!%p566_p2), 195744   ;;  %vm865_vm11 = vcmask (!%p566_p2), 228544   ;;  %vm868_vm12 = vcmask (!%p566_p2), 261344  }
   0xe   : > { %7102 = vmatprep.subr.bf16.mxu0 (!%p566_p2), %v7101_v20  ;;  %669 = vst.msk [vmem:[#allocation2 + $0x68] sm:$0xff] (!%p566_p2), %vm655_vm0, %v8105_v47  ;;  %671 = vst.msk [vmem:[#allocation2 + $0x78] sm:$0xff] (!%p566_p2), %vm655_vm0, %v8105_v47  ;;  %v1026_v18 = vld [vmem:[%s9707_s4] sm:$0xff] (!%p566_p2)  ;;  %v1027_v19 = vld [vmem:[%s9707_s4 + $0x8] sm:$0xff] (!%p566_p2)  ;;  %s9730_s30 = sld [smem:[#allocation6_spill]] (!%p566_p2)  ;;  %s8107_s3 = smov (!%p566_p2), 64  }
   0xf   : > { %656 = vst.msk [vmem:[#allocation2] sm:$0xff] (!%p566_p2), %vm655_vm0, %v8105_v47  ;;  %658 = vst.msk [vmem:[#allocation2 + $0x10] sm:$0xff] (!%p566_p2), %vm655_vm0, %v8105_v47  ;;  %v4673_v56 = vld [vmem:[%s9707_s4 + $0x18] sm:$0xff] (!%p566_p2)  ;;  %s9731_s24 = sld [smem:[#allocation7_spill]] (!%p566_p2)  ;;  %s9732_s27 = sld [smem:[#allocation8_spill]] (!%p566_p2) }
  0x10   : > { %660 = vst.msk [vmem:[#allocation2 + $0x20] sm:$0xff] (!%p566_p2), %vm655_vm0, %v8105_v47  ;;  %662 = vst.msk [vmem:[#allocation2 + $0x30] sm:$0xff] (!%p566_p2), %vm655_vm0, %v8105_v47 }
  0x11   : > { %s9734_s21 = smov (!%p632_p3, %s5453_s21), 1  ;;  %7104 = vmatpush3.bf16.msra.mxu0 %v7101_v20  ;;  %664 = vst.msk [vmem:[#allocation2 + $0x40] sm:$0xff] %vm655_vm0, %v8105_v47  ;;  %666 = vst.msk [vmem:[#allocation2 + $0x50] sm:$0xff] %vm655_vm0, %v8105_v47  ;;  %v1028_v20 = vld [vmem:[%s9707_s4 + $0x10] sm:$0xff] }
  0x12   : > { %s8224_s18 = sshll.u32 %s9734_s21, 4  ;;  %668 = vst.msk [vmem:[#allocation2 + $0x60] sm:$0xff] %vm655_vm0, %v8105_v47  ;;  %670 = vst.msk [vmem:[#allocation2 + $0x70] sm:$0xff] %vm655_vm0, %v8105_v47 }
  0x13   : > { %s636_s23 = scalar_lea.vmem %s9727_s2, %s8224_s18  ;;  %672 = vst.msk [vmem:[#allocation3] sm:$0xff] %vm655_vm0, %v8105_v47  ;;  %673 = vst.msk [vmem:[#allocation3 + $0x8] sm:$0xff] %vm655_vm0, %v8105_v47 }
  0x14   : > { %v8230_v1 = vld [vmem:[%s636_s23] sm:$0xff]  ;;  %v8232_v2 = vld [vmem:[%s636_s23 + $0x8] sm:$0xff]  ;;  %674 = vst.msk [vmem:[#allocation3 + $0x10] sm:$0xff] %vm655_vm0, %v8105_v47  ;;  %675 = vst.msk [vmem:[#allocation3 + $0x18] sm:$0xff] %vm655_vm0, %v8105_v47  ;;  %s8439_s1 = scalar_lea.vmem %s9730_s30, %s8224_s18  ;;  %s9679_s30 = scalar_lea.vmem %s9722_s19, %s8224_s18 }
  0x15   : > { %v690_v3 = vsel %vm655_vm0, %v8230_v1, 0.0  ;;  %v693_v4 = vsel %vm655_vm0, %v8232_v2, 0.0  ;;  %676 = vst.msk [vmem:[#allocation3 + $0x20] sm:$0xff] %vm655_vm0, %v8105_v47  ;;  %677 = vst.msk [vmem:[#allocation3 + $0x28] sm:$0xff] %vm655_vm0, %v8105_v47 }
  0x16   : > { %691 = vadd.xlane.f32.xlu0 %v690_v3  ;;  %678 = vst.msk [vmem:[#allocation3 + $0x30] sm:$0xff] %vm655_vm0, %v8105_v47  ;;  %679 = vst.msk [vmem:[#allocation3 + $0x38] sm:$0xff] %vm655_vm0, %v8105_v47 }
  0x17   : > { %680 = vst.msk [vmem:[#allocation3 + $0x40] sm:$0xff] %vm655_vm0, %v8105_v47  ;;  %681 = vst.msk [vmem:[#allocation3 + $0x48] sm:$0xff] %vm655_vm0, %v8105_v47 }
  0x18   : > { %682 = vst.msk [vmem:[#allocation3 + $0x50] sm:$0xff] %vm655_vm0, %v8105_v47  ;;  %683 = vst.msk [vmem:[#allocation3 + $0x58] sm:$0xff] %vm655_vm0, %v8105_v47 }
  0x19   : > { %684 = vst.msk [vmem:[#allocation3 + $0x60] sm:$0xff] %vm655_vm0, %v8105_v47  ;;  %685 = vst.msk [vmem:[#allocation3 + $0x68] sm:$0xff] %vm655_vm0, %v8105_v47 }
  0x1a   : > { %694 = vadd.xlane.f32.xlu0 %v693_v4  ;;  %686 = vst.msk [vmem:[#allocation3 + $0x70] sm:$0xff] %vm655_vm0, %v8105_v47  ;;  %687 = vst.msk [vmem:[#allocation3 + $0x78] sm:$0xff] %vm655_vm0, %v8105_v47 }
  0xa3   : > { %v692_v5 = vpop.xlane.xlu0 %691 }
  0xa4   : > { %v697_v6 = vmul.f32 0.03125, %v692_v5 }
  0xa6   : > { %v699_v7 = vsub.f32 %v8230_v1, %v697_v6 }
  0xa7   : > { %v695_v8 = vpop.xlane.xlu0 %694 }
  0xa8   : > { %v698_v9 = vmul.f32 0.03125, %v695_v8  ;;  %v701_v10 = vmul.f32 %v699_v7, %v699_v7 }
  0xaa   : > { %v700_v11 = vsub.f32 %v8232_v2, %v698_v9  ;;  %v703_v12 = vsel %vm655_vm0, %v701_v10, 0.0 }
  0xab   : > { %704 = vadd.xlane.f32.xlu1 %v703_v12 }
  0xac   : > { %v702_v13 = vmul.f32 %v700_v11, %v700_v11 }
  0xae   : > { %v706_v14 = vsel %vm655_vm0, %v702_v13, 0.0 }
  0xaf   : > { %707 = vadd.xlane.f32.xlu1 %v706_v14 }
 0x138   : > { %v705_v21 = vpop.xlane.xlu1 %704 }
 0x139   : > { %v709_v22 = vmul.f32 0.032258064, %v705_v21  ;;  %v8404_v21 = vpack.c.bf16 %v1027_v19, %v1026_v18 }
 0x13b   : > { %7951 = vrsqrt.f32 %v709_v22  ;;  %vm713_vm1 = vcmp.eq.f32.partialorder %v709_v22, inf  ;;  %v716_v27 = vand.u32 2147483648, %v709_v22  ;;  %vm715_vm2 = vcmp.eq.f32.partialorder %v709_v22, 0.0  ;;  %7154 = vmatprep.subr.bf16.mxu0 %v8404_v21 }
 0x13c   : > { %v708_v23 = vpop.xlane.xlu1 %707 }
 0x13d   : > { %v710_v24 = vmul.f32 0.032258064, %v708_v23 }
 0x13f   : > { %7953 = vrsqrt.f32 %v710_v24  ;;  %vm720_vm3 = vcmp.eq.f32.partialorder %v710_v24, inf  ;;  %v723_v33 = vand.u32 2147483648, %v710_v24  ;;  %vm722_vm4 = vcmp.eq.f32.partialorder %v710_v24, 0.0 }
 0x145   : > { %v7952_v25 = vpop.eup %7951 }
 0x146   : > { %v712_v26 = vmul.f32 %v7952_v25, %v709_v22  ;;  %v1031_v25 = vld [vmem:[%s9707_s4 + $0x28] sm:$0xff] }
 0x148   : > { %v714_v28 = vsel %vm713_vm1, %v709_v22, %v712_v26  ;;  %v1029_v22 = vld [vmem:[%s9707_s4 + $0x18] sm:$0xff] }
 0x149   : > { %v7954_v29 = vpop.eup %7953  ;;  %v717_v30 = vsel %vm715_vm2, %v716_v27, %v714_v28  ;;  %v8409_v23 = vpack.c.bf16 %v1029_v22, %v1028_v20  ;;  %v1032_v27 = vld [vmem:[%s9707_s4 + $0x30] sm:$0xff]  ;;  %v1033_v28 = vld [vmem:[%s9707_s4 + $0x38] sm:$0xff] }
 0x14a   : > { %v719_v31 = vmul.f32 %v7954_v29, %v710_v24  ;;  %v725_v32 = vadd.f32 1e-06, %v717_v30  ;;  %v8430_v29 = vpack.c.bf16 %v1033_v28, %v1032_v27  ;;  %v8442_v30 = vld [vmem:[%s8439_s1 + $0x8] sm:$0xff] }
 0x14c   : > { %v721_v34 = vsel %vm720_vm3, %v710_v24, %v719_v31  ;;  %7955 = vrcp.f32 %v725_v32  ;;  %v1030_v24 = vld [vmem:[%s9707_s4 + $0x20] sm:$0xff] }
 0x14d   : > { %v724_v35 = vsel %vm722_vm4, %v723_v33, %v721_v34  ;;  %v8420_v26 = vpack.c.bf16 %v1031_v25, %v1030_v24  ;;  %v8445_v31 = vld [vmem:[%s8439_s1] sm:$0xff]  ;;  %v1235_v25 = vld [vmem:[%s9710_s7 + $0x8] sm:$0xff] }
 0x14e   : > { %v726_v36 = vadd.f32 1e-06, %v724_v35  ;;  %v1234_v24 = vld [vmem:[%s9710_s7] sm:$0xff] }
 0x14f   : > { %v7217_v27 = vpack.c.bf16 %v1235_v25, %v1234_v24 }
 0x150   : > { %7957 = vrcp.f32 %v726_v36  ;;  %v1034_v36 = vld [vmem:[%s9707_s4 + $0x40] sm:$0xff] }
 0x156   : > { %v7956_v37 = vpop.eup %7955 }
 0x157   : > { %v729_v39 = vmul.f32 %v7956_v37, %v699_v7  ;;  %v1035_v37 = vld [vmem:[%s9707_s4 + $0x48] sm:$0xff] }
 0x159   : > { %v737_v41 = vmul.f32 %v5464_v38, %v729_v39  ;;  %v1036_v39 = vld [vmem:[%s9707_s4 + $0x50] sm:$0xff] }
 0x15a   : > { %v7958_v42 = vpop.eup %7957 }
 0x15b   : > { %v730_v43 = vmul.f32 %v7958_v42, %v700_v11  ;;  %v745_v44 = vadd.f32 %v5465_v40, %v737_v41  ;;  %v1038_v41 = vld [vmem:[%s9707_s4 + $0x60] sm:$0xff] }
 0x15d   : > { %v738_v45 = vmul.f32 %v5464_v38, %v730_v43  ;;  %6235 = vmatprep.mubr.msk.f32.mxu0 %vm655_vm0, %v745_v44  ;;  %v8455_v38 = vpack.c.bf16 %v1035_v37, %v1034_v36  ;;  %v1039_v43 = vld [vmem:[%s9707_s4 + $0x68] sm:$0xff] }
 0x15e   : > { %v8475_v44 = vpack.c.bf16 %v1039_v43, %v1038_v41 }
 0x15f   : > { %v746_v46 = vadd.f32 %v5465_v40, %v738_v45  ;;  %v1037_v40 = vld [vmem:[%s9707_s4 + $0x58] sm:$0xff]  ;;  %v1040_v45 = vld [vmem:[%s9707_s4 + $0x70] sm:$0xff] }
 0x160   : > { %v8470_v42 = vpack.c.bf16 %v1037_v40, %v1036_v39 }
 0x161   : > { %6236 = vmatmul.mubr.msk.f32.vlgmr.msra.gmra.mrb[0].mxu0 %vm655_vm0, %v746_v46  ;;  %v1041_v46 = vld [vmem:[%s9707_s4 + $0x78] sm:$0xff] }
 0x162   : > { %7156 = vmatpush3.bf16.msra.mxu0 %v8404_v21 }
 0x163   : > { %7158 = vmatprep.subr.bf16.mxu0 %v8409_v23 }
 0x166   : > { %7160 = vmatpush3.bf16.msra.mxu0 %v8409_v23 }
 0x167   : > { %7162 = vmatprep.subr.bf16.mxu0 %v8420_v26 }
 0x16a   : > { %7164 = vmatpush3.bf16.msra.mxu0 %v8420_v26 }
 0x16b   : > { %7166 = vmatprep.subr.bf16.mxu0 %v8430_v29 }
 0x16e   : > { %7168 = vmatpush3.bf16.msra.mxu0 %v8430_v29 }
 0x16f   : > { %7170 = vmatprep.subr.bf16.mxu0 %v8455_v38 }
 0x172   : > { %7172 = vmatpush3.bf16.msra.mxu0 %v8455_v38 }
 0x173   : > { %7174 = vmatprep.subr.bf16.mxu0 %v8470_v42 }
 0x176   : > { %7176 = vmatpush3.bf16.msra.mxu0 %v8470_v42 }
 0x177   : > { %7178 = vmatprep.subr.bf16.mxu0 %v8475_v44 }
 0x17a   : > { %7180 = vmatpush3.bf16.msra.mxu0 %v8475_v44 }
 0x234   : > { %v6237_v49 = vpop.f32.mrb[0].mxu0 }
 0x235   : > { %v8329_v50 = vadd.f32 %v6237_v49, %v5466_v48  ;;  %v830_v51 = vpop.f32.mrb[1].mxu0 }
 0x236   : > { %v8331_v52 = vadd.f32 %v5466_v48, %v830_v51  ;;  %v8488_v48 = vpack.c.bf16 %v1041_v46, %v1040_v45  ;;  %v5487_v45 = vld [vmem:[%s9711_s8] ss:$0 sm:$0xff] }
 0x237   : > { %843 = vrot.lane.b32.xlu1 %v8329_v50, %s8106_s25 }
 0x238   : > { %841 = vrot.lane.b32.xlu0 %v8331_v52, %s8106_s25  ;;  %6270 = vmatprep.mubr.msk.f32.mxu1 %vm655_vm0, %v8331_v52 }
 0x239   : > { %7182 = vmatprep.subr.bf16.mxu0 %v8488_v48 }
 0x23a   : > { %7184 = vmatpush3.bf16.msra.mxu0 %v8488_v48 }
 0x2a9   : > { %v844_v53 = vpop.permute.xlu1 %843 }
 0x2aa   : > { %849 = vst.msk [vmem:[#allocation2 + $0x8] sm:$0xff] %vm847_vm5, %v844_v53  ;;  %v842_v54 = vpop.permute.xlu0 %841 }
 0x2ab   : > { %852 = vst.msk [vmem:[#allocation2 + $0x18] sm:$0xff] %vm850_vm6, %v844_v53  ;;  %851 = vst.msk [vmem:[#allocation2 + $0x10] sm:$0xff] %vm850_vm6, %v842_v54 }
 0x2ac   : > { %855 = vst.msk [vmem:[#allocation2 + $0x28] sm:$0xff] %vm853_vm7, %v844_v53  ;;  %854 = vst.msk [vmem:[#allocation2 + $0x20] sm:$0xff] %vm853_vm7, %v842_v54 }
 0x2ad   : > { %858 = vst.msk [vmem:[#allocation2 + $0x38] sm:$0xff] %vm856_vm8, %v844_v53  ;;  %857 = vst.msk [vmem:[#allocation2 + $0x30] sm:$0xff] %vm856_vm8, %v842_v54 }
 0x2ae   : > { %861 = vst.msk [vmem:[#allocation2 + $0x48] sm:$0xff] %vm859_vm9, %v844_v53  ;;  %860 = vst.msk [vmem:[#allocation2 + $0x40] sm:$0xff] %vm859_vm9, %v842_v54 }
 0x2af   : > { %864 = vst.msk [vmem:[#allocation2 + $0x58] sm:$0xff] %vm862_vm10, %v844_v53  ;;  %863 = vst.msk [vmem:[#allocation2 + $0x50] sm:$0xff] %vm862_vm10, %v842_v54 }
 0x2b0   : > { %867 = vst.msk [vmem:[#allocation2 + $0x68] sm:$0xff] %vm865_vm11, %v844_v53  ;;  %866 = vst.msk [vmem:[#allocation2 + $0x60] sm:$0xff] %vm865_vm11, %v842_v54 }
 0x2b1   : > { %870 = vst.msk [vmem:[#allocation2 + $0x78] sm:$0xff] %vm868_vm12, %v844_v53  ;;  %869 = vst.msk [vmem:[#allocation2 + $0x70] sm:$0xff] %vm868_vm12, %v842_v54  ;;  %v872_v55 = vld [vmem:[#allocation2 + $0x8] sm:$0xff] }
 0x2b2   : > { %848 = vst.msk [vmem:[#allocation2] sm:$0xff] %vm847_vm5, %v842_v54  ;;  %v873_v58 = vld [vmem:[#allocation2 + $0x10] sm:$0xff]  ;;  %v874_v59 = vld [vmem:[#allocation2 + $0x18] sm:$0xff] }
 0x2b3   : > { %v7111_v61 = vpack.c.bf16 %v874_v59, %v873_v58  ;;  %v875_v62 = vld [vmem:[#allocation2 + $0x20] sm:$0xff]  ;;  %v876_v63 = vld [vmem:[#allocation2 + $0x28] sm:$0xff] }
 0x2b4   : > { %v7117_v0 = vpack.c.bf16 %v876_v63, %v875_v62  ;;  %v877_v3 = vld [vmem:[#allocation2 + $0x30] sm:$0xff]  ;;  %v878_v4 = vld [vmem:[#allocation2 + $0x38] sm:$0xff] }
 0x2b5   : > { %v7123_v5 = vpack.c.bf16 %v878_v4, %v877_v3  ;;  %v879_v6 = vld [vmem:[#allocation2 + $0x40] sm:$0xff]  ;;  %v880_v7 = vld [vmem:[#allocation2 + $0x48] sm:$0xff] }
 0x2b6   : > { %v7129_v8 = vpack.c.bf16 %v880_v7, %v879_v6  ;;  %v881_v9 = vld [vmem:[#allocation2 + $0x50] sm:$0xff]  ;;  %v882_v10 = vld [vmem:[#allocation2 + $0x58] sm:$0xff] }
 0x2b7   : > { %v7135_v11 = vpack.c.bf16 %v882_v10, %v881_v9  ;;  %v883_v12 = vld [vmem:[#allocation2 + $0x60] sm:$0xff]  ;;  %v884_v13 = vld [vmem:[#allocation2 + $0x68] sm:$0xff] }
 0x2b8   : > { %v7141_v14 = vpack.c.bf16 %v884_v13, %v883_v12  ;;  %v885_v15 = vld [vmem:[#allocation2 + $0x70] sm:$0xff]  ;;  %v886_v16 = vld [vmem:[#allocation2 + $0x78] sm:$0xff] }
 0x2b9   : > { %v871_v57 = vld [vmem:[#allocation2] sm:$0xff]  ;;  %v7147_v17 = vpack.c.bf16 %v886_v16, %v885_v15 }
 0x2ba   : > { %v7105_v60 = vpack.c.bf16 %v872_v55, %v871_v57 }
 0x2bc   : > { %7107 = vmatprep.subr.msk.bf16.mxu1 %vm8357_vm13, %v7105_v60 }
 0x2bd   : > { %7110 = vmatpush3.bf16.xpose.msk.msra.mxu1 %vm8357_vm13, %v7105_v60 }
 0x2be   : > { %7113 = vmatprep.subr.msk.bf16.mxu1 %vm8357_vm13, %v7111_v61 }
 0x2c5   : > { %7116 = vmatpush3.bf16.xpose.msk.msra.mxu1 %vm8357_vm13, %v7111_v61 }
 0x2c6   : > { %7119 = vmatprep.subr.msk.bf16.mxu1 %vm8357_vm13, %v7117_v0 }
 0x2cd   : > { %7122 = vmatpush3.bf16.xpose.msk.msra.mxu1 %vm8357_vm13, %v7117_v0 }
 0x2ce   : > { %7125 = vmatprep.subr.msk.bf16.mxu1 %vm8357_vm13, %v7123_v5 }
 0x2d5   : > { %7128 = vmatpush3.bf16.xpose.msk.msra.mxu1 %vm8357_vm13, %v7123_v5 }
 0x2d6   : > { %7131 = vmatprep.subr.msk.bf16.mxu1 %vm8357_vm13, %v7129_v8 }
 0x2dd   : > { %7134 = vmatpush3.bf16.xpose.msk.msra.mxu1 %vm8357_vm13, %v7129_v8 }
 0x2de   : > { %7137 = vmatprep.subr.msk.bf16.mxu1 %vm8357_vm13, %v7135_v11 }
 0x2e5   : > { %7140 = vmatpush3.bf16.xpose.msk.msra.mxu1 %vm8357_vm13, %v7135_v11 }
 0x2e6   : > { %7143 = vmatprep.subr.msk.bf16.mxu1 %vm8357_vm13, %v7141_v14 }
 0x2ed   : > { %7146 = vmatpush3.bf16.xpose.msk.msra.mxu1 %vm8357_vm13, %v7141_v14 }
 0x2ee   : > { %7149 = vmatprep.subr.msk.bf16.mxu1 %vm8357_vm13, %v7147_v17 }
 0x2f5   : > { %7152 = vmatpush3.bf16.xpose.msk.msra.mxu1 %vm8357_vm13, %v7147_v17 }
 0x2fc   : > { %6271 = vmatmul.mubr.msk.f32.vlgmr.msra.gmra.mrb[0].mxu1 %vm655_vm0, %v8329_v50 }
 0x3cf   : > { %v6272_v32 = vpop.f32.mrb[0].mxu1 }
 0x3d0   : > { %v1013_v33 = vadd.f32 %v6272_v32, %v8442_v30  ;;  %v1007_v34 = vpop.f32.mrb[1].mxu1 }
 0x3d1   : > { %v1008_v35 = vadd.f32 %v1007_v34, %v8445_v31  ;;  %v1236_v34 = vld [vmem:[%s9710_s7 + $0x10] sm:$0xff] }
 0x3d2   : > { %1018 = vmax.xlane.f32.xlu0 %v1013_v33 }
 0x3d3   : > { %1016 = vmax.xlane.f32.xlu1 %v1008_v35 }
 0x3e4   : > { %1123 = vrot.lane.b32.xlu1 %v8329_v50, %s8107_s3 }
 0x3e8   : > { %1121 = vrot.lane.b32.xlu0 %v8331_v52, %s8107_s3 }
 0x45f   : > { %v1019_v49 = vpop.xlane.xlu0 %1018 }
 0x460   : > { %v1021_v50 = vsub.f32 %v1013_v33, %v1019_v49  ;;  %v1017_v51 = vpop.xlane.xlu1 %1016 }
 0x461   : > { %v1020_v52 = vsub.f32 %v1008_v35, %v1017_v51  ;;  %v1237_v35 = vld [vmem:[%s9710_s7 + $0x18] sm:$0xff] }
 0x462   : > { %v1024_v53 = vmul.f32 1.442695, %v1021_v50  ;;  %v7221_v40 = vpack.c.bf16 %v1237_v35, %v1236_v34 }
 0x463   : > { %v1022_v54 = vmul.f32 1.442695, %v1020_v52  ;;  %v1122_v55 = vpop.permute.xlu0 %1121 }
 0x464   : > { %1127 = vst.msk [vmem:[#allocation3] sm:$0xff] %vm847_vm5, %v1122_v55  ;;  %v1124_v57 = vpop.permute.xlu1 %1123 }
 0x465   : > { %1129 = vst.msk [vmem:[#allocation3 + $0x10] sm:$0xff] %vm850_vm6, %v1122_v55  ;;  %7959 = vpow2.f32 %v1022_v54  ;;  %1130 = vst.msk [vmem:[#allocation3 + $0x18] sm:$0xff] %vm850_vm6, %v1124_v57 }
 0x466   : > { %1131 = vst.msk [vmem:[#allocation3 + $0x20] sm:$0xff] %vm853_vm7, %v1122_v55  ;;  %1132 = vst.msk [vmem:[#allocation3 + $0x28] sm:$0xff] %vm853_vm7, %v1124_v57  ;;  %7961 = vpow2.f32 %v1024_v53 }
 0x467   : > { %1133 = vst.msk [vmem:[#allocation3 + $0x30] sm:$0xff] %vm856_vm8, %v1122_v55  ;;  %1134 = vst.msk [vmem:[#allocation3 + $0x38] sm:$0xff] %vm856_vm8, %v1124_v57 }
 0x468   : > { %1135 = vst.msk [vmem:[#allocation3 + $0x40] sm:$0xff] %vm859_vm9, %v1122_v55  ;;  %1136 = vst.msk [vmem:[#allocation3 + $0x48] sm:$0xff] %vm859_vm9, %v1124_v57 }
 0x469   : > { %1137 = vst.msk [vmem:[#allocation3 + $0x50] sm:$0xff] %vm862_vm10, %v1122_v55  ;;  %1138 = vst.msk [vmem:[#allocation3 + $0x58] sm:$0xff] %vm862_vm10, %v1124_v57 }
 0x46a   : > { %1139 = vst.msk [vmem:[#allocation3 + $0x60] sm:$0xff] %vm865_vm11, %v1122_v55  ;;  %1140 = vst.msk [vmem:[#allocation3 + $0x68] sm:$0xff] %vm865_vm11, %v1124_v57 }
 0x46b   : > { %1141 = vst.msk [vmem:[#allocation3 + $0x70] sm:$0xff] %vm868_vm12, %v1122_v55  ;;  %1142 = vst.msk [vmem:[#allocation3 + $0x78] sm:$0xff] %vm868_vm12, %v1124_v57  ;;  %v1143_v58 = vld [vmem:[#allocation3] sm:$0xff] }
 0x46c   : > { %1128 = vst.msk [vmem:[#allocation3 + $0x8] sm:$0xff] %vm847_vm5, %v1124_v57  ;;  %v1145_v61 = vld [vmem:[#allocation3 + $0x10] sm:$0xff]  ;;  %v1146_v62 = vld [vmem:[#allocation3 + $0x18] sm:$0xff] }
 0x46d   : > { %v7189_v3 = vpack.c.bf16 %v1146_v62, %v1145_v61  ;;  %v1147_v4 = vld [vmem:[#allocation3 + $0x20] sm:$0xff]  ;;  %v1148_v5 = vld [vmem:[#allocation3 + $0x28] sm:$0xff] }
 0x46e   : > { %v7193_v6 = vpack.c.bf16 %v1148_v5, %v1147_v4  ;;  %v1149_v7 = vld [vmem:[#allocation3 + $0x30] sm:$0xff]  ;;  %v1150_v8 = vld [vmem:[#allocation3 + $0x38] sm:$0xff]  ;;  %v1387_v4 = vld [vmem:[%s9714_s11 + $0x8] sm:$0xff] }
 0x46f   : > { %v7960_v63 = vpop.eup %7959  ;;  %v7197_v9 = vpack.c.bf16 %v1150_v8, %v1149_v7  ;;  %v1151_v10 = vld [vmem:[#allocation3 + $0x40] sm:$0xff]  ;;  %v1152_v11 = vld [vmem:[#allocation3 + $0x48] sm:$0xff]  ;;  %v1388_v5 = vld [vmem:[%s9714_s11 + $0x10] sm:$0xff] }
 0x470   : > { %v7962_v0 = vpop.eup %7961  ;;  %6305 = vmatprep.mubr.f32.mxu0 %v7960_v63  ;;  %v7201_v12 = vpack.c.bf16 %v1152_v11, %v1151_v10  ;;  %v1153_v13 = vld [vmem:[#allocation3 + $0x50] sm:$0xff]  ;;  %v1154_v14 = vld [vmem:[#allocation3 + $0x58] sm:$0xff] }
 0x471   : > { %6306 = vmatmul.mubr.f32.vlgmr.msra.gmra.mrb[2].mxu0 %v7962_v0  ;;  %v7205_v15 = vpack.c.bf16 %v1154_v14, %v1153_v13  ;;  %v1155_v16 = vld [vmem:[#allocation3 + $0x60] sm:$0xff]  ;;  %v1156_v17 = vld [vmem:[#allocation3 + $0x68] sm:$0xff]  ;;  %v1389_v7 = vld [vmem:[%s9714_s11 + $0x18] sm:$0xff] }
 0x472   : > { %v7209_v18 = vpack.c.bf16 %v1156_v17, %v1155_v16  ;;  %v1157_v19 = vld [vmem:[#allocation3 + $0x70] sm:$0xff]  ;;  %v1158_v20 = vld [vmem:[#allocation3 + $0x78] sm:$0xff]  ;;  %v7229_v8 = vpack.c.bf16 %v1389_v7, %v1388_v5 }
 0x473   : > { %v1144_v59 = vld [vmem:[#allocation3 + $0x8] sm:$0xff]  ;;  %v7213_v22 = vpack.c.bf16 %v1158_v20, %v1157_v19  ;;  %v1511_v7 = vld [vmem:[%s9716_s13 + $0x78] sm:$0xff] }
 0x474   : > { %v7185_v60 = vpack.c.bf16 %v1144_v59, %v1143_v58 }
 0x476   : > { %7186 = vmatprep.subr.bf16.mxu0 %v7185_v60 }
 0x477   : > { %7188 = vmatpush3.bf16.msra.mxu0 %v7185_v60 }
 0x478   : > { %7190 = vmatprep.subr.bf16.mxu0 %v7189_v3 }
 0x47b   : > { %7192 = vmatpush3.bf16.msra.mxu0 %v7189_v3  ;;  %v1386_v3 = vld [vmem:[%s9714_s11] sm:$0xff] }
 0x47c   : > { %7194 = vmatprep.subr.bf16.mxu0 %v7193_v6 }
 0x47f   : > { %7196 = vmatpush3.bf16.msra.mxu0 %v7193_v6  ;;  %v7225_v6 = vpack.c.bf16 %v1387_v4, %v1386_v3  ;;  %v1508_v3 = vld [vmem:[%s9716_s13 + $0x60] sm:$0xff]  ;;  %v1509_v4 = vld [vmem:[%s9716_s13 + $0x68] sm:$0xff] }
 0x480   : > { %7198 = vmatprep.subr.bf16.mxu0 %v7197_v9  ;;  %v7257_v5 = vpack.c.bf16 %v1509_v4, %v1508_v3 }
 0x483   : > { %7200 = vmatpush3.bf16.msra.mxu0 %v7197_v9 }
 0x484   : > { %7202 = vmatprep.subr.bf16.mxu0 %v7201_v12 }
 0x487   : > { %7204 = vmatpush3.bf16.msra.mxu0 %v7201_v12 }
 0x488   : > { %7206 = vmatprep.subr.bf16.mxu0 %v7205_v15 }
 0x48b   : > { %7208 = vmatpush3.bf16.msra.mxu0 %v7205_v15 }
 0x48c   : > { %7210 = vmatprep.subr.bf16.mxu0 %v7209_v18 }
 0x48f   : > { %7212 = vmatpush3.bf16.msra.mxu0 %v7209_v18 }
 0x490   : > { %7214 = vmatprep.subr.bf16.mxu0 %v7213_v22 }
 0x493   : > { %7216 = vmatpush3.bf16.msra.mxu0 %v7213_v22 }
 0x494   : > { %7218 = vmatprep.subr.bf16.mxu0 %v7217_v27 }
 0x544   : > { %v6307_v28 = vpop.f32.mrb[2].mxu0 }
 0x545   : > { %7963 = vrcp.f32 %v6307_v28  ;;  %v1108_v32 = vpop.f32.mrb[3].mxu0 }
 0x546   : > { %7965 = vrcp.f32 %v1108_v32  ;;  %v5490_v32 = vld [vmem:[%s9718_s15] ss:$0 sm:$0xff] }
 0x54f   : > { %v7964_v33 = vpop.eup %7963 }
 0x550   : > { %v7966_v36 = vpop.eup %7965  ;;  %v1120_v39 = vmul.f32 %v7964_v33, %v7962_v0 }
 0x551   : > { %v1119_v37 = vmul.f32 %v7966_v36, %v7960_v63  ;;  %v5491_v36 = vld [vmem:[%s9719_s16] ss:$0 sm:$0xff] }
 0x553   : > { %6340 = vmatprep.mubr.f32.mxu0 %v1119_v37 }
 0x554   : > { %6341 = vmatmul.mubr.f32.vlgmr.msra.gmra.mrb[4].mxu0 %v1120_v39 }
 0x555   : > { %7220 = vmatpush3.bf16.msra.mxu0 %v7217_v27 }
 0x556   : > { %7222 = vmatprep.subr.bf16.mxu0 %v7221_v40 }
 0x559   : > { %7224 = vmatpush3.bf16.msra.mxu0 %v7221_v40 }
 0x55a   : > { %7226 = vmatprep.subr.bf16.mxu0 %v7225_v6 }
 0x627   : > { %v6342_v41 = vpop.f32.mrb[4].mxu0 }
 0x628   : > { %v1225_v43 = vpop.f32.mrb[5].mxu0 }
 0x629   : > { %6351 = vmatprep.mubr.msk.f32.mxu0 %vm655_vm0, %v1225_v43  ;;  %v1496_v43 = vld [vmem:[%s9716_s13] sm:$0xff] }
 0x62a   : > { %6352 = vmatmul.mubr.msk.f32.vlgmr.msra.gmra.mrb[6].mxu0 %vm655_vm0, %v6342_v41 }
 0x62b   : > { %7228 = vmatpush3.bf16.msra.mxu0 %v7225_v6  ;;  %v1510_v6 = vld [vmem:[%s9716_s13 + $0x70] sm:$0xff] }
 0x62c   : > { %7230 = vmatprep.subr.bf16.mxu0 %v7229_v8 }
 0x62f   : > { %7232 = vmatpush3.bf16.msra.mxu0 %v7229_v8  ;;  %v7261_v8 = vpack.c.bf16 %v1511_v7, %v1510_v6 }
 0x6fd   : > { %v6353_v46 = vpop.f32.mrb[6].mxu0 }
 0x6fe   : > { %v1323_v49 = vadd.f32 %v6353_v46, %v5487_v45  ;;  %v1317_v50 = vpop.f32.mrb[7].mxu0 }
 0x6ff   : > { %v1318_v51 = vadd.f32 %v5487_v45, %v1317_v50  ;;  %v1497_v45 = vld [vmem:[%s9716_s13 + $0x8] sm:$0xff]  ;;  %v1499_v50 = vld [vmem:[%s9716_s13 + $0x18] sm:$0xff] }
 0x700   : > { %v8527_v52 = vadd.f32 %v1323_v49, %v8232_v2  ;;  %v7233_v46 = vpack.c.bf16 %v1497_v45, %v1496_v43  ;;  %v1498_v49 = vld [vmem:[%s9716_s13 + $0x10] sm:$0xff] }
 0x701   : > { %v8530_v53 = vadd.f32 %v1318_v51, %v8230_v1  ;;  %v7237_v51 = vpack.c.bf16 %v1499_v50, %v1498_v49 }
 0x702   : > { %v1333_v54 = vsel %vm655_vm0, %v8527_v52, 0.0  ;;  %7234 = vmatprep.subr.bf16.mxu1 %v7233_v46 }
 0x703   : > { %1334 = vadd.xlane.f32.xlu0 %v1333_v54  ;;  %v1330_v55 = vsel %vm655_vm0, %v8530_v53, 0.0  ;;  %7236 = vmatpush3.bf16.msra.mxu1 %v7233_v46  ;;  %v1500_v54 = vld [vmem:[%s9716_s13 + $0x20] sm:$0xff] }
 0x704   : > { %1331 = vadd.xlane.f32.xlu1 %v1330_v55  ;;  %7238 = vmatprep.subr.bf16.mxu1 %v7237_v51  ;;  %v1501_v55 = vld [vmem:[%s9716_s13 + $0x28] sm:$0xff] }
 0x707   : > { %7240 = vmatpush3.bf16.msra.mxu1 %v7237_v51 }
 0x790   : > { %v1335_v57 = vpop.xlane.xlu0 %1334 }
 0x791   : > { %v1337_v58 = vmul.f32 0.03125, %v1335_v57  ;;  %v1332_v59 = vpop.xlane.xlu1 %1331  ;;  %v7241_v57 = vpack.c.bf16 %v1501_v55, %v1500_v54  ;;  %v5500_v54 = vld [vmem:[%s9708_s5 + $0x20] sm:$0xff]  ;;  %v5501_v55 = vld [vmem:[%s9708_s5 + $0x28] sm:$0xff] }
 0x792   : > { %v1336_v60 = vmul.f32 0.03125, %v1332_v59  ;;  %v1503_v59 = vld [vmem:[%s9716_s13 + $0x38] sm:$0xff] }
 0x793   : > { %v1339_v61 = vsub.f32 %v8527_v52, %v1337_v58  ;;  %7242 = vmatprep.subr.bf16.mxu1 %v7241_v57  ;;  %v1502_v58 = vld [vmem:[%s9716_s13 + $0x30] sm:$0xff] }
 0x794   : > { %v1338_v2 = vsub.f32 %v8530_v53, %v1336_v60  ;;  %v1504_v60 = vld [vmem:[%s9716_s13 + $0x40] sm:$0xff]  ;;  %7244 = vmatpush3.bf16.msra.mxu1 %v7241_v57  ;;  %v5502_v57 = vld [vmem:[%s9708_s5 + $0x30] sm:$0xff] }
 0x795   : > { %v1341_v62 = vmul.f32 %v1339_v61, %v1339_v61 }
 0x796   : > { %v1340_v63 = vmul.f32 %v1338_v2, %v1338_v2 }
 0x797   : > { %v1345_v1 = vsel %vm655_vm0, %v1341_v62, 0.0 }
 0x798   : > { %1346 = vadd.xlane.f32.xlu1 %v1345_v1  ;;  %v1342_v0 = vsel %vm655_vm0, %v1340_v63, 0.0  ;;  %v1506_v63 = vld [vmem:[%s9716_s13 + $0x50] sm:$0xff]  ;;  %v1507_v1 = vld [vmem:[%s9716_s13 + $0x58] sm:$0xff] }
 0x799   : > { %1343 = vadd.xlane.f32.xlu0 %v1342_v0  ;;  %v7253_v0 = vpack.c.bf16 %v1507_v1, %v1506_v63 }
 0x825   : > { %v1347_v9 = vpop.xlane.xlu1 %1346 }
 0x826   : > { %v1349_v10 = vmul.f32 0.032258064, %v1347_v9  ;;  %v1344_v11 = vpop.xlane.xlu0 %1343  ;;  %v5492_v9 = vld [vmem:[%s9715_s12] ss:$0 sm:$0xff] }
 0x827   : > { %v1348_v12 = vmul.f32 0.032258064, %v1344_v11 }
 0x828   : > { %7967 = vrsqrt.f32 %v1349_v10  ;;  %vm1359_vm14 = vcmp.eq.f32.partialorder %v1349_v10, inf  ;;  %v1362_v16 = vand.u32 2147483648, %v1349_v10  ;;  %vm1361_vm15 = vcmp.eq.f32.partialorder %v1349_v10, 0.0 }
 0x829   : > { %7969 = vrsqrt.f32 %v1348_v12  ;;  %vm1352_vm1 = vcmp.eq.f32.partialorder %v1348_v12, inf  ;;  %v1355_v19 = vand.u32 2147483648, %v1348_v12  ;;  %vm1354_vm2 = vcmp.eq.f32.partialorder %v1348_v12, 0.0 }
 0x832   : > { %v7968_v13 = vpop.eup %7967 }
 0x833   : > { %v7970_v14 = vpop.eup %7969  ;;  %v1358_v15 = vmul.f32 %v7968_v13, %v1349_v10 }
 0x834   : > { %v1351_v17 = vmul.f32 %v7970_v14, %v1348_v12 }
 0x835   : > { %v1360_v18 = vsel %vm1359_vm14, %v1349_v10, %v1358_v15 }
 0x836   : > { %v1363_v20 = vsel %vm1361_vm15, %v1362_v16, %v1360_v18  ;;  %v1353_v22 = vsel %vm1352_vm1, %v1348_v12, %v1351_v17 }
 0x837   : > { %v1365_v24 = vadd.f32 1e-06, %v1363_v20  ;;  %v1356_v25 = vsel %vm1354_vm2, %v1355_v19, %v1353_v22 }
 0x838   : > { %v1364_v27 = vadd.f32 1e-06, %v1356_v25 }
 0x839   : > { %7971 = vrcp.f32 %v1365_v24 }
 0x83a   : > { %7973 = vrcp.f32 %v1364_v27 }
 0x843   : > { %v7972_v28 = vpop.eup %7971 }
 0x844   : > { %v7974_v33 = vpop.eup %7973  ;;  %v1369_v34 = vmul.f32 %v7972_v28, %v1339_v61  ;;  %v7245_v61 = vpack.c.bf16 %v1503_v59, %v1502_v58  ;;  %v7265_v58 = vpack.c.bf16 %v5501_v55, %v5500_v54  ;;  %v5503_v59 = vld [vmem:[%s9708_s5 + $0x38] sm:$0xff] }
 0x845   : > { %v1368_v35 = vmul.f32 %v7974_v33, %v1338_v2  ;;  %v1505_v2 = vld [vmem:[%s9716_s13 + $0x48] sm:$0xff] }
 0x846   : > { %v1377_v37 = vmul.f32 %v5490_v32, %v1369_v34  ;;  %v7249_v62 = vpack.c.bf16 %v1505_v2, %v1504_v60  ;;  %7246 = vmatprep.subr.bf16.mxu1 %v7245_v61  ;;  %v7269_v60 = vpack.c.bf16 %v5503_v59, %v5502_v57  ;;  %7266 = vmatprep.subr.bf16.mxu0 %v7265_v58 }
 0x847   : > { %v1376_v39 = vmul.f32 %v5490_v32, %v1368_v35  ;;  %7248 = vmatpush3.bf16.msra.mxu1 %v7245_v61 }
 0x848   : > { %v1385_v41 = vadd.f32 %v5491_v36, %v1377_v37  ;;  %7250 = vmatprep.subr.bf16.mxu1 %v7249_v62 }
 0x849   : > { %v1384_v40 = vadd.f32 %v5491_v36, %v1376_v39 }
 0x84b   : > { %6362 = vmatprep.mubr.msk.f32.mxu0 %vm655_vm0, %v1384_v40  ;;  %7252 = vmatpush3.bf16.msra.mxu1 %v7249_v62 }
 0x84c   : > { %6363 = vmatmul.mubr.msk.f32.vlgmr.msra.gmra.mrb[8].mxu0 %vm655_vm0, %v1385_v41  ;;  %7254 = vmatprep.subr.bf16.mxu1 %v7253_v0 }
 0x84d   : > { %7268 = vmatpush3.bf16.msra.mxu0 %v7265_v58 }
 0x84e   : > { %7270 = vmatprep.subr.bf16.mxu0 %v7269_v60 }
 0x84f   : > { %7256 = vmatpush3.bf16.msra.mxu1 %v7253_v0 }
 0x850   : > { %7258 = vmatprep.subr.bf16.mxu1 %v7257_v5 }
 0x851   : > { %7272 = vmatpush3.bf16.msra.mxu0 %v7269_v60 }
 0x853   : > { %7260 = vmatpush3.bf16.msra.mxu1 %v7257_v5 }
 0x854   : > { %7262 = vmatprep.subr.bf16.mxu1 %v7261_v8 }
 0x857   : > { %7264 = vmatpush3.bf16.msra.mxu1 %v7261_v8 }
 0x858   : > { %7322 = vmatprep.subr.bf16.mxu1 %v8404_v21 }
 0x91f   : > { %v6364_v10 = vpop.f32.mrb[8].mxu0 }
 0x920   : > { %v1475_v11 = vadd.f32 %v6364_v10, %v5492_v9  ;;  %v1469_v12 = vpop.f32.mrb[9].mxu0 }
 0x921   : > { %v1470_v13 = vadd.f32 %v5492_v9, %v1469_v12 }
 0x922   : > { %v1479_v14 = vmul.f32 %v1475_v11, %v1475_v11 }
 0x923   : > { %v1478_v15 = vmul.f32 %v1470_v13, %v1470_v13 }
 0x924   : > { %v1481_v16 = vmul.f32 %v1479_v14, %v1475_v11  ;;  %v5498_v14 = vld [vmem:[%s9712_s9 + $0x1] ss:$0 sm:$0xff] }
 0x925   : > { %v1480_v17 = vmul.f32 %v1478_v15, %v1470_v13 }
 0x926   : > { %v1483_v18 = vmul.f32 0.044715, %v1481_v16 }
 0x927   : > { %v1482_v19 = vmul.f32 0.044715, %v1480_v17 }
 0x928   : > { %v1485_v20 = vadd.f32 %v1483_v18, %v1475_v11  ;;  %v5499_v18 = vld [vmem:[%s9713_s10 + $0x1] ss:$0 sm:$0xff] }
 0x929   : > { %v1484_v22 = vadd.f32 %v1482_v19, %v1470_v13 }
 0x92a   : > { %v1487_v24 = vmul.f32 0.7978846, %v1485_v20 }
 0x92b   : > { %v1486_v25 = vmul.f32 0.7978846, %v1484_v22 }
 0x92c   : > { %7975 = vtanh.f32 %v1487_v24 }
 0x92d   : > { %7977 = vtanh.f32 %v1486_v25  ;;  %v5505_v25 = vld [vmem:[%s9709_s6 + $0x1] ss:$0 sm:$0xff] }
 0x936   : > { %v7976_v27 = vpop.eup %7975 }
 0x937   : > { %v7978_v28 = vpop.eup %7977  ;;  %v1491_v32 = vadd.f32 1.0, %v7976_v27 }
 0x938   : > { %v1490_v33 = vadd.f32 1.0, %v7978_v28 }
 0x939   : > { %v1493_v34 = vmul.f32 0.5, %v1491_v32 }
 0x93a   : > { %v1492_v35 = vmul.f32 0.5, %v1490_v33 }
 0x93b   : > { %v1495_v37 = vmul.f32 %v1493_v34, %v1475_v11 }
 0x93c   : > { %v1494_v36 = vmul.f32 %v1492_v35, %v1470_v13 }
 0x93e   : > { %6397 = vmatprep.mubr.f32.mxu1 %v1494_v36 }
 0x93f   : > { %6398 = vmatmul.mubr.f32.vlgmr.msra.gmra.mrb[2].mxu1 %v1495_v37 }
 0x940   : > { %7324 = vmatpush3.bf16.msra.mxu1 %v8404_v21 }
 0x941   : > { %7326 = vmatprep.subr.bf16.mxu1 %v8409_v23 }
 0x944   : > { %7328 = vmatpush3.bf16.msra.mxu1 %v8409_v23  ;;  %v5495_v23 = vld [vmem:[%s9717_s14] ss:$0 sm:$0xff] }
 0x945   : > { %7330 = vmatprep.subr.bf16.mxu1 %v8420_v26 }
 0x948   : > { %7332 = vmatpush3.bf16.msra.mxu1 %v8420_v26 }
 0x949   : > { %7334 = vmatprep.subr.bf16.mxu1 %v8430_v29 }
 0x94c   : > { %7336 = vmatpush3.bf16.msra.mxu1 %v8430_v29 }
 0x94d   : > { %7338 = vmatprep.subr.bf16.mxu1 %v8455_v38 }
 0x950   : > { %7340 = vmatpush3.bf16.msra.mxu1 %v8455_v38 }
 0x951   : > { %7342 = vmatprep.subr.bf16.mxu1 %v8470_v42 }
 0x954   : > { %7344 = vmatpush3.bf16.msra.mxu1 %v8470_v42 }
 0x955   : > { %7346 = vmatprep.subr.bf16.mxu1 %v8475_v44 }
 0x958   : > { %7348 = vmatpush3.bf16.msra.mxu1 %v8475_v44 }
 0x959   : > { %7350 = vmatprep.subr.bf16.mxu1 %v8488_v48 }
 0x95c   : > { %7352 = vmatpush3.bf16.msra.mxu1 %v8488_v48 }
 0xa12   : > { %v6399_v21 = vpop.f32.mrb[2].mxu1 }
 0xa13   : > { %v1588_v26 = vadd.f32 %v6399_v21, %v8527_v52  ;;  %v1578_v29 = vpop.f32.mrb[3].mxu1 }
 0xa14   : > { %v1587_v38 = vadd.f32 %v1578_v29, %v8530_v53 }
 0xa15   : > { %v8632_v39 = vadd.f32 %v5495_v23, %v1588_v26 }
 0xa16   : > { %v8634_v42 = vadd.f32 %v5495_v23, %v1587_v38 }
 0xa17   : > { %v1605_v44 = vsel %vm655_vm0, %v8632_v39, 0.0 }
 0xa18   : > { %1606 = vadd.xlane.f32.xlu1 %v1605_v44  ;;  %v1602_v48 = vsel %vm655_vm0, %v8634_v42, 0.0 }
 0xa19   : > { %1603 = vadd.xlane.f32.xlu0 %v1602_v48 }
 0xaa5   : > { %v1607_v40 = vpop.xlane.xlu1 %1606 }
 0xaa6   : > { %v1609_v41 = vmul.f32 0.03125, %v1607_v40  ;;  %v1604_v43 = vpop.xlane.xlu0 %1603 }
 0xaa7   : > { %v1608_v45 = vmul.f32 0.03125, %v1604_v43 }
 0xaa8   : > { %v1611_v52 = vsub.f32 %v8632_v39, %v1609_v41 }
 0xaa9   : > { %v1610_v53 = vsub.f32 %v8634_v42, %v1608_v45 }
 0xaaa   : > { %v1613_v46 = vmul.f32 %v1611_v52, %v1611_v52 }
 0xaab   : > { %v1612_v49 = vmul.f32 %v1610_v53, %v1610_v53 }
 0xaac   : > { %v1617_v50 = vsel %vm655_vm0, %v1613_v46, 0.0 }
 0xaad   : > { %1618 = vadd.xlane.f32.xlu1 %v1617_v50  ;;  %v1614_v51 = vsel %vm655_vm0, %v1612_v49, 0.0 }
 0xaae   : > { %1615 = vadd.xlane.f32.xlu0 %v1614_v51 }
 0xb3a   : > { %v1619_v61 = vpop.xlane.xlu1 %1618 }
 0xb3b   : > { %v1621_v2 = vmul.f32 0.032258064, %v1619_v61  ;;  %v1616_v62 = vpop.xlane.xlu0 %1615 }
 0xb3c   : > { %v1620_v63 = vmul.f32 0.032258064, %v1616_v62 }
 0xb3d   : > { %7979 = vrsqrt.f32 %v1621_v2  ;;  %vm1631_vm3 = vcmp.eq.f32.partialorder %v1621_v2, inf  ;;  %v1634_v4 = vand.u32 2147483648, %v1621_v2  ;;  %vm1633_vm4 = vcmp.eq.f32.partialorder %v1621_v2, 0.0 }
 0xb3e   : > { %7981 = vrsqrt.f32 %v1620_v63  ;;  %vm1624_vm14 = vcmp.eq.f32.partialorder %v1620_v63, inf  ;;  %v1627_v7 = vand.u32 2147483648, %v1620_v63  ;;  %vm1626_vm15 = vcmp.eq.f32.partialorder %v1620_v63, 0.0 }
 0xb47   : > { %v7980_v1 = vpop.eup %7979 }
 0xb48   : > { %v7982_v0 = vpop.eup %7981  ;;  %v1630_v3 = vmul.f32 %v7980_v1, %v1621_v2 }
 0xb49   : > { %v1623_v5 = vmul.f32 %v7982_v0, %v1620_v63 }
 0xb4a   : > { %v1632_v6 = vsel %vm1631_vm3, %v1621_v2, %v1630_v3 }
 0xb4b   : > { %v1635_v8 = vsel %vm1633_vm4, %v1634_v4, %v1632_v6  ;;  %v1625_v9 = vsel %vm1624_vm14, %v1620_v63, %v1623_v5 }
 0xb4c   : > { %v1637_v10 = vadd.f32 1e-06, %v1635_v8  ;;  %v1628_v11 = vsel %vm1626_vm15, %v1627_v7, %v1625_v9 }
 0xb4d   : > { %v1636_v12 = vadd.f32 1e-06, %v1628_v11 }
 0xb4e   : > { %7983 = vrcp.f32 %v1637_v10 }
 0xb4f   : > { %7985 = vrcp.f32 %v1636_v12 }
 0xb58   : > { %v7984_v13 = vpop.eup %7983 }
 0xb59   : > { %v7986_v15 = vpop.eup %7985  ;;  %v1641_v16 = vmul.f32 %v7984_v13, %v1611_v52 }
 0xb5a   : > { %v1640_v17 = vmul.f32 %v7986_v15, %v1610_v53 }
 0xb5b   : > { %v1649_v19 = vmul.f32 %v5498_v14, %v1641_v16 }
 0xb5c   : > { %v1648_v20 = vmul.f32 %v5498_v14, %v1640_v17 }
 0xb5d   : > { %v1657_v24 = vadd.f32 %v5499_v18, %v1649_v19 }
 0xb5e   : > { %v1656_v22 = vadd.f32 %v5499_v18, %v1648_v20 }
 0xb60   : > { %6408 = vmatprep.mubr.msk.f32.mxu0 %vm655_vm0, %v1656_v22 }
 0xb61   : > { %6409 = vmatmul.mubr.msk.f32.vlgmr.msra.gmra.mrb[10].mxu0 %vm655_vm0, %v1657_v24 }
 0xc34   : > { %v6410_v27 = vpop.f32.mrb[10].mxu0 }
 0xc35   : > { %v8667_v28 = vadd.f32 %v6410_v27, %v5505_v25  ;;  %v1743_v32 = vpop.f32.mrb[11].mxu0 }
 0xc36   : > { %v8669_v33 = vadd.f32 %v5505_v25, %v1743_v32 }
 0xc37   : > { %1756 = vrot.lane.b32.xlu1 %v8667_v28, %s8106_s25 }
 0xc38   : > { %1754 = vrot.lane.b32.xlu0 %v8669_v33, %s8106_s25  ;;  %6443 = vmatprep.mubr.msk.f32.mxu0 %vm655_vm0, %v8669_v33 }
 0xca9   : > { %v1757_v34 = vpop.permute.xlu1 %1756 }
 0xcaa   : > { %1761 = vst.msk [vmem:[#allocation2 + $0x8] sm:$0xff] %vm847_vm5, %v1757_v34  ;;  %v1755_v35 = vpop.permute.xlu0 %1754 }
 0xcab   : > { %1763 = vst.msk [vmem:[#allocation2 + $0x18] sm:$0xff] %vm850_vm6, %v1757_v34  ;;  %1762 = vst.msk [vmem:[#allocation2 + $0x10] sm:$0xff] %vm850_vm6, %v1755_v35 }
 0xcac   : > { %1765 = vst.msk [vmem:[#allocation2 + $0x28] sm:$0xff] %vm853_vm7, %v1757_v34  ;;  %1764 = vst.msk [vmem:[#allocation2 + $0x20] sm:$0xff] %vm853_vm7, %v1755_v35 }
 0xcad   : > { %1767 = vst.msk [vmem:[#allocation2 + $0x38] sm:$0xff] %vm856_vm8, %v1757_v34  ;;  %1766 = vst.msk [vmem:[#allocation2 + $0x30] sm:$0xff] %vm856_vm8, %v1755_v35 }
 0xcae   : > { %1769 = vst.msk [vmem:[#allocation2 + $0x48] sm:$0xff] %vm859_vm9, %v1757_v34  ;;  %1768 = vst.msk [vmem:[#allocation2 + $0x40] sm:$0xff] %vm859_vm9, %v1755_v35 }
 0xcaf   : > { %1771 = vst.msk [vmem:[#allocation2 + $0x58] sm:$0xff] %vm862_vm10, %v1757_v34  ;;  %1770 = vst.msk [vmem:[#allocation2 + $0x50] sm:$0xff] %vm862_vm10, %v1755_v35 }
 0xcb0   : > { %1773 = vst.msk [vmem:[#allocation2 + $0x68] sm:$0xff] %vm865_vm11, %v1757_v34  ;;  %1772 = vst.msk [vmem:[#allocation2 + $0x60] sm:$0xff] %vm865_vm11, %v1755_v35 }
 0xcb1   : > { %1775 = vst.msk [vmem:[#allocation2 + $0x78] sm:$0xff] %vm868_vm12, %v1757_v34  ;;  %1774 = vst.msk [vmem:[#allocation2 + $0x70] sm:$0xff] %vm868_vm12, %v1755_v35  ;;  %v1777_v36 = vld [vmem:[#allocation2 + $0x8] sm:$0xff] }
 0xcb2   : > { %1760 = vst.msk [vmem:[#allocation2] sm:$0xff] %vm847_vm5, %v1755_v35  ;;  %v1778_v21 = vld [vmem:[#allocation2 + $0x10] sm:$0xff]  ;;  %v1779_v23 = vld [vmem:[#allocation2 + $0x18] sm:$0xff] }
 0xcb3   : > { %v7279_v29 = vpack.c.bf16 %v1779_v23, %v1778_v21  ;;  %v1780_v38 = vld [vmem:[#allocation2 + $0x20] sm:$0xff]  ;;  %v1781_v44 = vld [vmem:[#allocation2 + $0x28] sm:$0xff] }
 0xcb4   : > { %v7285_v48 = vpack.c.bf16 %v1781_v44, %v1780_v38  ;;  %v1782_v40 = vld [vmem:[#allocation2 + $0x30] sm:$0xff]  ;;  %v1783_v41 = vld [vmem:[#allocation2 + $0x38] sm:$0xff]  ;;  %v5526_v21 = vld [vmem:[%s9710_s7 + $0x20] sm:$0xff] }
 0xcb5   : > { %v7291_v43 = vpack.c.bf16 %v1783_v41, %v1782_v40  ;;  %v1784_v45 = vld [vmem:[#allocation2 + $0x40] sm:$0xff]  ;;  %v1785_v52 = vld [vmem:[#allocation2 + $0x48] sm:$0xff]  ;;  %v5529_v38 = vld [vmem:[%s9710_s7 + $0x38] sm:$0xff] }
 0xcb6   : > { %v7297_v53 = vpack.c.bf16 %v1785_v52, %v1784_v45  ;;  %v1786_v46 = vld [vmem:[#allocation2 + $0x50] sm:$0xff]  ;;  %v1787_v49 = vld [vmem:[#allocation2 + $0x58] sm:$0xff]  ;;  %v5527_v23 = vld [vmem:[%s9710_s7 + $0x28] sm:$0xff] }
 0xcb7   : > { %v7303_v50 = vpack.c.bf16 %v1787_v49, %v1786_v46  ;;  %v1788_v51 = vld [vmem:[#allocation2 + $0x60] sm:$0xff]  ;;  %v1789_v54 = vld [vmem:[#allocation2 + $0x68] sm:$0xff] }
 0xcb8   : > { %v7309_v55 = vpack.c.bf16 %v1789_v54, %v1788_v51  ;;  %v1790_v57 = vld [vmem:[#allocation2 + $0x70] sm:$0xff]  ;;  %v1791_v58 = vld [vmem:[#allocation2 + $0x78] sm:$0xff]  ;;  %v5531_v49 = vld [vmem:[%s9711_s8 + $0x1] ss:$0 sm:$0xff] }
 0xcb9   : > { %v1776_v37 = vld [vmem:[#allocation2] sm:$0xff]  ;;  %v7315_v59 = vpack.c.bf16 %v1791_v58, %v1790_v57 }
 0xcba   : > { %v7273_v26 = vpack.c.bf16 %v1777_v36, %v1776_v37 }
 0xcbc   : > { %7275 = vmatprep.subr.msk.bf16.mxu0 %vm8357_vm13, %v7273_v26 }
 0xcbd   : > { %7278 = vmatpush3.bf16.xpose.msk.msra.mxu0 %vm8357_vm13, %v7273_v26  ;;  %v5528_v26 = vld [vmem:[%s9710_s7 + $0x30] sm:$0xff] }
 0xcbe   : > { %7281 = vmatprep.subr.msk.bf16.mxu0 %vm8357_vm13, %v7279_v29  ;;  %v7389_v44 = vpack.c.bf16 %v5529_v38, %v5528_v26  ;;  %v5547_v38 = vld [vmem:[%s9716_s13 + $0x88] sm:$0xff] }
 0xcc5   : > { %7284 = vmatpush3.bf16.xpose.msk.msra.mxu0 %vm8357_vm13, %v7279_v29  ;;  %v7385_v29 = vpack.c.bf16 %v5527_v23, %v5526_v21 }
 0xcc6   : > { %7287 = vmatprep.subr.msk.bf16.mxu0 %vm8357_vm13, %v7285_v48 }
 0xccd   : > { %7290 = vmatpush3.bf16.xpose.msk.msra.mxu0 %vm8357_vm13, %v7285_v48 }
 0xcce   : > { %7293 = vmatprep.subr.msk.bf16.mxu0 %vm8357_vm13, %v7291_v43 }
 0xcd5   : > { %7296 = vmatpush3.bf16.xpose.msk.msra.mxu0 %vm8357_vm13, %v7291_v43 }
 0xcd6   : > { %7299 = vmatprep.subr.msk.bf16.mxu0 %vm8357_vm13, %v7297_v53 }
 0xcdd   : > { %7302 = vmatpush3.bf16.xpose.msk.msra.mxu0 %vm8357_vm13, %v7297_v53 }
 0xcde   : > { %7305 = vmatprep.subr.msk.bf16.mxu0 %vm8357_vm13, %v7303_v50 }
 0xce5   : > { %7308 = vmatpush3.bf16.xpose.msk.msra.mxu0 %vm8357_vm13, %v7303_v50 }
 0xce6   : > { %7311 = vmatprep.subr.msk.bf16.mxu0 %vm8357_vm13, %v7309_v55 }
 0xced   : > { %7314 = vmatpush3.bf16.xpose.msk.msra.mxu0 %vm8357_vm13, %v7309_v55 }
 0xcee   : > { %7317 = vmatprep.subr.msk.bf16.mxu0 %vm8357_vm13, %v7315_v59 }
 0xcf5   : > { %7320 = vmatpush3.bf16.xpose.msk.msra.mxu0 %vm8357_vm13, %v7315_v59 }
 0xcf6   : > { %7386 = vmatprep.subr.bf16.mxu0 %v7385_v29 }
 0xcfc   : > { %6444 = vmatmul.mubr.msk.f32.vlgmr.msra.gmra.mrb[12].mxu0 %vm655_vm0, %v8667_v28 }
 0xcfd   : > { %7388 = vmatpush3.bf16.msra.mxu0 %v7385_v29  ;;  %v5546_v29 = vld [vmem:[%s9716_s13 + $0x80] sm:$0xff] }
 0xcfe   : > { %7390 = vmatprep.subr.bf16.mxu0 %v7389_v44 }
 0xd01   : > { %7392 = vmatpush3.bf16.msra.mxu0 %v7389_v44  ;;  %v7401_v44 = vpack.c.bf16 %v5547_v38, %v5546_v29 }
 0xdcf   : > { %v6445_v60 = vpop.f32.mrb[12].mxu0 }
 0xdd0   : > { %v1918_v61 = vadd.f32 %v6445_v60, %v8442_v30  ;;  %v1912_v2 = vpop.f32.mrb[13].mxu0 }
 0xdd1   : > { %v1913_v62 = vadd.f32 %v1912_v2, %v8445_v31 }
 0xdd2   : > { %1923 = vmax.xlane.f32.xlu0 %v1918_v61 }
 0xdd3   : > { %1921 = vmax.xlane.f32.xlu1 %v1913_v62 }
 0xde4   : > { %2028 = vrot.lane.b32.xlu1 %v8667_v28, %s8107_s3 }
 0xde8   : > { %2026 = vrot.lane.b32.xlu0 %v8669_v33, %s8107_s3 }
 0xe5f   : > { %v1924_v63 = vpop.xlane.xlu0 %1923 }
 0xe60   : > { %v1926_v1 = vsub.f32 %v1918_v61, %v1924_v63  ;;  %v1922_v0 = vpop.xlane.xlu1 %1921 }
 0xe61   : > { %v1925_v3 = vsub.f32 %v1913_v62, %v1922_v0 }
 0xe62   : > { %v1929_v4 = vmul.f32 1.442695, %v1926_v1 }
 0xe63   : > { %v1927_v5 = vmul.f32 1.442695, %v1925_v3  ;;  %v2027_v6 = vpop.permute.xlu0 %2026 }
 0xe64   : > { %2032 = vst.msk [vmem:[#allocation3] sm:$0xff] %vm847_vm5, %v2027_v6  ;;  %v2029_v30 = vpop.permute.xlu1 %2028 }
 0xe65   : > { %2034 = vst.msk [vmem:[#allocation3 + $0x10] sm:$0xff] %vm850_vm6, %v2027_v6  ;;  %7987 = vpow2.f32 %v1927_v5  ;;  %2035 = vst.msk [vmem:[#allocation3 + $0x18] sm:$0xff] %vm850_vm6, %v2029_v30  ;;  %v5538_v5 = vld [vmem:[%s9714_s11 + $0x20] sm:$0xff] }
 0xe66   : > { %2036 = vst.msk [vmem:[#allocation3 + $0x20] sm:$0xff] %vm853_vm7, %v2027_v6  ;;  %2037 = vst.msk [vmem:[#allocation3 + $0x28] sm:$0xff] %vm853_vm7, %v2029_v30  ;;  %7989 = vpow2.f32 %v1929_v4 }
 0xe67   : > { %2038 = vst.msk [vmem:[#allocation3 + $0x30] sm:$0xff] %vm856_vm8, %v2027_v6  ;;  %2039 = vst.msk [vmem:[#allocation3 + $0x38] sm:$0xff] %vm856_vm8, %v2029_v30 }
 0xe68   : > { %2040 = vst.msk [vmem:[#allocation3 + $0x40] sm:$0xff] %vm859_vm9, %v2027_v6  ;;  %2041 = vst.msk [vmem:[#allocation3 + $0x48] sm:$0xff] %vm859_vm9, %v2029_v30 }
 0xe69   : > { %2042 = vst.msk [vmem:[#allocation3 + $0x50] sm:$0xff] %vm862_vm10, %v2027_v6  ;;  %2043 = vst.msk [vmem:[#allocation3 + $0x58] sm:$0xff] %vm862_vm10, %v2029_v30 }
 0xe6a   : > { %2044 = vst.msk [vmem:[#allocation3 + $0x60] sm:$0xff] %vm865_vm11, %v2027_v6  ;;  %2045 = vst.msk [vmem:[#allocation3 + $0x68] sm:$0xff] %vm865_vm11, %v2029_v30 }
 0xe6b   : > { %2046 = vst.msk [vmem:[#allocation3 + $0x70] sm:$0xff] %vm868_vm12, %v2027_v6  ;;  %2047 = vst.msk [vmem:[#allocation3 + $0x78] sm:$0xff] %vm868_vm12, %v2029_v30  ;;  %v2048_v31 = vld [vmem:[#allocation3] sm:$0xff]  ;;  %v5539_v6 = vld [vmem:[%s9714_s11 + $0x28] sm:$0xff] }
 0xe6c   : > { %2033 = vst.msk [vmem:[#allocation3 + $0x8] sm:$0xff] %vm847_vm5, %v2029_v30  ;;  %v2050_v9 = vld [vmem:[#allocation3 + $0x10] sm:$0xff]  ;;  %v2051_v10 = vld [vmem:[#allocation3 + $0x18] sm:$0xff] }
 0xe6d   : > { %v7357_v13 = vpack.c.bf16 %v2051_v10, %v2050_v9  ;;  %v2052_v14 = vld [vmem:[#allocation3 + $0x20] sm:$0xff]  ;;  %v2053_v15 = vld [vmem:[#allocation3 + $0x28] sm:$0xff]  ;;  %v5540_v30 = vld [vmem:[%s9714_s11 + $0x30] sm:$0xff] }
 0xe6e   : > { %v7361_v16 = vpack.c.bf16 %v2053_v15, %v2052_v14  ;;  %v2054_v17 = vld [vmem:[#allocation3 + $0x30] sm:$0xff]  ;;  %v2055_v18 = vld [vmem:[#allocation3 + $0x38] sm:$0xff] }
 0xe6f   : > { %v7988_v11 = vpop.eup %7987  ;;  %v7365_v19 = vpack.c.bf16 %v2055_v18, %v2054_v17  ;;  %v2056_v20 = vld [vmem:[#allocation3 + $0x40] sm:$0xff]  ;;  %v2057_v22 = vld [vmem:[#allocation3 + $0x48] sm:$0xff] }
 0xe70   : > { %v7990_v12 = vpop.eup %7989  ;;  %6478 = vmatprep.mubr.f32.mxu1 %v7988_v11  ;;  %v7369_v24 = vpack.c.bf16 %v2057_v22, %v2056_v20  ;;  %v2058_v25 = vld [vmem:[#allocation3 + $0x50] sm:$0xff]  ;;  %v2059_v27 = vld [vmem:[#allocation3 + $0x58] sm:$0xff] }
 0xe71   : > { %6479 = vmatmul.mubr.f32.vlgmr.msra.gmra.mrb[4].mxu1 %v7990_v12  ;;  %v7373_v28 = vpack.c.bf16 %v2059_v27, %v2058_v25  ;;  %v2060_v32 = vld [vmem:[#allocation3 + $0x60] sm:$0xff]  ;;  %v2061_v33 = vld [vmem:[#allocation3 + $0x68] sm:$0xff] }
 0xe72   : > { %v7377_v34 = vpack.c.bf16 %v2061_v33, %v2060_v32  ;;  %v2062_v35 = vld [vmem:[#allocation3 + $0x70] sm:$0xff]  ;;  %v2063_v36 = vld [vmem:[#allocation3 + $0x78] sm:$0xff]  ;;  %v5536_v32 = vld [vmem:[%s9718_s15 + $0x1] ss:$0 sm:$0xff] }
 0xe73   : > { %v2049_v7 = vld [vmem:[#allocation3 + $0x8] sm:$0xff]  ;;  %v7381_v37 = vpack.c.bf16 %v2063_v36, %v2062_v35  ;;  %v5537_v36 = vld [vmem:[%s9719_s16 + $0x1] ss:$0 sm:$0xff] }
 0xe74   : > { %v7353_v8 = vpack.c.bf16 %v2049_v7, %v2048_v31  ;;  %v7393_v31 = vpack.c.bf16 %v5539_v6, %v5538_v5  ;;  %v5541_v7 = vld [vmem:[%s9714_s11 + $0x38] sm:$0xff] }
 0xe76   : > { %7354 = vmatprep.subr.bf16.mxu1 %v7353_v8  ;;  %7394 = vmatprep.subr.bf16.mxu0 %v7393_v31 }
 0xe77   : > { %7356 = vmatpush3.bf16.msra.mxu1 %v7353_v8  ;;  %v7397_v8 = vpack.c.bf16 %v5541_v7, %v5540_v30 }
 0xe78   : > { %7358 = vmatprep.subr.bf16.mxu1 %v7357_v13 }
 0xe7b   : > { %7360 = vmatpush3.bf16.msra.mxu1 %v7357_v13 }
 0xe7c   : > { %7362 = vmatprep.subr.bf16.mxu1 %v7361_v16 }
 0xe7f   : > { %7364 = vmatpush3.bf16.msra.mxu1 %v7361_v16 }
 0xe80   : > { %7366 = vmatprep.subr.bf16.mxu1 %v7365_v19 }
 0xe83   : > { %7368 = vmatpush3.bf16.msra.mxu1 %v7365_v19 }
 0xe84   : > { %7370 = vmatprep.subr.bf16.mxu1 %v7369_v24 }
 0xe87   : > { %7372 = vmatpush3.bf16.msra.mxu1 %v7369_v24 }
 0xe88   : > { %7374 = vmatprep.subr.bf16.mxu1 %v7373_v28 }
 0xe8b   : > { %7376 = vmatpush3.bf16.msra.mxu1 %v7373_v28 }
 0xe8c   : > { %7378 = vmatprep.subr.bf16.mxu1 %v7377_v34 }
 0xe8f   : > { %7380 = vmatpush3.bf16.msra.mxu1 %v7377_v34 }
 0xe90   : > { %7382 = vmatprep.subr.bf16.mxu1 %v7381_v37 }
 0xe93   : > { %7384 = vmatpush3.bf16.msra.mxu1 %v7381_v37 }
 0xf44   : > { %v6480_v48 = vpop.f32.mrb[4].mxu1 }
 0xf45   : > { %7991 = vrcp.f32 %v6480_v48  ;;  %v2013_v40 = vpop.f32.mrb[5].mxu1  ;;  %v5548_v48 = vld [vmem:[%s9716_s13 + $0x90] sm:$0xff] }
 0xf46   : > { %7993 = vrcp.f32 %v2013_v40  ;;  %v5549_v40 = vld [vmem:[%s9716_s13 + $0x98] sm:$0xff] }
 0xf4f   : > { %v7992_v41 = vpop.eup %7991 }
 0xf50   : > { %v7994_v43 = vpop.eup %7993  ;;  %v2025_v52 = vmul.f32 %v7992_v41, %v7990_v12  ;;  %v7405_v41 = vpack.c.bf16 %v5549_v40, %v5548_v48  ;;  %v5568_v40 = vld [vmem:[%s9708_s5 + $0x40] sm:$0xff] }
 0xf51   : > { %v2024_v45 = vmul.f32 %v7994_v43, %v7988_v11  ;;  %v5550_v43 = vld [vmem:[%s9716_s13 + $0xa0] sm:$0xff] }
 0xf53   : > { %6513 = vmatprep.mubr.f32.mxu1 %v2024_v45  ;;  %v5551_v45 = vld [vmem:[%s9716_s13 + $0xa8] sm:$0xff] }
 0xf54   : > { %6514 = vmatmul.mubr.f32.vlgmr.msra.gmra.mrb[6].mxu1 %v2025_v52  ;;  %v7409_v52 = vpack.c.bf16 %v5551_v45, %v5550_v43  ;;  %v5570_v43 = vld [vmem:[%s9708_s5 + $0x50] sm:$0xff] }
0x1027   : > { %v6515_v53 = vpop.f32.mrb[6].mxu1 }
0x1028   : > { %v2130_v46 = vpop.f32.mrb[7].mxu1 }
0x1029   : > { %6524 = vmatprep.mubr.msk.f32.mxu0 %vm655_vm0, %v2130_v46  ;;  %v5553_v46 = vld [vmem:[%s9716_s13 + $0xb8] sm:$0xff] }
0x102a   : > { %6525 = vmatmul.mubr.msk.f32.vlgmr.msra.gmra.mrb[14].mxu0 %vm655_vm0, %v6515_v53  ;;  %v5552_v53 = vld [vmem:[%s9716_s13 + $0xb0] sm:$0xff] }
0x102b   : > { %7396 = vmatpush3.bf16.msra.mxu0 %v7393_v31 }
0x102c   : > { %7398 = vmatprep.subr.bf16.mxu0 %v7397_v8 }
0x102f   : > { %7400 = vmatpush3.bf16.msra.mxu0 %v7397_v8 }
0x1030   : > { %7402 = vmatprep.subr.bf16.mxu0 %v7401_v44 }
0x10fd   : > { %v6526_v50 = vpop.f32.mrb[14].mxu0 }
0x10fe   : > { %v2230_v51 = vadd.f32 %v6526_v50, %v5531_v49  ;;  %v2224_v54 = vpop.f32.mrb[15].mxu0  ;;  %v7413_v50 = vpack.c.bf16 %v5553_v46, %v5552_v53 }
0x10ff   : > { %v2225_v55 = vadd.f32 %v5531_v49, %v2224_v54  ;;  %v5554_v49 = vld [vmem:[%s9716_s13 + $0xc0] sm:$0xff] }
0x1100   : > { %v8767_v57 = vadd.f32 %v2230_v51, %v8632_v39  ;;  %v5555_v51 = vld [vmem:[%s9716_s13 + $0xc8] sm:$0xff] }
0x1101   : > { %v8770_v58 = vadd.f32 %v2225_v55, %v8634_v42  ;;  %v7417_v54 = vpack.c.bf16 %v5555_v51, %v5554_v49  ;;  %v5556_v55 = vld [vmem:[%s9716_s13 + $0xd0] sm:$0xff] }
0x1102   : > { %v2242_v59 = vsel %vm655_vm0, %v8767_v57, 0.0 }
0x1103   : > { %2243 = vadd.xlane.f32.xlu0 %v2242_v59  ;;  %v2239_v60 = vsel %vm655_vm0, %v8770_v58, 0.0  ;;  %v5557_v59 = vld [vmem:[%s9716_s13 + $0xd8] sm:$0xff] }
0x1104   : > { %2240 = vadd.xlane.f32.xlu1 %v2239_v60  ;;  %v7421_v60 = vpack.c.bf16 %v5557_v59, %v5556_v55 }
0x1190   : > { %v2244_v61 = vpop.xlane.xlu0 %2243 }
0x1191   : > { %v2246_v2 = vmul.f32 0.03125, %v2244_v61  ;;  %v2241_v62 = vpop.xlane.xlu1 %2240  ;;  %v5558_v61 = vld [vmem:[%s9716_s13 + $0xe0] sm:$0xff] }
0x1192   : > { %v2245_v63 = vmul.f32 0.03125, %v2241_v62 }
0x1193   : > { %v2248_v1 = vsub.f32 %v8767_v57, %v2246_v2  ;;  %v5559_v2 = vld [vmem:[%s9716_s13 + $0xe8] sm:$0xff] }
0x1194   : > { %v2247_v39 = vsub.f32 %v8770_v58, %v2245_v63  ;;  %v7425_v62 = vpack.c.bf16 %v5559_v2, %v5558_v61  ;;  %v5560_v63 = vld [vmem:[%s9716_s13 + $0xf0] sm:$0xff] }
0x1195   : > { %v2250_v0 = vmul.f32 %v2248_v1, %v2248_v1 }
0x1196   : > { %v2249_v3 = vmul.f32 %v2247_v39, %v2247_v39 }
0x1197   : > { %v2254_v42 = vsel %vm655_vm0, %v2250_v0, 0.0  ;;  %v5543_v0 = vld [vmem:[%s9715_s12 + $0x1] ss:$0 sm:$0xff] }
0x1198   : > { %2255 = vadd.xlane.f32.xlu1 %v2254_v42  ;;  %v2251_v4 = vsel %vm655_vm0, %v2249_v3, 0.0 }
0x1199   : > { %2252 = vadd.xlane.f32.xlu0 %v2251_v4 }
0x1225   : > { %v2256_v9 = vpop.xlane.xlu1 %2255 }
0x1226   : > { %v2258_v10 = vmul.f32 0.032258064, %v2256_v9  ;;  %v2253_v11 = vpop.xlane.xlu0 %2252 }
0x1227   : > { %v2257_v12 = vmul.f32 0.032258064, %v2253_v11 }
0x1228   : > { %7995 = vrsqrt.f32 %v2258_v10  ;;  %vm2268_vm1 = vcmp.eq.f32.partialorder %v2258_v10, inf  ;;  %v2271_v16 = vand.u32 2147483648, %v2258_v10  ;;  %vm2270_vm2 = vcmp.eq.f32.partialorder %v2258_v10, 0.0 }
0x1229   : > { %7997 = vrsqrt.f32 %v2257_v12  ;;  %vm2261_vm3 = vcmp.eq.f32.partialorder %v2257_v12, inf  ;;  %v2264_v19 = vand.u32 2147483648, %v2257_v12  ;;  %vm2263_vm4 = vcmp.eq.f32.partialorder %v2257_v12, 0.0 }
0x1232   : > { %v7996_v13 = vpop.eup %7995 }
0x1233   : > { %v7998_v14 = vpop.eup %7997  ;;  %v2267_v15 = vmul.f32 %v7996_v13, %v2258_v10 }
0x1234   : > { %v2260_v17 = vmul.f32 %v7998_v14, %v2257_v12 }
0x1235   : > { %v2269_v18 = vsel %vm2268_vm1, %v2258_v10, %v2267_v15 }
0x1236   : > { %v2272_v20 = vsel %vm2270_vm2, %v2271_v16, %v2269_v18  ;;  %v2262_v22 = vsel %vm2261_vm3, %v2257_v12, %v2260_v17 }
0x1237   : > { %v2274_v24 = vadd.f32 1e-06, %v2272_v20  ;;  %v2265_v25 = vsel %vm2263_vm4, %v2264_v19, %v2262_v22 }
0x1238   : > { %v2273_v27 = vadd.f32 1e-06, %v2265_v25  ;;  %v5563_v25 = vld [vmem:[%s9717_s14 + $0x1] ss:$0 sm:$0xff] }
0x1239   : > { %7999 = vrcp.f32 %v2274_v24 }
0x123a   : > { %8001 = vrcp.f32 %v2273_v27 }
0x1243   : > { %v8000_v28 = vpop.eup %7999 }
0x1244   : > { %v8002_v33 = vpop.eup %8001  ;;  %v2278_v34 = vmul.f32 %v8000_v28, %v2248_v1  ;;  %v5561_v1 = vld [vmem:[%s9716_s13 + $0xf8] sm:$0xff] }
0x1245   : > { %v2277_v35 = vmul.f32 %v8002_v33, %v2247_v39  ;;  %v7429_v39 = vpack.c.bf16 %v5561_v1, %v5560_v63 }
0x1246   : > { %v2286_v37 = vmul.f32 %v5536_v32, %v2278_v34 }
0x1247   : > { %v2285_v21 = vmul.f32 %v5536_v32, %v2277_v35 }
0x1248   : > { %v2294_v26 = vadd.f32 %v5537_v36, %v2286_v37 }
0x1249   : > { %v2293_v23 = vadd.f32 %v5537_v36, %v2285_v21 }
0x124b   : > { %6535 = vmatprep.mubr.msk.f32.mxu0 %vm655_vm0, %v2293_v23 }
0x124c   : > { %6536 = vmatmul.mubr.msk.f32.vlgmr.msra.gmra.mrb[16].mxu0 %vm655_vm0, %v2294_v26 }
0x124d   : > { %7404 = vmatpush3.bf16.msra.mxu0 %v7401_v44 }
0x124e   : > { %7406 = vmatprep.subr.bf16.mxu0 %v7405_v41 }
0x1251   : > { %7408 = vmatpush3.bf16.msra.mxu0 %v7405_v41  ;;  %v5569_v41 = vld [vmem:[%s9708_s5 + $0x48] sm:$0xff] }
0x1252   : > { %7410 = vmatprep.subr.bf16.mxu0 %v7409_v52  ;;  %v7433_v45 = vpack.c.bf16 %v5569_v41, %v5568_v40 }
0x1254   : > { %7434 = vmatprep.subr.bf16.mxu1 %v7433_v45 }
0x1255   : > { %7412 = vmatpush3.bf16.msra.mxu0 %v7409_v52  ;;  %v5571_v52 = vld [vmem:[%s9708_s5 + $0x58] sm:$0xff]  ;;  %7436 = vmatpush3.bf16.msra.mxu1 %v7433_v45  ;;  %v2844_v45 = vld [vmem:[%s9707_s4] sm:$0xff] }
0x1256   : > { %7414 = vmatprep.subr.bf16.mxu0 %v7413_v50  ;;  %v7437_v53 = vpack.c.bf16 %v5571_v52, %v5570_v43  ;;  %v2845_v52 = vld [vmem:[%s9707_s4 + $0x8] sm:$0xff] }
0x1258   : > { %7438 = vmatprep.subr.bf16.mxu1 %v7437_v53 }
0x1259   : > { %7416 = vmatpush3.bf16.msra.mxu0 %v7413_v50  ;;  %7440 = vmatpush3.bf16.msra.mxu1 %v7437_v53  ;;  %v2846_v53 = vld [vmem:[%s9707_s4 + $0x10] sm:$0xff] }
0x125a   : > { %7418 = vmatprep.subr.bf16.mxu0 %v7417_v54 }
0x125d   : > { %7420 = vmatpush3.bf16.msra.mxu0 %v7417_v54 }
0x125e   : > { %7422 = vmatprep.subr.bf16.mxu0 %v7421_v60 }
0x1261   : > { %7424 = vmatpush3.bf16.msra.mxu0 %v7421_v60 }
0x1262   : > { %7426 = vmatprep.subr.bf16.mxu0 %v7425_v62 }
0x1265   : > { %7428 = vmatpush3.bf16.msra.mxu0 %v7425_v62 }
0x1266   : > { %7430 = vmatprep.subr.bf16.mxu0 %v7429_v39 }
0x1269   : > { %7432 = vmatpush3.bf16.msra.mxu0 %v7429_v39 }
0x131f   : > { %v6537_v3 = vpop.f32.mrb[16].mxu0 }
0x1320   : > { %v2386_v42 = vadd.f32 %v6537_v3, %v5543_v0  ;;  %v2380_v4 = vpop.f32.mrb[17].mxu0 }
0x1321   : > { %v2381_v5 = vadd.f32 %v5543_v0, %v2380_v4  ;;  %v5566_v4 = vld [vmem:[%s9712_s9 + $0x2] ss:$0 sm:$0xff] }
0x1322   : > { %v2390_v6 = vmul.f32 %v2386_v42, %v2386_v42 }
0x1323   : > { %v2389_v30 = vmul.f32 %v2381_v5, %v2381_v5 }
0x1324   : > { %v2392_v31 = vmul.f32 %v2390_v6, %v2386_v42 }
0x1325   : > { %v2391_v7 = vmul.f32 %v2389_v30, %v2381_v5 }
0x1326   : > { %v2394_v8 = vmul.f32 0.044715, %v2392_v31  ;;  %v5567_v31 = vld [vmem:[%s9713_s10 + $0x2] ss:$0 sm:$0xff] }
0x1327   : > { %v2393_v9 = vmul.f32 0.044715, %v2391_v7 }
0x1328   : > { %v2396_v10 = vadd.f32 %v2394_v8, %v2386_v42 }
0x1329   : > { %v2395_v11 = vadd.f32 %v2393_v9, %v2381_v5 }
0x132a   : > { %v2398_v12 = vmul.f32 0.7978846, %v2396_v10 }
0x132b   : > { %v2397_v13 = vmul.f32 0.7978846, %v2395_v11  ;;  %v5573_v11 = vld [vmem:[%s9709_s6 + $0x2] ss:$0 sm:$0xff] }
0x132c   : > { %8003 = vtanh.f32 %v2398_v12 }
0x132d   : > { %8005 = vtanh.f32 %v2397_v13 }
0x1336   : > { %v8004_v14 = vpop.eup %8003 }
0x1337   : > { %v8006_v15 = vpop.eup %8005  ;;  %v2402_v16 = vadd.f32 1.0, %v8004_v14 }
0x1338   : > { %v2401_v17 = vadd.f32 1.0, %v8006_v15 }
0x1339   : > { %v2404_v18 = vmul.f32 0.5, %v2402_v16 }
0x133a   : > { %v2403_v19 = vmul.f32 0.5, %v2401_v17 }
0x133b   : > { %v2406_v22 = vmul.f32 %v2404_v18, %v2386_v42 }
0x133c   : > { %v2405_v20 = vmul.f32 %v2403_v19, %v2381_v5 }
0x133e   : > { %6570 = vmatprep.mubr.f32.mxu0 %v2405_v20 }
0x133f   : > { %6571 = vmatmul.mubr.f32.vlgmr.msra.gmra.mrb[18].mxu0 %v2406_v22 }
0x1412   : > { %v6572_v24 = vpop.f32.mrb[18].mxu0 }
0x1413   : > { %v2500_v27 = vadd.f32 %v6572_v24, %v8767_v57  ;;  %v2490_v28 = vpop.f32.mrb[19].mxu0 }
0x1414   : > { %v2499_v32 = vadd.f32 %v2490_v28, %v8770_v58 }
0x1415   : > { %v8856_v33 = vadd.f32 %v5563_v25, %v2500_v27 }
0x1416   : > { %v8858_v34 = vadd.f32 %v5563_v25, %v2499_v32 }
0x1417   : > { %v2518_v35 = vsel %vm655_vm0, %v8856_v33, 0.0 }
0x1418   : > { %2519 = vadd.xlane.f32.xlu1 %v2518_v35  ;;  %v2515_v36 = vsel %vm655_vm0, %v8858_v34, 0.0 }
0x1419   : > { %2516 = vadd.xlane.f32.xlu0 %v2515_v36 }
0x14a5   : > { %v2520_v37 = vpop.xlane.xlu1 %2519 }
0x14a6   : > { %v2522_v21 = vmul.f32 0.03125, %v2520_v37  ;;  %v2517_v23 = vpop.xlane.xlu0 %2516 }
0x14a7   : > { %v2521_v26 = vmul.f32 0.03125, %v2517_v23 }
0x14a8   : > { %v2524_v57 = vsub.f32 %v8856_v33, %v2522_v21 }
0x14a9   : > { %v2523_v58 = vsub.f32 %v8858_v34, %v2521_v26 }
0x14aa   : > { %v2526_v29 = vmul.f32 %v2524_v57, %v2524_v57 }
0x14ab   : > { %v2525_v38 = vmul.f32 %v2523_v58, %v2523_v58 }
0x14ac   : > { %v2530_v44 = vsel %vm655_vm0, %v2526_v29, 0.0 }
0x14ad   : > { %2531 = vadd.xlane.f32.xlu1 %v2530_v44  ;;  %v2527_v48 = vsel %vm655_vm0, %v2525_v38, 0.0 }
0x14ae   : > { %2528 = vadd.xlane.f32.xlu0 %v2527_v48 }
0x153a   : > { %v2532_v46 = vpop.xlane.xlu1 %2531 }
0x153b   : > { %v2534_v49 = vmul.f32 0.032258064, %v2532_v46  ;;  %v2529_v50 = vpop.xlane.xlu0 %2528  ;;  %v8960_v46 = vpack.c.bf16 %v2845_v52, %v2844_v45 }
0x153c   : > { %v2533_v51 = vmul.f32 0.032258064, %v2529_v50 }
0x153d   : > { %8007 = vrsqrt.f32 %v2534_v49  ;;  %vm2544_vm14 = vcmp.eq.f32.partialorder %v2534_v49, inf  ;;  %v2547_v60 = vand.u32 2147483648, %v2534_v49  ;;  %vm2546_vm15 = vcmp.eq.f32.partialorder %v2534_v49, 0.0  ;;  %7490 = vmatprep.subr.bf16.mxu0 %v8960_v46 }
0x153e   : > { %8009 = vrsqrt.f32 %v2533_v51  ;;  %vm2537_vm1 = vcmp.eq.f32.partialorder %v2533_v51, inf  ;;  %v2540_v62 = vand.u32 2147483648, %v2533_v51  ;;  %vm2539_vm2 = vcmp.eq.f32.partialorder %v2533_v51, 0.0  ;;  %7492 = vmatpush3.bf16.msra.mxu0 %v8960_v46 }
0x1547   : > { %v8008_v54 = vpop.eup %8007 }
0x1548   : > { %v8010_v55 = vpop.eup %8009  ;;  %v2543_v59 = vmul.f32 %v8008_v54, %v2534_v49  ;;  %v2849_v54 = vld [vmem:[%s9707_s4 + $0x28] sm:$0xff] }
0x1549   : > { %v2536_v61 = vmul.f32 %v8010_v55, %v2533_v51 }
0x154a   : > { %v2545_v2 = vsel %vm2544_vm14, %v2534_v49, %v2543_v59  ;;  %v2847_v49 = vld [vmem:[%s9707_s4 + $0x18] sm:$0xff]  ;;  %v2850_v59 = vld [vmem:[%s9707_s4 + $0x30] sm:$0xff] }
0x154b   : > { %v2548_v63 = vsel %vm2546_vm15, %v2547_v60, %v2545_v2  ;;  %v2538_v1 = vsel %vm2537_vm1, %v2533_v51, %v2536_v61  ;;  %v8965_v50 = vpack.c.bf16 %v2847_v49, %v2846_v53  ;;  %v2848_v51 = vld [vmem:[%s9707_s4 + $0x20] sm:$0xff]  ;;  %v2851_v60 = vld [vmem:[%s9707_s4 + $0x38] sm:$0xff]  ;;  %v8992_v2 = vld [vmem:[%s8439_s1 + $0x8] sm:$0xff] }
0x154c   : > { %v2550_v39 = vadd.f32 1e-06, %v2548_v63  ;;  %v2541_v0 = vsel %vm2539_vm2, %v2540_v62, %v2538_v1  ;;  %v8976_v55 = vpack.c.bf16 %v2849_v54, %v2848_v51  ;;  %v8986_v61 = vpack.c.bf16 %v2851_v60, %v2850_v59  ;;  %v8995_v62 = vld [vmem:[%s8439_s1] sm:$0xff]  ;;  %v5595_v54 = vld [vmem:[%s9710_s7 + $0x48] sm:$0xff]  ;;  %v5596_v59 = vld [vmem:[%s9710_s7 + $0x50] sm:$0xff] }
0x154d   : > { %v2549_v3 = vadd.f32 1e-06, %v2541_v0  ;;  %7494 = vmatprep.subr.bf16.mxu0 %v8965_v50  ;;  %v5594_v51 = vld [vmem:[%s9710_s7 + $0x40] sm:$0xff] }
0x154e   : > { %8011 = vrcp.f32 %v2550_v39  ;;  %7496 = vmatpush3.bf16.msra.mxu0 %v8965_v50  ;;  %v7553_v60 = vpack.c.bf16 %v5595_v54, %v5594_v51 }
0x154f   : > { %8013 = vrcp.f32 %v2549_v3  ;;  %7498 = vmatprep.subr.bf16.mxu0 %v8976_v55  ;;  %v2852_v3 = vld [vmem:[%s9707_s4 + $0x40] sm:$0xff] }
0x1552   : > { %7500 = vmatpush3.bf16.msra.mxu0 %v8976_v55 }
0x1553   : > { %7502 = vmatprep.subr.bf16.mxu0 %v8986_v61 }
0x1556   : > { %7504 = vmatpush3.bf16.msra.mxu0 %v8986_v61 }
0x1558   : > { %v8012_v42 = vpop.eup %8011 }
0x1559   : > { %v8014_v5 = vpop.eup %8013  ;;  %v2554_v6 = vmul.f32 %v8012_v42, %v2524_v57  ;;  %v2853_v42 = vld [vmem:[%s9707_s4 + $0x48] sm:$0xff] }
0x155a   : > { %v2553_v30 = vmul.f32 %v8014_v5, %v2523_v58  ;;  %v2854_v5 = vld [vmem:[%s9707_s4 + $0x50] sm:$0xff] }
0x155b   : > { %v2562_v7 = vmul.f32 %v5566_v4, %v2554_v6  ;;  %v2855_v6 = vld [vmem:[%s9707_s4 + $0x58] sm:$0xff] }
0x155c   : > { %v2561_v8 = vmul.f32 %v5566_v4, %v2553_v30  ;;  %v9005_v4 = vpack.c.bf16 %v2853_v42, %v2852_v3  ;;  %v2856_v30 = vld [vmem:[%s9707_s4 + $0x60] sm:$0xff] }
0x155d   : > { %v2570_v10 = vadd.f32 %v5567_v31, %v2562_v7  ;;  %v2857_v7 = vld [vmem:[%s9707_s4 + $0x68] sm:$0xff] }
0x155e   : > { %v2569_v9 = vadd.f32 %v5567_v31, %v2561_v8  ;;  %7506 = vmatprep.subr.bf16.mxu0 %v9005_v4  ;;  %v9020_v31 = vpack.c.bf16 %v2855_v6, %v2854_v5  ;;  %v9025_v8 = vpack.c.bf16 %v2857_v7, %v2856_v30 }
0x155f   : > { %7508 = vmatpush3.bf16.msra.mxu0 %v9005_v4 }
0x1560   : > { %6581 = vmatprep.mubr.msk.f32.mxu1 %vm655_vm0, %v2569_v9  ;;  %7510 = vmatprep.subr.bf16.mxu0 %v9020_v31  ;;  %v2858_v9 = vld [vmem:[%s9707_s4 + $0x70] sm:$0xff] }
0x1561   : > { %6582 = vmatmul.mubr.msk.f32.vlgmr.msra.gmra.mrb[8].mxu1 %vm655_vm0, %v2570_v10  ;;  %v2859_v10 = vld [vmem:[%s9707_s4 + $0x78] sm:$0xff] }
0x1563   : > { %7512 = vmatpush3.bf16.msra.mxu0 %v9020_v31 }
0x1564   : > { %7514 = vmatprep.subr.bf16.mxu0 %v9025_v8 }
0x1567   : > { %7516 = vmatpush3.bf16.msra.mxu0 %v9025_v8 }
0x1634   : > { %v6583_v12 = vpop.f32.mrb[8].mxu1 }
0x1635   : > { %v8891_v13 = vadd.f32 %v6583_v12, %v5573_v11  ;;  %v2656_v14 = vpop.f32.mrb[9].mxu1 }
0x1636   : > { %v8893_v15 = vadd.f32 %v5573_v11, %v2656_v14  ;;  %v9038_v11 = vpack.c.bf16 %v2859_v10, %v2858_v9  ;;  %v5599_v9 = vld [vmem:[%s9711_s8 + $0x2] ss:$0 sm:$0xff] }
0x1637   : > { %2669 = vrot.lane.b32.xlu1 %v8891_v13, %s8106_s25 }
0x1638   : > { %2667 = vrot.lane.b32.xlu0 %v8893_v15, %s8106_s25  ;;  %6616 = vmatprep.mubr.msk.f32.mxu1 %vm655_vm0, %v8893_v15 }
0x1639   : > { %7518 = vmatprep.subr.bf16.mxu0 %v9038_v11 }
0x163a   : > { %7520 = vmatpush3.bf16.msra.mxu0 %v9038_v11 }
0x16a9   : > { %v2670_v16 = vpop.permute.xlu1 %2669 }
0x16aa   : > { %2674 = vst.msk [vmem:[#allocation2 + $0x8] sm:$0xff] %vm847_vm5, %v2670_v16  ;;  %v2668_v17 = vpop.permute.xlu0 %2667 }
0x16ab   : > { %2676 = vst.msk [vmem:[#allocation2 + $0x18] sm:$0xff] %vm850_vm6, %v2670_v16  ;;  %2675 = vst.msk [vmem:[#allocation2 + $0x10] sm:$0xff] %vm850_vm6, %v2668_v17 }
0x16ac   : > { %2678 = vst.msk [vmem:[#allocation2 + $0x28] sm:$0xff] %vm853_vm7, %v2670_v16  ;;  %2677 = vst.msk [vmem:[#allocation2 + $0x20] sm:$0xff] %vm853_vm7, %v2668_v17 }
0x16ad   : > { %2680 = vst.msk [vmem:[#allocation2 + $0x38] sm:$0xff] %vm856_vm8, %v2670_v16  ;;  %2679 = vst.msk [vmem:[#allocation2 + $0x30] sm:$0xff] %vm856_vm8, %v2668_v17 }
0x16ae   : > { %2682 = vst.msk [vmem:[#allocation2 + $0x48] sm:$0xff] %vm859_vm9, %v2670_v16  ;;  %2681 = vst.msk [vmem:[#allocation2 + $0x40] sm:$0xff] %vm859_vm9, %v2668_v17 }
0x16af   : > { %2684 = vst.msk [vmem:[#allocation2 + $0x58] sm:$0xff] %vm862_vm10, %v2670_v16  ;;  %2683 = vst.msk [vmem:[#allocation2 + $0x50] sm:$0xff] %vm862_vm10, %v2668_v17 }
0x16b0   : > { %2686 = vst.msk [vmem:[#allocation2 + $0x68] sm:$0xff] %vm865_vm11, %v2670_v16  ;;  %2685 = vst.msk [vmem:[#allocation2 + $0x60] sm:$0xff] %vm865_vm11, %v2668_v17 }
0x16b1   : > { %2688 = vst.msk [vmem:[#allocation2 + $0x78] sm:$0xff] %vm868_vm12, %v2670_v16  ;;  %2687 = vst.msk [vmem:[#allocation2 + $0x70] sm:$0xff] %vm868_vm12, %v2668_v17  ;;  %v2690_v18 = vld [vmem:[#allocation2 + $0x8] sm:$0xff] }
0x16b2   : > { %2673 = vst.msk [vmem:[#allocation2] sm:$0xff] %vm847_vm5, %v2668_v17  ;;  %v2691_v20 = vld [vmem:[#allocation2 + $0x10] sm:$0xff]  ;;  %v2692_v22 = vld [vmem:[#allocation2 + $0x18] sm:$0xff] }
0x16b3   : > { %v7447_v25 = vpack.c.bf16 %v2692_v22, %v2691_v20  ;;  %v2693_v27 = vld [vmem:[#allocation2 + $0x20] sm:$0xff]  ;;  %v2694_v28 = vld [vmem:[#allocation2 + $0x28] sm:$0xff] }
0x16b4   : > { %v7453_v32 = vpack.c.bf16 %v2694_v28, %v2693_v27  ;;  %v2695_v35 = vld [vmem:[#allocation2 + $0x30] sm:$0xff]  ;;  %v2696_v36 = vld [vmem:[#allocation2 + $0x38] sm:$0xff] }
0x16b5   : > { %v7459_v37 = vpack.c.bf16 %v2696_v36, %v2695_v35  ;;  %v2697_v21 = vld [vmem:[#allocation2 + $0x40] sm:$0xff]  ;;  %v2698_v23 = vld [vmem:[#allocation2 + $0x48] sm:$0xff] }
0x16b6   : > { %v7465_v26 = vpack.c.bf16 %v2698_v23, %v2697_v21  ;;  %v2699_v57 = vld [vmem:[#allocation2 + $0x50] sm:$0xff]  ;;  %v2700_v58 = vld [vmem:[#allocation2 + $0x58] sm:$0xff] }
0x16b7   : > { %v7471_v29 = vpack.c.bf16 %v2700_v58, %v2699_v57  ;;  %v2701_v38 = vld [vmem:[#allocation2 + $0x60] sm:$0xff]  ;;  %v2702_v44 = vld [vmem:[#allocation2 + $0x68] sm:$0xff] }
0x16b8   : > { %v7477_v48 = vpack.c.bf16 %v2702_v44, %v2701_v38  ;;  %v2703_v40 = vld [vmem:[#allocation2 + $0x70] sm:$0xff]  ;;  %v2704_v41 = vld [vmem:[#allocation2 + $0x78] sm:$0xff] }
0x16b9   : > { %v2689_v19 = vld [vmem:[#allocation2] sm:$0xff]  ;;  %v7483_v43 = vpack.c.bf16 %v2704_v41, %v2703_v40 }
0x16ba   : > { %v7441_v24 = vpack.c.bf16 %v2690_v18, %v2689_v19 }
0x16bc   : > { %7443 = vmatprep.subr.msk.bf16.mxu1 %vm8357_vm13, %v7441_v24 }
0x16bd   : > { %7446 = vmatpush3.bf16.xpose.msk.msra.mxu1 %vm8357_vm13, %v7441_v24 }
0x16be   : > { %7449 = vmatprep.subr.msk.bf16.mxu1 %vm8357_vm13, %v7447_v25 }
0x16c5   : > { %7452 = vmatpush3.bf16.xpose.msk.msra.mxu1 %vm8357_vm13, %v7447_v25 }
0x16c6   : > { %7455 = vmatprep.subr.msk.bf16.mxu1 %vm8357_vm13, %v7453_v32 }
0x16cd   : > { %7458 = vmatpush3.bf16.xpose.msk.msra.mxu1 %vm8357_vm13, %v7453_v32 }
0x16ce   : > { %7461 = vmatprep.subr.msk.bf16.mxu1 %vm8357_vm13, %v7459_v37 }
0x16d5   : > { %7464 = vmatpush3.bf16.xpose.msk.msra.mxu1 %vm8357_vm13, %v7459_v37 }
0x16d6   : > { %7467 = vmatprep.subr.msk.bf16.mxu1 %vm8357_vm13, %v7465_v26 }
0x16dd   : > { %7470 = vmatpush3.bf16.xpose.msk.msra.mxu1 %vm8357_vm13, %v7465_v26 }
0x16de   : > { %7473 = vmatprep.subr.msk.bf16.mxu1 %vm8357_vm13, %v7471_v29 }
0x16e5   : > { %7476 = vmatpush3.bf16.xpose.msk.msra.mxu1 %vm8357_vm13, %v7471_v29 }
0x16e6   : > { %7479 = vmatprep.subr.msk.bf16.mxu1 %vm8357_vm13, %v7477_v48 }
0x16ed   : > { %7482 = vmatpush3.bf16.xpose.msk.msra.mxu1 %vm8357_vm13, %v7477_v48 }
0x16ee   : > { %7485 = vmatprep.subr.msk.bf16.mxu1 %vm8357_vm13, %v7483_v43 }
0x16f5   : > { %7488 = vmatpush3.bf16.xpose.msk.msra.mxu1 %vm8357_vm13, %v7483_v43 }
0x16f6   : > { %7554 = vmatprep.subr.bf16.mxu1 %v7553_v60 }
0x16fc   : > { %6617 = vmatmul.mubr.msk.f32.vlgmr.msra.gmra.mrb[10].mxu1 %vm655_vm0, %v8891_v13 }
0x16fd   : > { %7556 = vmatpush3.bf16.msra.mxu1 %v7553_v60 }
0x17cf   : > { %v6618_v63 = vpop.f32.mrb[10].mxu1 }
0x17d0   : > { %v2831_v1 = vadd.f32 %v6618_v63, %v8992_v2  ;;  %v2825_v39 = vpop.f32.mrb[11].mxu1  ;;  %v5597_v63 = vld [vmem:[%s9710_s7 + $0x58] sm:$0xff] }
0x17d1   : > { %v2826_v0 = vadd.f32 %v2825_v39, %v8995_v62 }
0x17d2   : > { %2836 = vmax.xlane.f32.xlu0 %v2831_v1 }
0x17d3   : > { %2834 = vmax.xlane.f32.xlu1 %v2826_v0 }
0x17e4   : > { %2941 = vrot.lane.b32.xlu1 %v8891_v13, %s8107_s3 }
0x17e8   : > { %2939 = vrot.lane.b32.xlu0 %v8893_v15, %s8107_s3 }
0x185f   : > { %v2837_v12 = vpop.xlane.xlu0 %2836 }
0x1860   : > { %v2839_v13 = vsub.f32 %v2831_v1, %v2837_v12  ;;  %v2835_v14 = vpop.xlane.xlu1 %2834  ;;  %v7557_v1 = vpack.c.bf16 %v5597_v63, %v5596_v59  ;;  %v5604_v63 = vld [vmem:[%s9718_s15 + $0x2] ss:$0 sm:$0xff] }
0x1861   : > { %v2838_v15 = vsub.f32 %v2826_v0, %v2835_v14 }
0x1862   : > { %v2842_v16 = vmul.f32 1.442695, %v2839_v13  ;;  %7558 = vmatprep.subr.bf16.mxu1 %v7557_v1 }
0x1863   : > { %v2840_v17 = vmul.f32 1.442695, %v2838_v15  ;;  %v2940_v18 = vpop.permute.xlu0 %2939  ;;  %7560 = vmatpush3.bf16.msra.mxu1 %v7557_v1 }
0x1864   : > { %2945 = vst.msk [vmem:[#allocation3] sm:$0xff] %vm847_vm5, %v2940_v18  ;;  %v2942_v19 = vpop.permute.xlu1 %2941 }
0x1865   : > { %2947 = vst.msk [vmem:[#allocation3 + $0x10] sm:$0xff] %vm850_vm6, %v2940_v18  ;;  %8015 = vpow2.f32 %v2840_v17  ;;  %2948 = vst.msk [vmem:[#allocation3 + $0x18] sm:$0xff] %vm850_vm6, %v2942_v19 }
0x1866   : > { %2949 = vst.msk [vmem:[#allocation3 + $0x20] sm:$0xff] %vm853_vm7, %v2940_v18  ;;  %2950 = vst.msk [vmem:[#allocation3 + $0x28] sm:$0xff] %vm853_vm7, %v2942_v19  ;;  %8017 = vpow2.f32 %v2842_v16 }
0x1867   : > { %2951 = vst.msk [vmem:[#allocation3 + $0x30] sm:$0xff] %vm856_vm8, %v2940_v18  ;;  %2952 = vst.msk [vmem:[#allocation3 + $0x38] sm:$0xff] %vm856_vm8, %v2942_v19 }
0x1868   : > { %2953 = vst.msk [vmem:[#allocation3 + $0x40] sm:$0xff] %vm859_vm9, %v2940_v18  ;;  %2954 = vst.msk [vmem:[#allocation3 + $0x48] sm:$0xff] %vm859_vm9, %v2942_v19 }
0x1869   : > { %2955 = vst.msk [vmem:[#allocation3 + $0x50] sm:$0xff] %vm862_vm10, %v2940_v18  ;;  %2956 = vst.msk [vmem:[#allocation3 + $0x58] sm:$0xff] %vm862_vm10, %v2942_v19 }
0x186a   : > { %2957 = vst.msk [vmem:[#allocation3 + $0x60] sm:$0xff] %vm865_vm11, %v2940_v18  ;;  %2958 = vst.msk [vmem:[#allocation3 + $0x68] sm:$0xff] %vm865_vm11, %v2942_v19 }
0x186b   : > { %2959 = vst.msk [vmem:[#allocation3 + $0x70] sm:$0xff] %vm868_vm12, %v2940_v18  ;;  %2960 = vst.msk [vmem:[#allocation3 + $0x78] sm:$0xff] %vm868_vm12, %v2942_v19  ;;  %v2961_v20 = vld [vmem:[#allocation3] sm:$0xff] }
0x186c   : > { %2946 = vst.msk [vmem:[#allocation3 + $0x8] sm:$0xff] %vm847_vm5, %v2942_v19  ;;  %v2963_v25 = vld [vmem:[#allocation3 + $0x10] sm:$0xff]  ;;  %v2964_v27 = vld [vmem:[#allocation3 + $0x18] sm:$0xff] }
0x186d   : > { %v7525_v35 = vpack.c.bf16 %v2964_v27, %v2963_v25  ;;  %v2965_v36 = vld [vmem:[#allocation3 + $0x20] sm:$0xff]  ;;  %v2966_v37 = vld [vmem:[#allocation3 + $0x28] sm:$0xff] }
0x186e   : > { %v7529_v21 = vpack.c.bf16 %v2966_v37, %v2965_v36  ;;  %v2967_v23 = vld [vmem:[#allocation3 + $0x30] sm:$0xff]  ;;  %v2968_v26 = vld [vmem:[#allocation3 + $0x38] sm:$0xff]  ;;  %v5607_v36 = vld [vmem:[%s9714_s11 + $0x48] sm:$0xff] }
0x186f   : > { %v8016_v28 = vpop.eup %8015  ;;  %v7533_v57 = vpack.c.bf16 %v2968_v26, %v2967_v23  ;;  %v2969_v58 = vld [vmem:[#allocation3 + $0x40] sm:$0xff]  ;;  %v2970_v29 = vld [vmem:[#allocation3 + $0x48] sm:$0xff]  ;;  %v5608_v37 = vld [vmem:[%s9714_s11 + $0x50] sm:$0xff] }
0x1870   : > { %v8018_v32 = vpop.eup %8017  ;;  %6651 = vmatprep.mubr.f32.mxu0 %v8016_v28  ;;  %v7537_v38 = vpack.c.bf16 %v2970_v29, %v2969_v58  ;;  %v2971_v44 = vld [vmem:[#allocation3 + $0x50] sm:$0xff]  ;;  %v2972_v48 = vld [vmem:[#allocation3 + $0x58] sm:$0xff] }
0x1871   : > { %6652 = vmatmul.mubr.f32.vlgmr.msra.gmra.mrb[20].mxu0 %v8018_v32  ;;  %v7541_v40 = vpack.c.bf16 %v2972_v48, %v2971_v44  ;;  %v2973_v41 = vld [vmem:[#allocation3 + $0x60] sm:$0xff]  ;;  %v2974_v43 = vld [vmem:[#allocation3 + $0x68] sm:$0xff]  ;;  %v5609_v23 = vld [vmem:[%s9714_s11 + $0x58] sm:$0xff] }
0x1872   : > { %v7545_v45 = vpack.c.bf16 %v2974_v43, %v2973_v41  ;;  %v2975_v52 = vld [vmem:[#allocation3 + $0x70] sm:$0xff]  ;;  %v2976_v53 = vld [vmem:[#allocation3 + $0x78] sm:$0xff]  ;;  %v7565_v26 = vpack.c.bf16 %v5609_v23, %v5608_v37 }
0x1873   : > { %v2962_v22 = vld [vmem:[#allocation3 + $0x8] sm:$0xff]  ;;  %v7549_v49 = vpack.c.bf16 %v2976_v53, %v2975_v52  ;;  %v5629_v23 = vld [vmem:[%s9716_s13 + $0x178] sm:$0xff] }
0x1874   : > { %v7521_v24 = vpack.c.bf16 %v2962_v22, %v2961_v20 }
0x1876   : > { %7522 = vmatprep.subr.bf16.mxu0 %v7521_v24 }
0x1877   : > { %7524 = vmatpush3.bf16.msra.mxu0 %v7521_v24 }
0x1878   : > { %7526 = vmatprep.subr.bf16.mxu0 %v7525_v35 }
0x187b   : > { %7528 = vmatpush3.bf16.msra.mxu0 %v7525_v35  ;;  %v5606_v35 = vld [vmem:[%s9714_s11 + $0x40] sm:$0xff] }
0x187c   : > { %7530 = vmatprep.subr.bf16.mxu0 %v7529_v21 }
0x187f   : > { %7532 = vmatpush3.bf16.msra.mxu0 %v7529_v21  ;;  %v7561_v21 = vpack.c.bf16 %v5607_v36, %v5606_v35  ;;  %v5626_v35 = vld [vmem:[%s9716_s13 + $0x160] sm:$0xff]  ;;  %v5627_v36 = vld [vmem:[%s9716_s13 + $0x168] sm:$0xff] }
0x1880   : > { %7534 = vmatprep.subr.bf16.mxu0 %v7533_v57  ;;  %v7593_v37 = vpack.c.bf16 %v5627_v36, %v5626_v35 }
0x1881   : > { %7562 = vmatprep.subr.bf16.mxu1 %v7561_v21 }
0x1883   : > { %7536 = vmatpush3.bf16.msra.mxu0 %v7533_v57 }
0x1884   : > { %7538 = vmatprep.subr.bf16.mxu0 %v7537_v38 }
0x1887   : > { %7540 = vmatpush3.bf16.msra.mxu0 %v7537_v38 }
0x1888   : > { %7542 = vmatprep.subr.bf16.mxu0 %v7541_v40 }
0x188b   : > { %7544 = vmatpush3.bf16.msra.mxu0 %v7541_v40 }
0x188c   : > { %7546 = vmatprep.subr.bf16.mxu0 %v7545_v45 }
0x188f   : > { %7548 = vmatpush3.bf16.msra.mxu0 %v7545_v45 }
0x1890   : > { %7550 = vmatprep.subr.bf16.mxu0 %v7549_v49 }
0x1893   : > { %7552 = vmatpush3.bf16.msra.mxu0 %v7549_v49 }
0x1944   : > { %v6653_v39 = vpop.f32.mrb[20].mxu0 }
0x1945   : > { %8019 = vrcp.f32 %v6653_v39  ;;  %v2926_v0 = vpop.f32.mrb[21].mxu0 }
0x1946   : > { %8021 = vrcp.f32 %v2926_v0 }
0x194f   : > { %v8020_v3 = vpop.eup %8019 }
0x1950   : > { %v8022_v42 = vpop.eup %8021  ;;  %v2938_v6 = vmul.f32 %v8020_v3, %v8018_v32  ;;  %v5605_v3 = vld [vmem:[%s9719_s16 + $0x2] ss:$0 sm:$0xff] }
0x1951   : > { %v2937_v5 = vmul.f32 %v8022_v42, %v8016_v28 }
0x1953   : > { %6686 = vmatprep.mubr.f32.mxu0 %v2937_v5 }
0x1954   : > { %6687 = vmatmul.mubr.f32.vlgmr.msra.gmra.mrb[22].mxu0 %v2938_v6 }
0x1a27   : > { %v6688_v30 = vpop.f32.mrb[22].mxu0 }
0x1a28   : > { %v3043_v7 = vpop.f32.mrb[23].mxu0 }
0x1a29   : > { %6697 = vmatprep.mubr.msk.f32.mxu1 %vm655_vm0, %v3043_v7  ;;  %v5614_v7 = vld [vmem:[%s9716_s13 + $0x100] sm:$0xff] }
0x1a2a   : > { %6698 = vmatmul.mubr.msk.f32.vlgmr.msra.gmra.mrb[12].mxu1 %vm655_vm0, %v6688_v30 }
0x1a2b   : > { %7564 = vmatpush3.bf16.msra.mxu1 %v7561_v21  ;;  %v5628_v21 = vld [vmem:[%s9716_s13 + $0x170] sm:$0xff] }
0x1a2c   : > { %7566 = vmatprep.subr.bf16.mxu1 %v7565_v26 }
0x1a2f   : > { %7568 = vmatpush3.bf16.msra.mxu1 %v7565_v26  ;;  %v7597_v26 = vpack.c.bf16 %v5629_v23, %v5628_v21 }
0x1afd   : > { %v6699_v10 = vpop.f32.mrb[12].mxu1 }
0x1afe   : > { %v3143_v12 = vadd.f32 %v6699_v10, %v5599_v9  ;;  %v3137_v13 = vpop.f32.mrb[13].mxu1 }
0x1aff   : > { %v3138_v14 = vadd.f32 %v5599_v9, %v3137_v13  ;;  %v5615_v9 = vld [vmem:[%s9716_s13 + $0x108] sm:$0xff]  ;;  %v5617_v13 = vld [vmem:[%s9716_s13 + $0x118] sm:$0xff] }
0x1b00   : > { %v9077_v15 = vadd.f32 %v3143_v12, %v8856_v33  ;;  %v7569_v10 = vpack.c.bf16 %v5615_v9, %v5614_v7  ;;  %v5616_v12 = vld [vmem:[%s9716_s13 + $0x110] sm:$0xff] }
0x1b01   : > { %v9080_v16 = vadd.f32 %v3138_v14, %v8858_v34  ;;  %v7573_v14 = vpack.c.bf16 %v5617_v13, %v5616_v12 }
0x1b02   : > { %v3155_v17 = vsel %vm655_vm0, %v9077_v15, 0.0  ;;  %7570 = vmatprep.subr.bf16.mxu1 %v7569_v10 }
0x1b03   : > { %3156 = vadd.xlane.f32.xlu0 %v3155_v17  ;;  %v3152_v18 = vsel %vm655_vm0, %v9080_v16, 0.0  ;;  %v5618_v17 = vld [vmem:[%s9716_s13 + $0x120] sm:$0xff] }
0x1b04   : > { %3153 = vadd.xlane.f32.xlu1 %v3152_v18  ;;  %v5619_v18 = vld [vmem:[%s9716_s13 + $0x128] sm:$0xff] }
0x1b90   : > { %v3157_v19 = vpop.xlane.xlu0 %3156 }
0x1b91   : > { %v3159_v20 = vmul.f32 0.03125, %v3157_v19  ;;  %v3154_v22 = vpop.xlane.xlu1 %3153  ;;  %v7577_v19 = vpack.c.bf16 %v5619_v18, %v5618_v17  ;;  %v5636_v17 = vld [vmem:[%s9708_s5 + $0x60] sm:$0xff]  ;;  %v5637_v18 = vld [vmem:[%s9708_s5 + $0x68] sm:$0xff] }
0x1b92   : > { %v3158_v24 = vmul.f32 0.03125, %v3154_v22  ;;  %v5621_v22 = vld [vmem:[%s9716_s13 + $0x138] sm:$0xff] }
0x1b93   : > { %v3161_v25 = vsub.f32 %v9077_v15, %v3159_v20  ;;  %v5620_v20 = vld [vmem:[%s9716_s13 + $0x130] sm:$0xff] }
0x1b94   : > { %v3160_v33 = vsub.f32 %v9080_v16, %v3158_v24  ;;  %v5622_v24 = vld [vmem:[%s9716_s13 + $0x140] sm:$0xff] }
0x1b95   : > { %v3163_v27 = vmul.f32 %v3161_v25, %v3161_v25 }
0x1b96   : > { %v3162_v28 = vmul.f32 %v3160_v33, %v3160_v33 }
0x1b97   : > { %v3167_v34 = vsel %vm655_vm0, %v3163_v27, 0.0 }
0x1b98   : > { %3168 = vadd.xlane.f32.xlu1 %v3167_v34  ;;  %v3164_v32 = vsel %vm655_vm0, %v3162_v28, 0.0  ;;  %v5624_v28 = vld [vmem:[%s9716_s13 + $0x150] sm:$0xff]  ;;  %v5625_v34 = vld [vmem:[%s9716_s13 + $0x158] sm:$0xff] }
0x1b99   : > { %3165 = vadd.xlane.f32.xlu0 %v3164_v32  ;;  %v7589_v32 = vpack.c.bf16 %v5625_v34, %v5624_v28 }
0x1c25   : > { %v3169_v57 = vpop.xlane.xlu1 %3168 }
0x1c26   : > { %v3171_v58 = vmul.f32 0.032258064, %v3169_v57  ;;  %v3166_v29 = vpop.xlane.xlu0 %3165  ;;  %v5611_v57 = vld [vmem:[%s9715_s12 + $0x2] ss:$0 sm:$0xff] }
0x1c27   : > { %v3170_v38 = vmul.f32 0.032258064, %v3166_v29 }
0x1c28   : > { %8023 = vrsqrt.f32 %v3171_v58  ;;  %vm3181_vm3 = vcmp.eq.f32.partialorder %v3171_v58, inf  ;;  %v3184_v41 = vand.u32 2147483648, %v3171_v58  ;;  %vm3183_vm4 = vcmp.eq.f32.partialorder %v3171_v58, 0.0 }
0x1c29   : > { %8025 = vrsqrt.f32 %v3170_v38  ;;  %vm3174_vm14 = vcmp.eq.f32.partialorder %v3170_v38, inf  ;;  %v3177_v52 = vand.u32 2147483648, %v3170_v38  ;;  %vm3176_vm15 = vcmp.eq.f32.partialorder %v3170_v38, 0.0 }
0x1c32   : > { %v8024_v44 = vpop.eup %8023 }
0x1c33   : > { %v8026_v48 = vpop.eup %8025  ;;  %v3180_v40 = vmul.f32 %v8024_v44, %v3171_v58 }
0x1c34   : > { %v3173_v43 = vmul.f32 %v8026_v48, %v3170_v38 }
0x1c35   : > { %v3182_v45 = vsel %vm3181_vm3, %v3171_v58, %v3180_v40 }
0x1c36   : > { %v3185_v53 = vsel %vm3183_vm4, %v3184_v41, %v3182_v45  ;;  %v3175_v49 = vsel %vm3174_vm14, %v3170_v38, %v3173_v43 }
0x1c37   : > { %v3187_v51 = vadd.f32 1e-06, %v3185_v53  ;;  %v3178_v54 = vsel %vm3176_vm15, %v3177_v52, %v3175_v49 }
0x1c38   : > { %v3186_v59 = vadd.f32 1e-06, %v3178_v54 }
0x1c39   : > { %8027 = vrcp.f32 %v3187_v51 }
0x1c3a   : > { %8029 = vrcp.f32 %v3186_v59 }
0x1c43   : > { %v8028_v60 = vpop.eup %8027 }
0x1c44   : > { %v8030_v1 = vpop.eup %8029  ;;  %v3191_v39 = vmul.f32 %v8028_v60, %v3161_v25  ;;  %v7581_v25 = vpack.c.bf16 %v5621_v22, %v5620_v20  ;;  %v7601_v20 = vpack.c.bf16 %v5637_v18, %v5636_v17  ;;  %v5639_v22 = vld [vmem:[%s9708_s5 + $0x78] sm:$0xff] }
0x1c45   : > { %v3190_v0 = vmul.f32 %v8030_v1, %v3160_v33  ;;  %v5623_v33 = vld [vmem:[%s9716_s13 + $0x148] sm:$0xff] }
0x1c46   : > { %v3199_v42 = vmul.f32 %v5604_v63, %v3191_v39  ;;  %v7585_v27 = vpack.c.bf16 %v5623_v33, %v5622_v24  ;;  %7602 = vmatprep.subr.bf16.mxu0 %v7601_v20 }
0x1c47   : > { %v3198_v5 = vmul.f32 %v5604_v63, %v3190_v0  ;;  %7604 = vmatpush3.bf16.msra.mxu0 %v7601_v20 }
0x1c48   : > { %v3207_v30 = vadd.f32 %v5605_v3, %v3199_v42 }
0x1c49   : > { %v3206_v6 = vadd.f32 %v5605_v3, %v3198_v5 }
0x1c4b   : > { %6708 = vmatprep.mubr.msk.f32.mxu1 %vm655_vm0, %v3206_v6 }
0x1c4c   : > { %6709 = vmatmul.mubr.msk.f32.vlgmr.msra.gmra.mrb[14].mxu1 %vm655_vm0, %v3207_v30 }
0x1c4d   : > { %7572 = vmatpush3.bf16.msra.mxu1 %v7569_v10 }
0x1c4e   : > { %7574 = vmatprep.subr.bf16.mxu1 %v7573_v14 }
0x1c51   : > { %7576 = vmatpush3.bf16.msra.mxu1 %v7573_v14 }
0x1c52   : > { %7578 = vmatprep.subr.bf16.mxu1 %v7577_v19 }
0x1c55   : > { %7580 = vmatpush3.bf16.msra.mxu1 %v7577_v19  ;;  %v5638_v19 = vld [vmem:[%s9708_s5 + $0x70] sm:$0xff] }
0x1c56   : > { %7582 = vmatprep.subr.bf16.mxu1 %v7581_v25  ;;  %v7605_v24 = vpack.c.bf16 %v5639_v22, %v5638_v19 }
0x1c58   : > { %7606 = vmatprep.subr.bf16.mxu0 %v7605_v24 }
0x1c59   : > { %7584 = vmatpush3.bf16.msra.mxu1 %v7581_v25  ;;  %7608 = vmatpush3.bf16.msra.mxu0 %v7605_v24 }
0x1c5a   : > { %7586 = vmatprep.subr.bf16.mxu1 %v7585_v27 }
0x1c5d   : > { %7588 = vmatpush3.bf16.msra.mxu1 %v7585_v27 }
0x1c5e   : > { %7590 = vmatprep.subr.bf16.mxu1 %v7589_v32 }
0x1c61   : > { %7592 = vmatpush3.bf16.msra.mxu1 %v7589_v32 }
0x1c62   : > { %7594 = vmatprep.subr.bf16.mxu1 %v7593_v37 }
0x1c65   : > { %7596 = vmatpush3.bf16.msra.mxu1 %v7593_v37 }
0x1c66   : > { %7598 = vmatprep.subr.bf16.mxu1 %v7597_v26 }
0x1c69   : > { %7600 = vmatpush3.bf16.msra.mxu1 %v7597_v26 }
0x1c6a   : > { %7658 = vmatprep.subr.bf16.mxu1 %v8960_v46 }
0x1d1f   : > { %v6710_v58 = vpop.f32.mrb[14].mxu1 }
0x1d20   : > { %v3299_v29 = vadd.f32 %v6710_v58, %v5611_v57  ;;  %v3293_v38 = vpop.f32.mrb[15].mxu1 }
0x1d21   : > { %v3294_v44 = vadd.f32 %v5611_v57, %v3293_v38 }
0x1d22   : > { %v3303_v48 = vmul.f32 %v3299_v29, %v3299_v29 }
0x1d23   : > { %v3302_v40 = vmul.f32 %v3294_v44, %v3294_v44 }
0x1d24   : > { %v3305_v41 = vmul.f32 %v3303_v48, %v3299_v29  ;;  %v5634_v48 = vld [vmem:[%s9712_s9 + $0x3] ss:$0 sm:$0xff] }
0x1d25   : > { %v3304_v43 = vmul.f32 %v3302_v40, %v3294_v44 }
0x1d26   : > { %v3307_v45 = vmul.f32 0.044715, %v3305_v41 }
0x1d27   : > { %v3306_v52 = vmul.f32 0.044715, %v3304_v43 }
0x1d28   : > { %v3309_v53 = vadd.f32 %v3307_v45, %v3299_v29  ;;  %v5635_v45 = vld [vmem:[%s9713_s10 + $0x3] ss:$0 sm:$0xff] }
0x1d29   : > { %v3308_v49 = vadd.f32 %v3306_v52, %v3294_v44 }
0x1d2a   : > { %v3311_v51 = vmul.f32 0.7978846, %v3309_v53 }
0x1d2b   : > { %v3310_v54 = vmul.f32 0.7978846, %v3308_v49 }
0x1d2c   : > { %8031 = vtanh.f32 %v3311_v51 }
0x1d2d   : > { %8033 = vtanh.f32 %v3310_v54  ;;  %v5641_v54 = vld [vmem:[%s9709_s6 + $0x3] ss:$0 sm:$0xff] }
0x1d36   : > { %v8032_v59 = vpop.eup %8031 }
0x1d37   : > { %v8034_v60 = vpop.eup %8033  ;;  %v3315_v63 = vadd.f32 1.0, %v8032_v59 }
0x1d38   : > { %v3314_v1 = vadd.f32 1.0, %v8034_v60 }
0x1d39   : > { %v3317_v39 = vmul.f32 0.5, %v3315_v63 }
0x1d3a   : > { %v3316_v0 = vmul.f32 0.5, %v3314_v1 }
0x1d3b   : > { %v3319_v42 = vmul.f32 %v3317_v39, %v3299_v29 }
0x1d3c   : > { %v3318_v3 = vmul.f32 %v3316_v0, %v3294_v44 }
0x1d3e   : > { %6743 = vmatprep.mubr.f32.mxu1 %v3318_v3 }
0x1d3f   : > { %6744 = vmatmul.mubr.f32.vlgmr.msra.gmra.mrb[16].mxu1 %v3319_v42 }
0x1d40   : > { %7660 = vmatpush3.bf16.msra.mxu1 %v8960_v46 }
0x1d41   : > { %7662 = vmatprep.subr.bf16.mxu1 %v8965_v50 }
0x1d44   : > { %7664 = vmatpush3.bf16.msra.mxu1 %v8965_v50  ;;  %v5631_v50 = vld [vmem:[%s9717_s14 + $0x2] ss:$0 sm:$0xff] }
0x1d45   : > { %7666 = vmatprep.subr.bf16.mxu1 %v8976_v55 }
0x1d48   : > { %7668 = vmatpush3.bf16.msra.mxu1 %v8976_v55 }
0x1d49   : > { %7670 = vmatprep.subr.bf16.mxu1 %v8986_v61 }
0x1d4c   : > { %7672 = vmatpush3.bf16.msra.mxu1 %v8986_v61 }
0x1d4d   : > { %7674 = vmatprep.subr.bf16.mxu1 %v9005_v4 }
0x1d50   : > { %7676 = vmatpush3.bf16.msra.mxu1 %v9005_v4 }
0x1d51   : > { %7678 = vmatprep.subr.bf16.mxu1 %v9020_v31 }
0x1d54   : > { %7680 = vmatpush3.bf16.msra.mxu1 %v9020_v31 }
0x1d55   : > { %7682 = vmatprep.subr.bf16.mxu1 %v9025_v8 }
0x1d58   : > { %7684 = vmatpush3.bf16.msra.mxu1 %v9025_v8 }
0x1d59   : > { %7686 = vmatprep.subr.bf16.mxu1 %v9038_v11 }
0x1d5c   : > { %7688 = vmatpush3.bf16.msra.mxu1 %v9038_v11 }
0x1e12   : > { %v6745_v46 = vpop.f32.mrb[16].mxu1 }
0x1e13   : > { %v3413_v55 = vadd.f32 %v6745_v46, %v9077_v15  ;;  %v3403_v61 = vpop.f32.mrb[17].mxu1 }
0x1e14   : > { %v3412_v4 = vadd.f32 %v3403_v61, %v9080_v16 }
0x1e15   : > { %v9182_v5 = vadd.f32 %v5631_v50, %v3413_v55 }
0x1e16   : > { %v9184_v31 = vadd.f32 %v5631_v50, %v3412_v4 }
0x1e17   : > { %v3431_v8 = vsel %vm655_vm0, %v9182_v5, 0.0 }
0x1e18   : > { %3432 = vadd.xlane.f32.xlu1 %v3431_v8  ;;  %v3428_v11 = vsel %vm655_vm0, %v9184_v31, 0.0 }
0x1e19   : > { %3429 = vadd.xlane.f32.xlu0 %v3428_v11 }
0x1ea5   : > { %v3433_v6 = vpop.xlane.xlu1 %3432 }
0x1ea6   : > { %v3435_v30 = vmul.f32 0.03125, %v3433_v6  ;;  %v3430_v7 = vpop.xlane.xlu0 %3429 }
0x1ea7   : > { %v3434_v9 = vmul.f32 0.03125, %v3430_v7 }
0x1ea8   : > { %v3437_v15 = vsub.f32 %v9182_v5, %v3435_v30 }
0x1ea9   : > { %v3436_v16 = vsub.f32 %v9184_v31, %v3434_v9 }
0x1eaa   : > { %v3439_v10 = vmul.f32 %v3437_v15, %v3437_v15 }
0x1eab   : > { %v3438_v12 = vmul.f32 %v3436_v16, %v3436_v16 }
0x1eac   : > { %v3443_v13 = vsel %vm655_vm0, %v3439_v10, 0.0 }
0x1ead   : > { %3444 = vadd.xlane.f32.xlu1 %v3443_v13  ;;  %v3440_v14 = vsel %vm655_vm0, %v3438_v12, 0.0 }
0x1eae   : > { %3441 = vadd.xlane.f32.xlu0 %v3440_v14 }
0x1f3a   : > { %v3445_v25 = vpop.xlane.xlu1 %3444 }
0x1f3b   : > { %v3447_v33 = vmul.f32 0.032258064, %v3445_v25  ;;  %v3442_v27 = vpop.xlane.xlu0 %3441 }
0x1f3c   : > { %v3446_v28 = vmul.f32 0.032258064, %v3442_v27 }
0x1f3d   : > { %8035 = vrsqrt.f32 %v3447_v33  ;;  %vm3457_vm1 = vcmp.eq.f32.partialorder %v3447_v33, inf  ;;  %v3460_v36 = vand.u32 2147483648, %v3447_v33  ;;  %vm3459_vm2 = vcmp.eq.f32.partialorder %v3447_v33, 0.0 }
0x1f3e   : > { %8037 = vrsqrt.f32 %v3446_v28  ;;  %vm3450_vm3 = vcmp.eq.f32.partialorder %v3446_v28, inf  ;;  %v3453_v23 = vand.u32 2147483648, %v3446_v28  ;;  %vm3452_vm4 = vcmp.eq.f32.partialorder %v3446_v28, 0.0 }
0x1f47   : > { %v8036_v34 = vpop.eup %8035 }
0x1f48   : > { %v8038_v32 = vpop.eup %8037  ;;  %v3456_v35 = vmul.f32 %v8036_v34, %v3447_v33 }
0x1f49   : > { %v3449_v37 = vmul.f32 %v8038_v32, %v3446_v28 }
0x1f4a   : > { %v3458_v21 = vsel %vm3457_vm1, %v3447_v33, %v3456_v35 }
0x1f4b   : > { %v3461_v26 = vsel %vm3459_vm2, %v3460_v36, %v3458_v21  ;;  %v3451_v57 = vsel %vm3450_vm3, %v3446_v28, %v3449_v37 }
0x1f4c   : > { %v3463_v58 = vadd.f32 1e-06, %v3461_v26  ;;  %v3454_v29 = vsel %vm3452_vm4, %v3453_v23, %v3451_v57 }
0x1f4d   : > { %v3462_v38 = vadd.f32 1e-06, %v3454_v29 }
0x1f4e   : > { %8039 = vrcp.f32 %v3463_v58 }
0x1f4f   : > { %8041 = vrcp.f32 %v3462_v38 }
0x1f58   : > { %v8040_v44 = vpop.eup %8039 }
0x1f59   : > { %v8042_v40 = vpop.eup %8041  ;;  %v3467_v41 = vmul.f32 %v8040_v44, %v3437_v15 }
0x1f5a   : > { %v3466_v43 = vmul.f32 %v8042_v40, %v3436_v16 }
0x1f5b   : > { %v3475_v52 = vmul.f32 %v5634_v48, %v3467_v41 }
0x1f5c   : > { %v3474_v53 = vmul.f32 %v5634_v48, %v3466_v43 }
0x1f5d   : > { %v3483_v51 = vadd.f32 %v5635_v45, %v3475_v52 }
0x1f5e   : > { %v3482_v49 = vadd.f32 %v5635_v45, %v3474_v53 }
0x1f60   : > { %6754 = vmatprep.mubr.msk.f32.mxu0 %vm655_vm0, %v3482_v49 }
0x1f61   : > { %6755 = vmatmul.mubr.msk.f32.vlgmr.msra.gmra.mrb[24].mxu0 %vm655_vm0, %v3483_v51 }
0x2034   : > { %v6756_v59 = vpop.f32.mrb[24].mxu0 }
0x2035   : > { %v9217_v60 = vadd.f32 %v6756_v59, %v5641_v54  ;;  %v3569_v63 = vpop.f32.mrb[25].mxu0 }
0x2036   : > { %v9219_v1 = vadd.f32 %v5641_v54, %v3569_v63 }
0x2037   : > { %3582 = vrot.lane.b32.xlu1 %v9217_v60, %s8106_s25 }
0x2038   : > { %3580 = vrot.lane.b32.xlu0 %v9219_v1, %s8106_s25  ;;  %6789 = vmatprep.mubr.msk.f32.mxu0 %vm655_vm0, %v9219_v1 }
0x20a9   : > { %v3583_v39 = vpop.permute.xlu1 %3582 }
0x20aa   : > { %3587 = vst.msk [vmem:[#allocation2 + $0x8] sm:$0xff] %vm847_vm5, %v3583_v39  ;;  %v3581_v0 = vpop.permute.xlu0 %3580 }
0x20ab   : > { %3589 = vst.msk [vmem:[#allocation2 + $0x18] sm:$0xff] %vm850_vm6, %v3583_v39  ;;  %3588 = vst.msk [vmem:[#allocation2 + $0x10] sm:$0xff] %vm850_vm6, %v3581_v0 }
0x20ac   : > { %3591 = vst.msk [vmem:[#allocation2 + $0x28] sm:$0xff] %vm853_vm7, %v3583_v39  ;;  %3590 = vst.msk [vmem:[#allocation2 + $0x20] sm:$0xff] %vm853_vm7, %v3581_v0 }
0x20ad   : > { %3593 = vst.msk [vmem:[#allocation2 + $0x38] sm:$0xff] %vm856_vm8, %v3583_v39  ;;  %3592 = vst.msk [vmem:[#allocation2 + $0x30] sm:$0xff] %vm856_vm8, %v3581_v0 }
0x20ae   : > { %3595 = vst.msk [vmem:[#allocation2 + $0x48] sm:$0xff] %vm859_vm9, %v3583_v39  ;;  %3594 = vst.msk [vmem:[#allocation2 + $0x40] sm:$0xff] %vm859_vm9, %v3581_v0 }
0x20af   : > { %3597 = vst.msk [vmem:[#allocation2 + $0x58] sm:$0xff] %vm862_vm10, %v3583_v39  ;;  %3596 = vst.msk [vmem:[#allocation2 + $0x50] sm:$0xff] %vm862_vm10, %v3581_v0 }
0x20b0   : > { %3599 = vst.msk [vmem:[#allocation2 + $0x68] sm:$0xff] %vm865_vm11, %v3583_v39  ;;  %3598 = vst.msk [vmem:[#allocation2 + $0x60] sm:$0xff] %vm865_vm11, %v3581_v0 }
0x20b1   : > { %3601 = vst.msk [vmem:[#allocation2 + $0x78] sm:$0xff] %vm868_vm12, %v3583_v39  ;;  %3600 = vst.msk [vmem:[#allocation2 + $0x70] sm:$0xff] %vm868_vm12, %v3581_v0  ;;  %v3603_v3 = vld [vmem:[#allocation2 + $0x8] sm:$0xff] }
0x20b2   : > { %3586 = vst.msk [vmem:[#allocation2] sm:$0xff] %vm847_vm5, %v3581_v0  ;;  %v3604_v46 = vld [vmem:[#allocation2 + $0x10] sm:$0xff]  ;;  %v3605_v50 = vld [vmem:[#allocation2 + $0x18] sm:$0xff] }
0x20b3   : > { %v7615_v61 = vpack.c.bf16 %v3605_v50, %v3604_v46  ;;  %v3606_v4 = vld [vmem:[#allocation2 + $0x20] sm:$0xff]  ;;  %v3607_v8 = vld [vmem:[#allocation2 + $0x28] sm:$0xff] }
0x20b4   : > { %v7621_v11 = vpack.c.bf16 %v3607_v8, %v3606_v4  ;;  %v3608_v6 = vld [vmem:[#allocation2 + $0x30] sm:$0xff]  ;;  %v3609_v30 = vld [vmem:[#allocation2 + $0x38] sm:$0xff]  ;;  %v5662_v46 = vld [vmem:[%s9710_s7 + $0x60] sm:$0xff] }
0x20b5   : > { %v7627_v7 = vpack.c.bf16 %v3609_v30, %v3608_v6  ;;  %v3610_v9 = vld [vmem:[#allocation2 + $0x40] sm:$0xff]  ;;  %v3611_v15 = vld [vmem:[#allocation2 + $0x48] sm:$0xff]  ;;  %v5665_v4 = vld [vmem:[%s9710_s7 + $0x78] sm:$0xff] }
0x20b6   : > { %v7633_v16 = vpack.c.bf16 %v3611_v15, %v3610_v9  ;;  %v3612_v10 = vld [vmem:[#allocation2 + $0x50] sm:$0xff]  ;;  %v3613_v12 = vld [vmem:[#allocation2 + $0x58] sm:$0xff]  ;;  %v5663_v50 = vld [vmem:[%s9710_s7 + $0x68] sm:$0xff] }
0x20b7   : > { %v7639_v13 = vpack.c.bf16 %v3613_v12, %v3612_v10  ;;  %v3614_v14 = vld [vmem:[#allocation2 + $0x60] sm:$0xff]  ;;  %v3615_v17 = vld [vmem:[#allocation2 + $0x68] sm:$0xff] }
0x20b8   : > { %v7645_v18 = vpack.c.bf16 %v3615_v17, %v3614_v14  ;;  %v3616_v19 = vld [vmem:[#allocation2 + $0x70] sm:$0xff]  ;;  %v3617_v20 = vld [vmem:[#allocation2 + $0x78] sm:$0xff]  ;;  %v5667_v12 = vld [vmem:[%s9711_s8 + $0x3] ss:$0 sm:$0xff] }
0x20b9   : > { %v3602_v42 = vld [vmem:[#allocation2] sm:$0xff]  ;;  %v7651_v22 = vpack.c.bf16 %v3617_v20, %v3616_v19 }
0x20ba   : > { %v7609_v55 = vpack.c.bf16 %v3603_v3, %v3602_v42 }
0x20bc   : > { %7611 = vmatprep.subr.msk.bf16.mxu0 %vm8357_vm13, %v7609_v55 }
0x20bd   : > { %7614 = vmatpush3.bf16.xpose.msk.msra.mxu0 %vm8357_vm13, %v7609_v55  ;;  %v5664_v55 = vld [vmem:[%s9710_s7 + $0x70] sm:$0xff] }
0x20be   : > { %7617 = vmatprep.subr.msk.bf16.mxu0 %vm8357_vm13, %v7615_v61  ;;  %v7725_v8 = vpack.c.bf16 %v5665_v4, %v5664_v55  ;;  %v5683_v4 = vld [vmem:[%s9716_s13 + $0x188] sm:$0xff] }
0x20c5   : > { %7620 = vmatpush3.bf16.xpose.msk.msra.mxu0 %vm8357_vm13, %v7615_v61  ;;  %v7721_v61 = vpack.c.bf16 %v5663_v50, %v5662_v46 }
0x20c6   : > { %7623 = vmatprep.subr.msk.bf16.mxu0 %vm8357_vm13, %v7621_v11 }
0x20cd   : > { %7626 = vmatpush3.bf16.xpose.msk.msra.mxu0 %vm8357_vm13, %v7621_v11 }
0x20ce   : > { %7629 = vmatprep.subr.msk.bf16.mxu0 %vm8357_vm13, %v7627_v7 }
0x20d5   : > { %7632 = vmatpush3.bf16.xpose.msk.msra.mxu0 %vm8357_vm13, %v7627_v7 }
0x20d6   : > { %7635 = vmatprep.subr.msk.bf16.mxu0 %vm8357_vm13, %v7633_v16 }
0x20dd   : > { %7638 = vmatpush3.bf16.xpose.msk.msra.mxu0 %vm8357_vm13, %v7633_v16 }
0x20de   : > { %7641 = vmatprep.subr.msk.bf16.mxu0 %vm8357_vm13, %v7639_v13 }
0x20e5   : > { %7644 = vmatpush3.bf16.xpose.msk.msra.mxu0 %vm8357_vm13, %v7639_v13 }
0x20e6   : > { %7647 = vmatprep.subr.msk.bf16.mxu0 %vm8357_vm13, %v7645_v18 }
0x20ed   : > { %7650 = vmatpush3.bf16.xpose.msk.msra.mxu0 %vm8357_vm13, %v7645_v18 }
0x20ee   : > { %7653 = vmatprep.subr.msk.bf16.mxu0 %vm8357_vm13, %v7651_v22 }
0x20f5   : > { %7656 = vmatpush3.bf16.xpose.msk.msra.mxu0 %vm8357_vm13, %v7651_v22 }
0x20f6   : > { %7722 = vmatprep.subr.bf16.mxu0 %v7721_v61 }
0x20fc   : > { %6790 = vmatmul.mubr.msk.f32.vlgmr.msra.gmra.mrb[26].mxu0 %vm655_vm0, %v9217_v60 }
0x20fd   : > { %7724 = vmatpush3.bf16.msra.mxu0 %v7721_v61  ;;  %v5682_v61 = vld [vmem:[%s9716_s13 + $0x180] sm:$0xff] }
0x20fe   : > { %7726 = vmatprep.subr.bf16.mxu0 %v7725_v8 }
0x2101   : > { %7728 = vmatpush3.bf16.msra.mxu0 %v7725_v8  ;;  %v7737_v8 = vpack.c.bf16 %v5683_v4, %v5682_v61 }
0x21cf   : > { %v6791_v24 = vpop.f32.mrb[26].mxu0 }
0x21d0   : > { %v3744_v25 = vadd.f32 %v6791_v24, %v8992_v2  ;;  %v3738_v33 = vpop.f32.mrb[27].mxu0 }
0x21d1   : > { %v3739_v27 = vadd.f32 %v3738_v33, %v8995_v62 }
0x21d2   : > { %3749 = vmax.xlane.f32.xlu0 %v3744_v25 }
0x21d3   : > { %3747 = vmax.xlane.f32.xlu1 %v3739_v27 }
0x21e4   : > { %3854 = vrot.lane.b32.xlu1 %v9217_v60, %s8107_s3 }
0x21e8   : > { %3852 = vrot.lane.b32.xlu0 %v9219_v1, %s8107_s3 }
0x225f   : > { %v3750_v28 = vpop.xlane.xlu0 %3749 }
0x2260   : > { %v3752_v34 = vsub.f32 %v3744_v25, %v3750_v28  ;;  %v3748_v32 = vpop.xlane.xlu1 %3747 }
0x2261   : > { %v3751_v35 = vsub.f32 %v3739_v27, %v3748_v32 }
0x2262   : > { %v3755_v36 = vmul.f32 1.442695, %v3752_v34 }
0x2263   : > { %v3753_v37 = vmul.f32 1.442695, %v3751_v35  ;;  %v3853_v21 = vpop.permute.xlu0 %3852 }
0x2264   : > { %3858 = vst.msk [vmem:[#allocation3] sm:$0xff] %vm847_vm5, %v3853_v21  ;;  %v3855_v2 = vpop.permute.xlu1 %3854 }
0x2265   : > { %3860 = vst.msk [vmem:[#allocation3 + $0x10] sm:$0xff] %vm850_vm6, %v3853_v21  ;;  %8043 = vpow2.f32 %v3753_v37  ;;  %3861 = vst.msk [vmem:[#allocation3 + $0x18] sm:$0xff] %vm850_vm6, %v3855_v2  ;;  %v5674_v37 = vld [vmem:[%s9714_s11 + $0x60] sm:$0xff] }
0x2266   : > { %3862 = vst.msk [vmem:[#allocation3 + $0x20] sm:$0xff] %vm853_vm7, %v3853_v21  ;;  %3863 = vst.msk [vmem:[#allocation3 + $0x28] sm:$0xff] %vm853_vm7, %v3855_v2  ;;  %8045 = vpow2.f32 %v3755_v36 }
0x2267   : > { %3864 = vst.msk [vmem:[#allocation3 + $0x30] sm:$0xff] %vm856_vm8, %v3853_v21  ;;  %3865 = vst.msk [vmem:[#allocation3 + $0x38] sm:$0xff] %vm856_vm8, %v3855_v2 }
0x2268   : > { %3866 = vst.msk [vmem:[#allocation3 + $0x40] sm:$0xff] %vm859_vm9, %v3853_v21  ;;  %3867 = vst.msk [vmem:[#allocation3 + $0x48] sm:$0xff] %vm859_vm9, %v3855_v2 }
0x2269   : > { %3868 = vst.msk [vmem:[#allocation3 + $0x50] sm:$0xff] %vm862_vm10, %v3853_v21  ;;  %3869 = vst.msk [vmem:[#allocation3 + $0x58] sm:$0xff] %vm862_vm10, %v3855_v2 }
0x226a   : > { %3870 = vst.msk [vmem:[#allocation3 + $0x60] sm:$0xff] %vm865_vm11, %v3853_v21  ;;  %3871 = vst.msk [vmem:[#allocation3 + $0x68] sm:$0xff] %vm865_vm11, %v3855_v2 }
0x226b   : > { %3872 = vst.msk [vmem:[#allocation3 + $0x70] sm:$0xff] %vm868_vm12, %v3853_v21  ;;  %3873 = vst.msk [vmem:[#allocation3 + $0x78] sm:$0xff] %vm868_vm12, %v3855_v2  ;;  %v3874_v62 = vld [vmem:[#allocation3] sm:$0xff]  ;;  %v5675_v21 = vld [vmem:[%s9714_s11 + $0x68] sm:$0xff] }
0x226c   : > { %3859 = vst.msk [vmem:[#allocation3 + $0x8] sm:$0xff] %vm847_vm5, %v3855_v2  ;;  %v3876_v57 = vld [vmem:[#allocation3 + $0x10] sm:$0xff]  ;;  %v3877_v58 = vld [vmem:[#allocation3 + $0x18] sm:$0xff] }
0x226d   : > { %v7693_v44 = vpack.c.bf16 %v3877_v58, %v3876_v57  ;;  %v3878_v48 = vld [vmem:[#allocation3 + $0x20] sm:$0xff]  ;;  %v3879_v40 = vld [vmem:[#allocation3 + $0x28] sm:$0xff]  ;;  %v5676_v2 = vld [vmem:[%s9714_s11 + $0x70] sm:$0xff] }
0x226e   : > { %v7697_v41 = vpack.c.bf16 %v3879_v40, %v3878_v48  ;;  %v3880_v43 = vld [vmem:[#allocation3 + $0x30] sm:$0xff]  ;;  %v3881_v45 = vld [vmem:[#allocation3 + $0x38] sm:$0xff] }
0x226f   : > { %v8044_v29 = vpop.eup %8043  ;;  %v7701_v52 = vpack.c.bf16 %v3881_v45, %v3880_v43  ;;  %v3882_v53 = vld [vmem:[#allocation3 + $0x40] sm:$0xff]  ;;  %v3883_v49 = vld [vmem:[#allocation3 + $0x48] sm:$0xff] }
0x2270   : > { %v8046_v38 = vpop.eup %8045  ;;  %6824 = vmatprep.mubr.f32.mxu1 %v8044_v29  ;;  %v7705_v51 = vpack.c.bf16 %v3883_v49, %v3882_v53  ;;  %v3884_v54 = vld [vmem:[#allocation3 + $0x50] sm:$0xff]  ;;  %v3885_v59 = vld [vmem:[#allocation3 + $0x58] sm:$0xff] }
0x2271   : > { %6825 = vmatmul.mubr.f32.vlgmr.msra.gmra.mrb[18].mxu1 %v8046_v38  ;;  %v7709_v60 = vpack.c.bf16 %v3885_v59, %v3884_v54  ;;  %v3886_v63 = vld [vmem:[#allocation3 + $0x60] sm:$0xff]  ;;  %v3887_v1 = vld [vmem:[#allocation3 + $0x68] sm:$0xff] }
0x2272   : > { %v7713_v39 = vpack.c.bf16 %v3887_v1, %v3886_v63  ;;  %v3888_v0 = vld [vmem:[#allocation3 + $0x70] sm:$0xff]  ;;  %v3889_v3 = vld [vmem:[#allocation3 + $0x78] sm:$0xff]  ;;  %v5672_v63 = vld [vmem:[%s9718_s15 + $0x3] ss:$0 sm:$0xff] }
0x2273   : > { %v3875_v23 = vld [vmem:[#allocation3 + $0x8] sm:$0xff]  ;;  %v7717_v42 = vpack.c.bf16 %v3889_v3, %v3888_v0  ;;  %v5673_v3 = vld [vmem:[%s9719_s16 + $0x3] ss:$0 sm:$0xff] }
0x2274   : > { %v7689_v26 = vpack.c.bf16 %v3875_v23, %v3874_v62  ;;  %v7729_v62 = vpack.c.bf16 %v5675_v21, %v5674_v37  ;;  %v5677_v23 = vld [vmem:[%s9714_s11 + $0x78] sm:$0xff] }
0x2276   : > { %7690 = vmatprep.subr.bf16.mxu1 %v7689_v26  ;;  %7730 = vmatprep.subr.bf16.mxu0 %v7729_v62 }
0x2277   : > { %7692 = vmatpush3.bf16.msra.mxu1 %v7689_v26  ;;  %v7733_v26 = vpack.c.bf16 %v5677_v23, %v5676_v2 }
0x2278   : > { %7694 = vmatprep.subr.bf16.mxu1 %v7693_v44 }
0x227b   : > { %7696 = vmatpush3.bf16.msra.mxu1 %v7693_v44 }
0x227c   : > { %7698 = vmatprep.subr.bf16.mxu1 %v7697_v41 }
0x227f   : > { %7700 = vmatpush3.bf16.msra.mxu1 %v7697_v41 }
0x2280   : > { %7702 = vmatprep.subr.bf16.mxu1 %v7701_v52 }
0x2283   : > { %7704 = vmatpush3.bf16.msra.mxu1 %v7701_v52 }
0x2284   : > { %7706 = vmatprep.subr.bf16.mxu1 %v7705_v51 }
0x2287   : > { %7708 = vmatpush3.bf16.msra.mxu1 %v7705_v51 }
0x2288   : > { %7710 = vmatprep.subr.bf16.mxu1 %v7709_v60 }
0x228b   : > { %7712 = vmatpush3.bf16.msra.mxu1 %v7709_v60 }
0x228c   : > { %7714 = vmatprep.subr.bf16.mxu1 %v7713_v39 }
0x228f   : > { %7716 = vmatpush3.bf16.msra.mxu1 %v7713_v39 }
0x2290   : > { %7718 = vmatprep.subr.bf16.mxu1 %v7717_v42 }
0x2293   : > { %7720 = vmatpush3.bf16.msra.mxu1 %v7717_v42 }
0x2344   : > { %v6826_v11 = vpop.f32.mrb[18].mxu1 }
0x2345   : > { %8047 = vrcp.f32 %v6826_v11  ;;  %v3839_v6 = vpop.f32.mrb[19].mxu1  ;;  %v5684_v11 = vld [vmem:[%s9716_s13 + $0x190] sm:$0xff] }
0x2346   : > { %8049 = vrcp.f32 %v3839_v6  ;;  %v5685_v6 = vld [vmem:[%s9716_s13 + $0x198] sm:$0xff] }
0x234f   : > { %v8048_v30 = vpop.eup %8047 }
0x2350   : > { %v8050_v7 = vpop.eup %8049  ;;  %v3851_v15 = vmul.f32 %v8048_v30, %v8046_v38  ;;  %v7741_v30 = vpack.c.bf16 %v5685_v6, %v5684_v11  ;;  %v5704_v6 = vld [vmem:[%s9708_s5 + $0x80] sm:$0xff] }
0x2351   : > { %v3850_v9 = vmul.f32 %v8050_v7, %v8044_v29  ;;  %v5686_v7 = vld [vmem:[%s9716_s13 + $0x1a0] sm:$0xff] }
0x2353   : > { %6859 = vmatprep.mubr.f32.mxu1 %v3850_v9  ;;  %v5687_v9 = vld [vmem:[%s9716_s13 + $0x1a8] sm:$0xff] }
0x2354   : > { %6860 = vmatmul.mubr.f32.vlgmr.msra.gmra.mrb[20].mxu1 %v3851_v15  ;;  %v7745_v15 = vpack.c.bf16 %v5687_v9, %v5686_v7  ;;  %v5706_v7 = vld [vmem:[%s9708_s5 + $0x90] sm:$0xff] }
0x2427   : > { %v6861_v16 = vpop.f32.mrb[20].mxu1 }
0x2428   : > { %v3956_v10 = vpop.f32.mrb[21].mxu1 }
0x2429   : > { %6870 = vmatprep.mubr.msk.f32.mxu0 %vm655_vm0, %v3956_v10  ;;  %v5689_v10 = vld [vmem:[%s9716_s13 + $0x1b8] sm:$0xff] }
0x242a   : > { %6871 = vmatmul.mubr.msk.f32.vlgmr.msra.gmra.mrb[28].mxu0 %vm655_vm0, %v6861_v16  ;;  %v5688_v16 = vld [vmem:[%s9716_s13 + $0x1b0] sm:$0xff] }
0x242b   : > { %7732 = vmatpush3.bf16.msra.mxu0 %v7729_v62 }
0x242c   : > { %7734 = vmatprep.subr.bf16.mxu0 %v7733_v26 }
0x242f   : > { %7736 = vmatpush3.bf16.msra.mxu0 %v7733_v26 }
0x2430   : > { %7738 = vmatprep.subr.bf16.mxu0 %v7737_v8 }
0x24fd   : > { %v6872_v13 = vpop.f32.mrb[28].mxu0 }
0x24fe   : > { %v4056_v14 = vadd.f32 %v6872_v13, %v5667_v12  ;;  %v4050_v17 = vpop.f32.mrb[29].mxu0  ;;  %v7749_v13 = vpack.c.bf16 %v5689_v10, %v5688_v16 }
0x24ff   : > { %v4051_v18 = vadd.f32 %v5667_v12, %v4050_v17  ;;  %v5690_v12 = vld [vmem:[%s9716_s13 + $0x1c0] sm:$0xff] }
0x2500   : > { %v9317_v19 = vadd.f32 %v4056_v14, %v9182_v5  ;;  %v5691_v14 = vld [vmem:[%s9716_s13 + $0x1c8] sm:$0xff] }
0x2501   : > { %v9320_v20 = vadd.f32 %v4051_v18, %v9184_v31  ;;  %v7753_v17 = vpack.c.bf16 %v5691_v14, %v5690_v12  ;;  %v5692_v18 = vld [vmem:[%s9716_s13 + $0x1d0] sm:$0xff] }
0x2502   : > { %v4068_v22 = vsel %vm655_vm0, %v9317_v19, 0.0 }
0x2503   : > { %4069 = vadd.xlane.f32.xlu0 %v4068_v22  ;;  %v4065_v24 = vsel %vm655_vm0, %v9320_v20, 0.0  ;;  %v5693_v22 = vld [vmem:[%s9716_s13 + $0x1d8] sm:$0xff] }
0x2504   : > { %4066 = vadd.xlane.f32.xlu1 %v4065_v24  ;;  %v7757_v24 = vpack.c.bf16 %v5693_v22, %v5692_v18 }
0x2590   : > { %v4070_v25 = vpop.xlane.xlu0 %4069 }
0x2591   : > { %v4072_v33 = vmul.f32 0.03125, %v4070_v25  ;;  %v4067_v27 = vpop.xlane.xlu1 %4066  ;;  %v5694_v25 = vld [vmem:[%s9716_s13 + $0x1e0] sm:$0xff] }
0x2592   : > { %v4071_v28 = vmul.f32 0.03125, %v4067_v27 }
0x2593   : > { %v4074_v34 = vsub.f32 %v9317_v19, %v4072_v33  ;;  %v5695_v33 = vld [vmem:[%s9716_s13 + $0x1e8] sm:$0xff] }
0x2594   : > { %v4073_v5 = vsub.f32 %v9320_v20, %v4071_v28  ;;  %v7761_v27 = vpack.c.bf16 %v5695_v33, %v5694_v25  ;;  %v5696_v28 = vld [vmem:[%s9716_s13 + $0x1f0] sm:$0xff] }
0x2595   : > { %v4076_v32 = vmul.f32 %v4074_v34, %v4074_v34 }
0x2596   : > { %v4075_v35 = vmul.f32 %v4073_v5, %v4073_v5 }
0x2597   : > { %v4080_v31 = vsel %vm655_vm0, %v4076_v32, 0.0  ;;  %v5679_v32 = vld [vmem:[%s9715_s12 + $0x3] ss:$0 sm:$0xff] }
0x2598   : > { %4081 = vadd.xlane.f32.xlu1 %v4080_v31  ;;  %v4077_v36 = vsel %vm655_vm0, %v4075_v35, 0.0 }
0x2599   : > { %4078 = vadd.xlane.f32.xlu0 %v4077_v36 }
0x2625   : > { %v4082_v57 = vpop.xlane.xlu1 %4081 }
0x2626   : > { %v4084_v58 = vmul.f32 0.032258064, %v4082_v57  ;;  %v4079_v29 = vpop.xlane.xlu0 %4078 }
0x2627   : > { %v4083_v38 = vmul.f32 0.032258064, %v4079_v29 }
0x2628   : > { %8051 = vrsqrt.f32 %v4084_v58  ;;  %vm4094_vm14 = vcmp.eq.f32.partialorder %v4084_v58, inf  ;;  %v4097_v41 = vand.u32 2147483648, %v4084_v58  ;;  %vm4096_vm15 = vcmp.eq.f32.partialorder %v4084_v58, 0.0 }
0x2629   : > { %8053 = vrsqrt.f32 %v4083_v38  ;;  %vm4087_vm1 = vcmp.eq.f32.partialorder %v4083_v38, inf  ;;  %v4090_v52 = vand.u32 2147483648, %v4083_v38  ;;  %vm4089_vm2 = vcmp.eq.f32.partialorder %v4083_v38, 0.0 }
0x2632   : > { %v8052_v44 = vpop.eup %8051 }
0x2633   : > { %v8054_v48 = vpop.eup %8053  ;;  %v4093_v40 = vmul.f32 %v8052_v44, %v4084_v58 }
0x2634   : > { %v4086_v43 = vmul.f32 %v8054_v48, %v4083_v38 }
0x2635   : > { %v4095_v45 = vsel %vm4094_vm14, %v4084_v58, %v4093_v40 }
0x2636   : > { %v4098_v53 = vsel %vm4096_vm15, %v4097_v41, %v4095_v45  ;;  %v4088_v49 = vsel %vm4087_vm1, %v4083_v38, %v4086_v43 }
0x2637   : > { %v4100_v51 = vadd.f32 1e-06, %v4098_v53  ;;  %v4091_v54 = vsel %vm4089_vm2, %v4090_v52, %v4088_v49 }
0x2638   : > { %v4099_v59 = vadd.f32 1e-06, %v4091_v54  ;;  %v5699_v54 = vld [vmem:[%s9717_s14 + $0x3] ss:$0 sm:$0xff] }
0x2639   : > { %8055 = vrcp.f32 %v4100_v51 }
0x263a   : > { %8057 = vrcp.f32 %v4099_v59 }
0x2643   : > { %v8056_v60 = vpop.eup %8055 }
0x2644   : > { %v8058_v1 = vpop.eup %8057  ;;  %v4104_v39 = vmul.f32 %v8056_v60, %v4074_v34  ;;  %v5697_v34 = vld [vmem:[%s9716_s13 + $0x1f8] sm:$0xff] }
0x2645   : > { %v4103_v0 = vmul.f32 %v8058_v1, %v4073_v5  ;;  %v7765_v5 = vpack.c.bf16 %v5697_v34, %v5696_v28 }
0x2646   : > { %v4112_v42 = vmul.f32 %v5672_v63, %v4104_v39 }
0x2647   : > { %v4111_v46 = vmul.f32 %v5672_v63, %v4103_v0 }
0x2648   : > { %v4120_v55 = vadd.f32 %v5673_v3, %v4112_v42 }
0x2649   : > { %v4119_v50 = vadd.f32 %v5673_v3, %v4111_v46 }
0x264b   : > { %6881 = vmatprep.mubr.msk.f32.mxu0 %vm655_vm0, %v4119_v50 }
0x264c   : > { %6882 = vmatmul.mubr.msk.f32.vlgmr.msra.gmra.mrb[30].mxu0 %vm655_vm0, %v4120_v55 }
0x264d   : > { %7740 = vmatpush3.bf16.msra.mxu0 %v7737_v8 }
0x264e   : > { %7742 = vmatprep.subr.bf16.mxu0 %v7741_v30 }
0x2651   : > { %7744 = vmatpush3.bf16.msra.mxu0 %v7741_v30  ;;  %v5705_v30 = vld [vmem:[%s9708_s5 + $0x88] sm:$0xff] }
0x2652   : > { %7746 = vmatprep.subr.bf16.mxu0 %v7745_v15  ;;  %v7769_v9 = vpack.c.bf16 %v5705_v30, %v5704_v6 }
0x2654   : > { %7770 = vmatprep.subr.bf16.mxu1 %v7769_v9 }
0x2655   : > { %7748 = vmatpush3.bf16.msra.mxu0 %v7745_v15  ;;  %v5707_v15 = vld [vmem:[%s9708_s5 + $0x98] sm:$0xff]  ;;  %7772 = vmatpush3.bf16.msra.mxu1 %v7769_v9  ;;  %v4670_v9 = vld [vmem:[%s9707_s4] sm:$0xff] }
0x2656   : > { %7750 = vmatprep.subr.bf16.mxu0 %v7749_v13  ;;  %v7773_v16 = vpack.c.bf16 %v5707_v15, %v5706_v7  ;;  %v4671_v15 = vld [vmem:[%s9707_s4 + $0x8] sm:$0xff] }
0x2658   : > { %7774 = vmatprep.subr.bf16.mxu1 %v7773_v16 }
0x2659   : > { %7752 = vmatpush3.bf16.msra.mxu0 %v7749_v13  ;;  %7776 = vmatpush3.bf16.msra.mxu1 %v7773_v16  ;;  %v4672_v16 = vld [vmem:[%s9707_s4 + $0x10] sm:$0xff] }
0x265a   : > { %7754 = vmatprep.subr.bf16.mxu0 %v7753_v17 }
0x265d   : > { %7756 = vmatpush3.bf16.msra.mxu0 %v7753_v17 }
0x265e   : > { %7758 = vmatprep.subr.bf16.mxu0 %v7757_v24 }
0x2661   : > { %7760 = vmatpush3.bf16.msra.mxu0 %v7757_v24 }
0x2662   : > { %7762 = vmatprep.subr.bf16.mxu0 %v7761_v27 }
0x2665   : > { %7764 = vmatpush3.bf16.msra.mxu0 %v7761_v27 }
0x2666   : > { %7766 = vmatprep.subr.bf16.mxu0 %v7765_v5 }
0x2669   : > { %7768 = vmatpush3.bf16.msra.mxu0 %v7765_v5 }
0x271f   : > { %v6883_v35 = vpop.f32.mrb[30].mxu0 }
0x2720   : > { %v4212_v31 = vadd.f32 %v6883_v35, %v5679_v32  ;;  %v4206_v36 = vpop.f32.mrb[31].mxu0 }
0x2721   : > { %v4207_v37 = vadd.f32 %v5679_v32, %v4206_v36  ;;  %v5702_v36 = vld [vmem:[%s9712_s9 + $0x4] ss:$0 sm:$0xff] }
0x2722   : > { %v4216_v21 = vmul.f32 %v4212_v31, %v4212_v31 }
0x2723   : > { %v4215_v2 = vmul.f32 %v4207_v37, %v4207_v37 }
0x2724   : > { %v4218_v62 = vmul.f32 %v4216_v21, %v4212_v31 }
0x2725   : > { %v4217_v23 = vmul.f32 %v4215_v2, %v4207_v37 }
0x2726   : > { %v4220_v26 = vmul.f32 0.044715, %v4218_v62  ;;  %v5703_v62 = vld [vmem:[%s9713_s10 + $0x4] ss:$0 sm:$0xff] }
0x2727   : > { %v4219_v57 = vmul.f32 0.044715, %v4217_v23 }
0x2728   : > { %v4222_v58 = vadd.f32 %v4220_v26, %v4212_v31 }
0x2729   : > { %v4221_v29 = vadd.f32 %v4219_v57, %v4207_v37 }
0x272a   : > { %v4224_v38 = vmul.f32 0.7978846, %v4222_v58 }
0x272b   : > { %v4223_v44 = vmul.f32 0.7978846, %v4221_v29  ;;  %v5709_v29 = vld [vmem:[%s9709_s6 + $0x4] ss:$0 sm:$0xff] }
0x272c   : > { %8059 = vtanh.f32 %v4224_v38 }
0x272d   : > { %8061 = vtanh.f32 %v4223_v44 }
0x2736   : > { %v8060_v48 = vpop.eup %8059 }
0x2737   : > { %v8062_v40 = vpop.eup %8061  ;;  %v4228_v41 = vadd.f32 1.0, %v8060_v48 }
0x2738   : > { %v4227_v43 = vadd.f32 1.0, %v8062_v40 }
0x2739   : > { %v4230_v45 = vmul.f32 0.5, %v4228_v41 }
0x273a   : > { %v4229_v52 = vmul.f32 0.5, %v4227_v43 }
0x273b   : > { %v4232_v49 = vmul.f32 %v4230_v45, %v4212_v31 }
0x273c   : > { %v4231_v53 = vmul.f32 %v4229_v52, %v4207_v37 }
0x273e   : > { %6916 = vmatprep.mubr.f32.mxu0 %v4231_v53 }
0x273f   : > { %6917 = vmatmul.mubr.f32.vlgmr.msra.gmra.mrb[32].mxu0 %v4232_v49 }
0x2812   : > { %v6918_v51 = vpop.f32.mrb[32].mxu0 }
0x2813   : > { %v4326_v59 = vadd.f32 %v6918_v51, %v9317_v19  ;;  %v4316_v60 = vpop.f32.mrb[33].mxu0 }
0x2814   : > { %v4325_v63 = vadd.f32 %v4316_v60, %v9320_v20 }
0x2815   : > { %v9406_v1 = vadd.f32 %v5699_v54, %v4326_v59 }
0x2816   : > { %v9408_v39 = vadd.f32 %v5699_v54, %v4325_v63 }
0x2817   : > { %v4344_v0 = vsel %vm655_vm0, %v9406_v1, 0.0 }
0x2818   : > { %4345 = vadd.xlane.f32.xlu1 %v4344_v0  ;;  %v4341_v3 = vsel %vm655_vm0, %v9408_v39, 0.0 }
0x2819   : > { %4342 = vadd.xlane.f32.xlu0 %v4341_v3 }
0x28a5   : > { %v4346_v42 = vpop.xlane.xlu1 %4345 }
0x28a6   : > { %v4348_v46 = vmul.f32 0.03125, %v4346_v42  ;;  %v4343_v50 = vpop.xlane.xlu0 %4342 }
0x28a7   : > { %v4347_v55 = vmul.f32 0.03125, %v4343_v50 }
0x28a8   : > { %v4350_v19 = vsub.f32 %v9406_v1, %v4348_v46 }
0x28a9   : > { %v4349_v20 = vsub.f32 %v9408_v39, %v4347_v55 }
0x28aa   : > { %v4352_v61 = vmul.f32 %v4350_v19, %v4350_v19 }
0x28ab   : > { %v4351_v4 = vmul.f32 %v4349_v20, %v4349_v20 }
0x28ac   : > { %v4356_v8 = vsel %vm655_vm0, %v4352_v61, 0.0 }
0x28ad   : > { %4357 = vadd.xlane.f32.xlu1 %v4356_v8  ;;  %v4353_v11 = vsel %vm655_vm0, %v4351_v4, 0.0 }
0x28ae   : > { %4354 = vadd.xlane.f32.xlu0 %v4353_v11 }
0x293a   : > { %v4358_v10 = vpop.xlane.xlu1 %4357 }
0x293b   : > { %v4360_v12 = vmul.f32 0.032258064, %v4358_v10  ;;  %v4355_v13 = vpop.xlane.xlu0 %4354  ;;  %v7825_v10 = vpack.c.bf16 %v4671_v15, %v4670_v9 }
0x293c   : > { %v4359_v14 = vmul.f32 0.032258064, %v4355_v13  ;;  %v4674_v13 = vld [vmem:[%s9707_s4 + $0x20] sm:$0xff] }
0x293d   : > { %8063 = vrsqrt.f32 %v4360_v12  ;;  %vm4370_vm3 = vcmp.eq.f32.partialorder %v4360_v12, inf  ;;  %v4373_v24 = vand.u32 2147483648, %v4360_v12  ;;  %vm4372_vm4 = vcmp.eq.f32.partialorder %v4360_v12, 0.0  ;;  %7826 = vmatprep.subr.bf16.mxu0 %v7825_v10 }
0x293e   : > { %8065 = vrsqrt.f32 %v4359_v14  ;;  %vm4363_vm14 = vcmp.eq.f32.partialorder %v4359_v14, inf  ;;  %v4366_v27 = vand.u32 2147483648, %v4359_v14  ;;  %vm4365_vm15 = vcmp.eq.f32.partialorder %v4359_v14, 0.0  ;;  %7828 = vmatpush3.bf16.msra.mxu0 %v7825_v10  ;;  %v5730_v10 = vld [vmem:[%s9710_s7 + $0x80] sm:$0xff] }
0x2947   : > { %v8064_v17 = vpop.eup %8063 }
0x2948   : > { %v8066_v18 = vpop.eup %8065  ;;  %v4369_v22 = vmul.f32 %v8064_v17, %v4360_v12 }
0x2949   : > { %v4362_v25 = vmul.f32 %v8066_v18, %v4359_v14  ;;  %v4676_v18 = vld [vmem:[%s9707_s4 + $0x30] sm:$0xff] }
0x294a   : > { %v4371_v33 = vsel %vm4370_vm3, %v4360_v12, %v4369_v22  ;;  %v7829_v12 = vpack.c.bf16 %v4673_v56, %v4672_v16  ;;  %v4677_v22 = vld [vmem:[%s9707_s4 + $0x38] sm:$0xff]  ;;  %v5731_v56 = vld [vmem:[%s9710_s7 + $0x88] sm:$0xff] }
0x294b   : > { %v4374_v28 = vsel %vm4372_vm4, %v4373_v24, %v4371_v33  ;;  %v4364_v34 = vsel %vm4363_vm14, %v4359_v14, %v4362_v25  ;;  %v4675_v14 = vld [vmem:[%s9707_s4 + $0x28] sm:$0xff]  ;;  %v7837_v24 = vpack.c.bf16 %v4677_v22, %v4676_v18  ;;  %v4531_v33 = vld [vmem:[%s8439_s1] sm:$0xff] }
0x294c   : > { %v4376_v5 = vadd.f32 1e-06, %v4374_v28  ;;  %v4367_v32 = vsel %vm4365_vm15, %v4366_v27, %v4364_v34  ;;  %7830 = vmatprep.subr.bf16.mxu0 %v7829_v12  ;;  %v7833_v17 = vpack.c.bf16 %v4675_v14, %v4674_v13  ;;  %v4532_v25 = vld [vmem:[%s8439_s1 + $0x8] sm:$0xff]  ;;  %v7889_v13 = vpack.c.bf16 %v5731_v56, %v5730_v10  ;;  %v5733_v14 = vld [vmem:[%s9710_s7 + $0x98] sm:$0xff] }
0x294d   : > { %v4375_v35 = vadd.f32 1e-06, %v4367_v32  ;;  %7832 = vmatpush3.bf16.msra.mxu0 %v7829_v12  ;;  %v4678_v32 = vld [vmem:[%s9707_s4 + $0x40] sm:$0xff]  ;;  %v5732_v12 = vld [vmem:[%s9710_s7 + $0x90] sm:$0xff] }
0x294e   : > { %8067 = vrcp.f32 %v4376_v5  ;;  %7834 = vmatprep.subr.bf16.mxu0 %v7833_v17 }
0x294f   : > { %8069 = vrcp.f32 %v4375_v35  ;;  %v4679_v35 = vld [vmem:[%s9707_s4 + $0x48] sm:$0xff] }
0x2951   : > { %7836 = vmatpush3.bf16.msra.mxu0 %v7833_v17  ;;  %v7893_v17 = vpack.c.bf16 %v5733_v14, %v5732_v12  ;;  %v5750_v12 = vld [vmem:[%s9716_s13 + $0x200] sm:$0xff] }
0x2952   : > { %7838 = vmatprep.subr.bf16.mxu0 %v7837_v24 }
0x2955   : > { %7840 = vmatpush3.bf16.msra.mxu0 %v7837_v24 }
0x2958   : > { %v8068_v31 = vpop.eup %8067 }
0x2959   : > { %v8070_v37 = vpop.eup %8069  ;;  %v4380_v21 = vmul.f32 %v8068_v31, %v4350_v19  ;;  %v7841_v31 = vpack.c.bf16 %v4679_v35, %v4678_v32 }
0x295a   : > { %v4379_v2 = vmul.f32 %v8070_v37, %v4349_v20  ;;  %v4681_v37 = vld [vmem:[%s9707_s4 + $0x58] sm:$0xff] }
0x295b   : > { %v4388_v23 = vmul.f32 %v5702_v36, %v4380_v21  ;;  %7842 = vmatprep.subr.bf16.mxu0 %v7841_v31  ;;  %v4682_v21 = vld [vmem:[%s9707_s4 + $0x60] sm:$0xff] }
0x295c   : > { %v4387_v26 = vmul.f32 %v5702_v36, %v4379_v2  ;;  %v4680_v36 = vld [vmem:[%s9707_s4 + $0x50] sm:$0xff]  ;;  %7844 = vmatpush3.bf16.msra.mxu0 %v7841_v31 }
0x295d   : > { %v4396_v58 = vadd.f32 %v5703_v62, %v4388_v23  ;;  %v7845_v2 = vpack.c.bf16 %v4681_v37, %v4680_v36 }
0x295e   : > { %v4395_v57 = vadd.f32 %v5703_v62, %v4387_v26  ;;  %v4683_v62 = vld [vmem:[%s9707_s4 + $0x68] sm:$0xff]  ;;  %v4684_v26 = vld [vmem:[%s9707_s4 + $0x70] sm:$0xff] }
0x295f   : > { %v7849_v23 = vpack.c.bf16 %v4683_v62, %v4682_v21  ;;  %7846 = vmatprep.subr.bf16.mxu0 %v7845_v2 }
0x2960   : > { %6927 = vmatprep.mubr.msk.f32.mxu1 %vm655_vm0, %v4395_v57  ;;  %v4685_v57 = vld [vmem:[%s9707_s4 + $0x78] sm:$0xff]  ;;  %7848 = vmatpush3.bf16.msra.mxu0 %v7845_v2 }
0x2961   : > { %6928 = vmatmul.mubr.msk.f32.vlgmr.msra.gmra.mrb[22].mxu1 %vm655_vm0, %v4396_v58  ;;  %7850 = vmatprep.subr.bf16.mxu0 %v7849_v23  ;;  %v7853_v58 = vpack.c.bf16 %v4685_v57, %v4684_v26 }
0x2964   : > { %7852 = vmatpush3.bf16.msra.mxu0 %v7849_v23 }
0x2965   : > { %7854 = vmatprep.subr.bf16.mxu0 %v7853_v58 }
0x2968   : > { %7856 = vmatpush3.bf16.msra.mxu0 %v7853_v58 }
0x2a34   : > { %v6929_v38 = vpop.f32.mrb[22].mxu1 }
0x2a35   : > { %v9441_v44 = vadd.f32 %v6929_v38, %v5709_v29  ;;  %v4482_v48 = vpop.f32.mrb[23].mxu1 }
0x2a36   : > { %v9443_v40 = vadd.f32 %v5709_v29, %v4482_v48 }
0x2a37   : > { %4495 = vrot.lane.b32.xlu1 %v9441_v44, %s8106_s25 }
0x2a38   : > { %4493 = vrot.lane.b32.xlu0 %v9443_v40, %s8106_s25  ;;  %6962 = vmatprep.mubr.msk.f32.mxu1 %vm655_vm0, %v9443_v40  ;;  %s647_s25 = scalar_lea.vmem %s9732_s27, %s9734_s21 }
0x2aa9   : > { %v4496_v41 = vpop.permute.xlu1 %4495 }
0x2aaa   : > { %4500 = vst.msk [vmem:[#allocation2 + $0x8] sm:$0xff] %vm847_vm5, %v4496_v41  ;;  %v4494_v43 = vpop.permute.xlu0 %4493 }
0x2aab   : > { %4502 = vst.msk [vmem:[#allocation2 + $0x18] sm:$0xff] %vm850_vm6, %v4496_v41  ;;  %4501 = vst.msk [vmem:[#allocation2 + $0x10] sm:$0xff] %vm850_vm6, %v4494_v43 }
0x2aac   : > { %4504 = vst.msk [vmem:[#allocation2 + $0x28] sm:$0xff] %vm853_vm7, %v4496_v41  ;;  %4503 = vst.msk [vmem:[#allocation2 + $0x20] sm:$0xff] %vm853_vm7, %v4494_v43 }
0x2aad   : > { %4506 = vst.msk [vmem:[#allocation2 + $0x38] sm:$0xff] %vm856_vm8, %v4496_v41  ;;  %4505 = vst.msk [vmem:[#allocation2 + $0x30] sm:$0xff] %vm856_vm8, %v4494_v43 }
0x2aae   : > { %4508 = vst.msk [vmem:[#allocation2 + $0x48] sm:$0xff] %vm859_vm9, %v4496_v41  ;;  %4507 = vst.msk [vmem:[#allocation2 + $0x40] sm:$0xff] %vm859_vm9, %v4494_v43 }
0x2aaf   : > { %4510 = vst.msk [vmem:[#allocation2 + $0x58] sm:$0xff] %vm862_vm10, %v4496_v41  ;;  %4509 = vst.msk [vmem:[#allocation2 + $0x50] sm:$0xff] %vm862_vm10, %v4494_v43 }
0x2ab0   : > { %4512 = vst.msk [vmem:[#allocation2 + $0x68] sm:$0xff] %vm865_vm11, %v4496_v41  ;;  %4511 = vst.msk [vmem:[#allocation2 + $0x60] sm:$0xff] %vm865_vm11, %v4494_v43 }
0x2ab1   : > { %4514 = vst.msk [vmem:[#allocation2 + $0x78] sm:$0xff] %vm868_vm12, %v4496_v41  ;;  %4513 = vst.msk [vmem:[#allocation2 + $0x70] sm:$0xff] %vm868_vm12, %v4494_v43  ;;  %v4516_v45 = vld [vmem:[#allocation2 + $0x8] sm:$0xff] }
0x2ab2   : > { %4499 = vst.msk [vmem:[#allocation2] sm:$0xff] %vm847_vm5, %v4494_v43  ;;  %v4517_v53 = vld [vmem:[#allocation2 + $0x10] sm:$0xff]  ;;  %v4518_v49 = vld [vmem:[#allocation2 + $0x18] sm:$0xff] }
0x2ab3   : > { %v7783_v54 = vpack.c.bf16 %v4518_v49, %v4517_v53  ;;  %v4519_v59 = vld [vmem:[#allocation2 + $0x20] sm:$0xff]  ;;  %v4520_v60 = vld [vmem:[#allocation2 + $0x28] sm:$0xff] }
0x2ab4   : > { %v7789_v63 = vpack.c.bf16 %v4520_v60, %v4519_v59  ;;  %v4521_v0 = vld [vmem:[#allocation2 + $0x30] sm:$0xff]  ;;  %v4522_v3 = vld [vmem:[#allocation2 + $0x38] sm:$0xff] }
0x2ab5   : > { %v7795_v42 = vpack.c.bf16 %v4522_v3, %v4521_v0  ;;  %v4523_v46 = vld [vmem:[#allocation2 + $0x40] sm:$0xff]  ;;  %v4524_v50 = vld [vmem:[#allocation2 + $0x48] sm:$0xff] }
0x2ab6   : > { %v7801_v55 = vpack.c.bf16 %v4524_v50, %v4523_v46  ;;  %v4525_v19 = vld [vmem:[#allocation2 + $0x50] sm:$0xff]  ;;  %v4526_v20 = vld [vmem:[#allocation2 + $0x58] sm:$0xff] }
0x2ab7   : > { %v7807_v61 = vpack.c.bf16 %v4526_v20, %v4525_v19  ;;  %v4527_v4 = vld [vmem:[#allocation2 + $0x60] sm:$0xff]  ;;  %v4528_v8 = vld [vmem:[#allocation2 + $0x68] sm:$0xff] }
0x2ab8   : > { %v7813_v11 = vpack.c.bf16 %v4528_v8, %v4527_v4  ;;  %v4529_v6 = vld [vmem:[#allocation2 + $0x70] sm:$0xff]  ;;  %v4530_v30 = vld [vmem:[#allocation2 + $0x78] sm:$0xff] }
0x2ab9   : > { %v4515_v52 = vld [vmem:[#allocation2] sm:$0xff]  ;;  %v7819_v7 = vpack.c.bf16 %v4530_v30, %v4529_v6 }
0x2aba   : > { %v7777_v51 = vpack.c.bf16 %v4516_v45, %v4515_v52 }
0x2abc   : > { %7779 = vmatprep.subr.msk.bf16.mxu1 %vm8357_vm13, %v7777_v51 }
0x2abd   : > { %7782 = vmatpush3.bf16.xpose.msk.msra.mxu1 %vm8357_vm13, %v7777_v51 }
0x2abe   : > { %7785 = vmatprep.subr.msk.bf16.mxu1 %vm8357_vm13, %v7783_v54 }
0x2ac5   : > { %7788 = vmatpush3.bf16.xpose.msk.msra.mxu1 %vm8357_vm13, %v7783_v54 }
0x2ac6   : > { %7791 = vmatprep.subr.msk.bf16.mxu1 %vm8357_vm13, %v7789_v63 }
0x2acd   : > { %7794 = vmatpush3.bf16.xpose.msk.msra.mxu1 %vm8357_vm13, %v7789_v63 }
0x2ace   : > { %7797 = vmatprep.subr.msk.bf16.mxu1 %vm8357_vm13, %v7795_v42 }
0x2ad5   : > { %7800 = vmatpush3.bf16.xpose.msk.msra.mxu1 %vm8357_vm13, %v7795_v42 }
0x2ad6   : > { %7803 = vmatprep.subr.msk.bf16.mxu1 %vm8357_vm13, %v7801_v55 }
0x2add   : > { %7806 = vmatpush3.bf16.xpose.msk.msra.mxu1 %vm8357_vm13, %v7801_v55 }
0x2ade   : > { %7809 = vmatprep.subr.msk.bf16.mxu1 %vm8357_vm13, %v7807_v61 }
0x2ae5   : > { %7812 = vmatpush3.bf16.xpose.msk.msra.mxu1 %vm8357_vm13, %v7807_v61 }
0x2ae6   : > { %7815 = vmatprep.subr.msk.bf16.mxu1 %vm8357_vm13, %v7813_v11 }
0x2aed   : > { %7818 = vmatpush3.bf16.xpose.msk.msra.mxu1 %vm8357_vm13, %v7813_v11 }
0x2aee   : > { %7821 = vmatprep.subr.msk.bf16.mxu1 %vm8357_vm13, %v7819_v7 }
0x2af5   : > { %7824 = vmatpush3.bf16.xpose.msk.msra.mxu1 %vm8357_vm13, %v7819_v7  ;;  %vm5364_vm13 = vcmask 1040384  }
0x2af6   : > { %7890 = vmatprep.subr.bf16.mxu1 %v7889_v13 }
0x2afc   : > { %6963 = vmatmul.mubr.msk.f32.vlgmr.msra.gmra.mrb[24].mxu1 %vm655_vm0, %v9441_v44 }
0x2afd   : > { %7892 = vmatpush3.bf16.msra.mxu1 %v7889_v13  ;;  %v5751_v13 = vld [vmem:[%s9716_s13 + $0x208] sm:$0xff] }
0x2afe   : > { %7894 = vmatprep.subr.bf16.mxu1 %v7893_v17  ;;  %v7905_v14 = vpack.c.bf16 %v5751_v13, %v5750_v12 }
0x2b01   : > { %7896 = vmatpush3.bf16.msra.mxu1 %v7893_v17  ;;  %v5752_v17 = vld [vmem:[%s9716_s13 + $0x210] sm:$0xff] }
0x2bcf   : > { %v6964_v27 = vpop.f32.mrb[24].mxu1 }
0x2bd0   : > { %v4657_v28 = vadd.f32 %v6964_v27, %v4532_v25  ;;  %v4651_v34 = vpop.f32.mrb[25].mxu1 }
0x2bd1   : > { %v4652_v5 = vadd.f32 %v4651_v34, %v4531_v33 }
0x2bd2   : > { %4662 = vmax.xlane.f32.xlu0 %v4657_v28 }
0x2bd3   : > { %4660 = vmax.xlane.f32.xlu1 %v4652_v5 }
0x2be4   : > { %4767 = vrot.lane.b32.xlu1 %v9441_v44, %s8107_s3 }
0x2be8   : > { %4765 = vrot.lane.b32.xlu0 %v9443_v40, %s8107_s3  ;;  %s644_s3 = scalar_lea.vmem %s9731_s24, %s9734_s21 }
0x2c5f   : > { %v4663_v29 = vpop.xlane.xlu0 %4662 }
0x2c60   : > { %v4665_v38 = vsub.f32 %v4657_v28, %v4663_v29  ;;  %v4661_v44 = vpop.xlane.xlu1 %4660 }
0x2c61   : > { %v4664_v48 = vsub.f32 %v4652_v5, %v4661_v44  ;;  %v5735_v5 = vld [vmem:[%s9711_s8 + $0x4] ss:$0 sm:$0xff] }
0x2c62   : > { %v4668_v40 = vmul.f32 1.442695, %v4665_v38 }
0x2c63   : > { %v4666_v41 = vmul.f32 1.442695, %v4664_v48  ;;  %v4766_v43 = vpop.permute.xlu0 %4765 }
0x2c64   : > { %4771 = vst.msk [vmem:[#allocation3] sm:$0xff] %vm847_vm5, %v4766_v43  ;;  %v4768_v45 = vpop.permute.xlu1 %4767 }
0x2c65   : > { %4773 = vst.msk [vmem:[#allocation3 + $0x10] sm:$0xff] %vm850_vm6, %v4766_v43  ;;  %8071 = vpow2.f32 %v4666_v41  ;;  %4774 = vst.msk [vmem:[#allocation3 + $0x18] sm:$0xff] %vm850_vm6, %v4768_v45  ;;  %v5743_v41 = vld [vmem:[%s9714_s11 + $0x88] sm:$0xff] }
0x2c66   : > { %4775 = vst.msk [vmem:[#allocation3 + $0x20] sm:$0xff] %vm853_vm7, %v4766_v43  ;;  %4776 = vst.msk [vmem:[#allocation3 + $0x28] sm:$0xff] %vm853_vm7, %v4768_v45  ;;  %8073 = vpow2.f32 %v4668_v40  ;;  %v5742_v40 = vld [vmem:[%s9714_s11 + $0x80] sm:$0xff] }
0x2c67   : > { %4777 = vst.msk [vmem:[#allocation3 + $0x30] sm:$0xff] %vm856_vm8, %v4766_v43  ;;  %4778 = vst.msk [vmem:[#allocation3 + $0x38] sm:$0xff] %vm856_vm8, %v4768_v45 }
0x2c68   : > { %4779 = vst.msk [vmem:[#allocation3 + $0x40] sm:$0xff] %vm859_vm9, %v4766_v43  ;;  %4780 = vst.msk [vmem:[#allocation3 + $0x48] sm:$0xff] %vm859_vm9, %v4768_v45  ;;  %vm8108_vm9 = vmmov 0  }
0x2c69   : > { %4781 = vst.msk [vmem:[#allocation3 + $0x50] sm:$0xff] %vm862_vm10, %v4766_v43  ;;  %4782 = vst.msk [vmem:[#allocation3 + $0x58] sm:$0xff] %vm862_vm10, %v4768_v45 }
0x2c6a   : > { %4783 = vst.msk [vmem:[#allocation3 + $0x60] sm:$0xff] %vm865_vm11, %v4766_v43  ;;  %4784 = vst.msk [vmem:[#allocation3 + $0x68] sm:$0xff] %vm865_vm11, %v4768_v45  ;;  %vm5337_vm11 = vcmask 57344  }
0x2c6b   : > { %4785 = vst.msk [vmem:[#allocation3 + $0x70] sm:$0xff] %vm868_vm12, %v4766_v43  ;;  %4786 = vst.msk [vmem:[#allocation3 + $0x78] sm:$0xff] %vm868_vm12, %v4768_v45  ;;  %v4787_v52 = vld [vmem:[#allocation3] sm:$0xff]  ;;  %v5744_v43 = vld [vmem:[%s9714_s11 + $0x90] sm:$0xff]  ;;  %vm5362_vm12 = vcmask 72704  }
0x2c6c   : > { %4772 = vst.msk [vmem:[#allocation3 + $0x8] sm:$0xff] %vm847_vm5, %v4768_v45  ;;  %v4789_v51 = vld [vmem:[#allocation3 + $0x10] sm:$0xff]  ;;  %v4790_v54 = vld [vmem:[#allocation3 + $0x18] sm:$0xff]  ;;  %v7897_v45 = vpack.c.bf16 %v5743_v41, %v5742_v40 }
0x2c6d   : > { %v7861_v63 = vpack.c.bf16 %v4790_v54, %v4789_v51  ;;  %v4791_v0 = vld [vmem:[#allocation3 + $0x20] sm:$0xff]  ;;  %v4792_v3 = vld [vmem:[#allocation3 + $0x28] sm:$0xff] }
0x2c6e   : > { %v7865_v42 = vpack.c.bf16 %v4792_v3, %v4791_v0  ;;  %v4793_v46 = vld [vmem:[#allocation3 + $0x30] sm:$0xff]  ;;  %v4794_v50 = vld [vmem:[#allocation3 + $0x38] sm:$0xff]  ;;  %7898 = vmatprep.subr.bf16.mxu1 %v7897_v45 }
0x2c6f   : > { %v8072_v59 = vpop.eup %8071  ;;  %v7869_v55 = vpack.c.bf16 %v4794_v50, %v4793_v46  ;;  %v4795_v19 = vld [vmem:[#allocation3 + $0x40] sm:$0xff]  ;;  %v4796_v20 = vld [vmem:[#allocation3 + $0x48] sm:$0xff] }
0x2c70   : > { %v8074_v60 = vpop.eup %8073  ;;  %6997 = vmatprep.mubr.f32.mxu0 %v8072_v59  ;;  %v7873_v61 = vpack.c.bf16 %v4796_v20, %v4795_v19  ;;  %v4797_v4 = vld [vmem:[#allocation3 + $0x50] sm:$0xff]  ;;  %v4798_v8 = vld [vmem:[#allocation3 + $0x58] sm:$0xff] }
0x2c71   : > { %6998 = vmatmul.mubr.f32.vlgmr.msra.gmra.mrb[34].mxu0 %v8074_v60  ;;  %v7877_v11 = vpack.c.bf16 %v4798_v8, %v4797_v4  ;;  %v4799_v6 = vld [vmem:[#allocation3 + $0x60] sm:$0xff]  ;;  %v4800_v30 = vld [vmem:[#allocation3 + $0x68] sm:$0xff] }
0x2c72   : > { %v7881_v7 = vpack.c.bf16 %v4800_v30, %v4799_v6  ;;  %v4801_v9 = vld [vmem:[#allocation3 + $0x70] sm:$0xff]  ;;  %v4802_v15 = vld [vmem:[#allocation3 + $0x78] sm:$0xff] }
0x2c73   : > { %v4788_v53 = vld [vmem:[#allocation3 + $0x8] sm:$0xff]  ;;  %v7885_v16 = vpack.c.bf16 %v4802_v15, %v4801_v9  ;;  %v5741_v9 = vld [vmem:[%s9719_s16 + $0x4] ss:$0 sm:$0xff] }
0x2c74   : > { %v7857_v49 = vpack.c.bf16 %v4788_v53, %v4787_v52  ;;  %v5745_v52 = vld [vmem:[%s9714_s11 + $0x98] sm:$0xff] }
0x2c75   : > { %v7901_v53 = vpack.c.bf16 %v5745_v52, %v5744_v43 }
0x2c76   : > { %7858 = vmatprep.subr.bf16.mxu0 %v7857_v49 }
0x2c77   : > { %7860 = vmatpush3.bf16.msra.mxu0 %v7857_v49 }
0x2c78   : > { %7862 = vmatprep.subr.bf16.mxu0 %v7861_v63 }
0x2c7b   : > { %7864 = vmatpush3.bf16.msra.mxu0 %v7861_v63 }
0x2c7c   : > { %7866 = vmatprep.subr.bf16.mxu0 %v7865_v42 }
0x2c7f   : > { %7868 = vmatpush3.bf16.msra.mxu0 %v7865_v42 }
0x2c80   : > { %7870 = vmatprep.subr.bf16.mxu0 %v7869_v55 }
0x2c83   : > { %7872 = vmatpush3.bf16.msra.mxu0 %v7869_v55 }
0x2c84   : > { %7874 = vmatprep.subr.bf16.mxu0 %v7873_v61 }
0x2c87   : > { %7876 = vmatpush3.bf16.msra.mxu0 %v7873_v61 }
0x2c88   : > { %7878 = vmatprep.subr.bf16.mxu0 %v7877_v11 }
0x2c8b   : > { %7880 = vmatpush3.bf16.msra.mxu0 %v7877_v11  ;;  %v5740_v11 = vld [vmem:[%s9718_s15 + $0x4] ss:$0 sm:$0xff] }
0x2c8c   : > { %7882 = vmatprep.subr.bf16.mxu0 %v7881_v7 }
0x2c8f   : > { %7884 = vmatpush3.bf16.msra.mxu0 %v7881_v7 }
0x2c90   : > { %7886 = vmatprep.subr.bf16.mxu0 %v7885_v16 }
0x2c93   : > { %7888 = vmatpush3.bf16.msra.mxu0 %v7885_v16 }
0x2c94   : > { %7092 = vmatprep.subr.mxu0 %v8105_v47 }
0x2d44   : > { %v6999_v18 = vpop.f32.mrb[34].mxu0 }
0x2d45   : > { %8075 = vrcp.f32 %v6999_v18  ;;  %v4752_v22 = vpop.f32.mrb[35].mxu0  ;;  %v5753_v18 = vld [vmem:[%s9716_s13 + $0x218] sm:$0xff] }
0x2d46   : > { %8077 = vrcp.f32 %v4752_v22  ;;  %v7909_v22 = vpack.c.bf16 %v5753_v18, %v5752_v17 }
0x2d4f   : > { %v8076_v24 = vpop.eup %8075 }
0x2d50   : > { %v8078_v25 = vpop.eup %8077  ;;  %v4764_v27 = vmul.f32 %v8076_v24, %v8074_v60  ;;  %v5754_v24 = vld [vmem:[%s9716_s13 + $0x220] sm:$0xff] }
0x2d51   : > { %v4763_v33 = vmul.f32 %v8078_v25, %v8072_v59  ;;  %v5755_v25 = vld [vmem:[%s9716_s13 + $0x228] sm:$0xff] }
0x2d53   : > { %7032 = vmatprep.mubr.f32.mxu0 %v4763_v33  ;;  %v7913_v33 = vpack.c.bf16 %v5755_v25, %v5754_v24 }
0x2d54   : > { %7033 = vmatmul.mubr.f32.vlgmr.msra.gmra.mrb[36].mxu0 %v4764_v27  ;;  %v5756_v27 = vld [vmem:[%s9716_s13 + $0x230] sm:$0xff] }
0x2d55   : > { %7094 = vmatprep.mubr.msk.f32.mxu0 %vm8108_vm9, %v8105_v47 }
0x2e27   : > { %v7034_v28 = vpop.f32.mrb[36].mxu0 }
0x2e28   : > { %v4869_v34 = vpop.f32.mrb[37].mxu0 }
0x2e29   : > { %7043 = vmatprep.mubr.msk.f32.mxu1 %vm655_vm0, %v4869_v34  ;;  %v5758_v34 = vld [vmem:[%s9716_s13 + $0x240] sm:$0xff] }
0x2e2a   : > { %7044 = vmatmul.mubr.msk.f32.vlgmr.msra.gmra.mrb[26].mxu1 %vm655_vm0, %v7034_v28  ;;  %v5757_v28 = vld [vmem:[%s9716_s13 + $0x238] sm:$0xff] }
0x2e2b   : > { %7900 = vmatpush3.bf16.msra.mxu1 %v7897_v45 }
0x2e2c   : > { %7902 = vmatprep.subr.bf16.mxu1 %v7901_v53 }
0x2e2f   : > { %7904 = vmatpush3.bf16.msra.mxu1 %v7901_v53 }
0x2e30   : > { %7906 = vmatprep.subr.bf16.mxu1 %v7905_v14 }
0x2efd   : > { %v7045_v32 = vpop.f32.mrb[26].mxu1 }
0x2efe   : > { %v4969_v35 = vadd.f32 %v7045_v32, %v5735_v5  ;;  %v4963_v31 = vpop.f32.mrb[27].mxu1  ;;  %v5759_v32 = vld [vmem:[%s9716_s13 + $0x248] sm:$0xff] }
0x2eff   : > { %v4964_v36 = vadd.f32 %v5735_v5, %v4963_v31  ;;  %v7917_v5 = vpack.c.bf16 %v5757_v28, %v5756_v27  ;;  %v5760_v31 = vld [vmem:[%s9716_s13 + $0x250] sm:$0xff] }
0x2f00   : > { %v4973_v37 = vadd.f32 %v4969_v35, %v9406_v1  ;;  %v7921_v35 = vpack.c.bf16 %v5759_v32, %v5758_v34 }
0x2f01   : > { %v9591_v21 = vadd.f32 %v4964_v36, %v9408_v39  ;;  %v5761_v36 = vld [vmem:[%s9716_s13 + $0x258] sm:$0xff] }
0x2f02   : > { %v4981_v2 = vsel %vm655_vm0, %v4973_v37, 0.0 }
0x2f03   : > { %4982 = vadd.xlane.f32.xlu0 %v4981_v2  ;;  %v4978_v62 = vsel %vm655_vm0, %v9591_v21, 0.0  ;;  %v5762_v2 = vld [vmem:[%s9716_s13 + $0x260] sm:$0xff] }
0x2f04   : > { %4979 = vadd.xlane.f32.xlu1 %v4978_v62  ;;  %v5763_v62 = vld [vmem:[%s9716_s13 + $0x268] sm:$0xff] }
0x2f90   : > { %v4983_v23 = vpop.xlane.xlu0 %4982 }
0x2f91   : > { %v4985_v26 = vmul.f32 0.03125, %v4983_v23  ;;  %v4980_v57 = vpop.xlane.xlu1 %4979  ;;  %v7929_v23 = vpack.c.bf16 %v5763_v62, %v5762_v2 }
0x2f92   : > { %v4984_v58 = vmul.f32 0.03125, %v4980_v57  ;;  %v5765_v57 = vld [vmem:[%s9716_s13 + $0x278] sm:$0xff] }
0x2f93   : > { %v4987_v29 = vsub.f32 %v4973_v37, %v4985_v26  ;;  %v7925_v37 = vpack.c.bf16 %v5761_v36, %v5760_v31  ;;  %v5764_v26 = vld [vmem:[%s9716_s13 + $0x270] sm:$0xff]  ;;  %v5354_v31 = vld [vmem:[%s647_s25] sm:$0x1] }
0x2f94   : > { %v4986_v38 = vsub.f32 %v9591_v21, %v4984_v58  ;;  %v7933_v58 = vpack.c.bf16 %v5765_v57, %v5764_v26 }
0x2f95   : > { %v4989_v44 = vmul.f32 %v4987_v29, %v4987_v29 }
0x2f96   : > { %v4988_v48 = vmul.f32 %v4986_v38, %v4986_v38 }
0x2f97   : > { %v4993_v1 = vsel %vm655_vm0, %v4989_v44, 0.0 }
0x2f98   : > { %4994 = vadd.xlane.f32.xlu1 %v4993_v1  ;;  %v4990_v39 = vsel %vm655_vm0, %v4988_v48, 0.0 }
0x2f99   : > { %4991 = vadd.xlane.f32.xlu0 %v4990_v39 }
0x3025   : > { %v4995_v49 = vpop.xlane.xlu1 %4994 }
0x3026   : > { %v4997_v51 = vmul.f32 0.032258064, %v4995_v49  ;;  %v4992_v54 = vpop.xlane.xlu0 %4991 }
0x3027   : > { %v4996_v59 = vmul.f32 0.032258064, %v4992_v54 }
0x3028   : > { %8079 = vrsqrt.f32 %v4997_v51  ;;  %vm5007_vm5 = vcmp.eq.f32.partialorder %v4997_v51, inf  ;;  %v5010_v3 = vand.u32 2147483648, %v4997_v51  ;;  %vm5009_vm6 = vcmp.eq.f32.partialorder %v4997_v51, 0.0 }
0x3029   : > { %8081 = vrsqrt.f32 %v4996_v59  ;;  %vm5000_vm7 = vcmp.eq.f32.partialorder %v4996_v59, inf  ;;  %v5003_v50 = vand.u32 2147483648, %v4996_v59  ;;  %vm5002_vm8 = vcmp.eq.f32.partialorder %v4996_v59, 0.0 }
0x3032   : > { %v8080_v60 = vpop.eup %8079 }
0x3033   : > { %v8082_v63 = vpop.eup %8081  ;;  %v5006_v0 = vmul.f32 %v8080_v60, %v4997_v51 }
0x3034   : > { %v4999_v42 = vmul.f32 %v8082_v63, %v4996_v59 }
0x3035   : > { %v5008_v46 = vsel %vm5007_vm5, %v4997_v51, %v5006_v0 }
0x3036   : > { %v5011_v55 = vsel %vm5009_vm6, %v5010_v3, %v5008_v46  ;;  %v5001_v19 = vsel %vm5000_vm7, %v4996_v59, %v4999_v42 }
0x3037   : > { %v5013_v20 = vadd.f32 1e-06, %v5011_v55  ;;  %v5004_v61 = vsel %vm5002_vm8, %v5003_v50, %v5001_v19  ;;  %v5248_v55 = vld [vmem:[#allocation4] sm:$0x1]  ;;  %v8109_v19 = vmov 0  }
0x3038   : > { %v5012_v4 = vadd.f32 1e-06, %v5004_v61  ;;  %7950 = vset.pattern.permute.xlu0 %v8109_v19 }
0x3039   : > { %8083 = vrcp.f32 %v5013_v20  ;;  %5251 = vperm.xlu0 %7950, %v5248_v55  }
0x303a   : > { %8085 = vrcp.f32 %v5012_v4  ;;  %v5767_v4 = vld [vmem:[%s9717_s14 + $0x4] ss:$0 sm:$0xff] }
0x3043   : > { %v8084_v8 = vpop.eup %8083 }
0x3044   : > { %v8086_v6 = vpop.eup %8085  ;;  %v5017_v30 = vmul.f32 %v8084_v8, %v4987_v29  ;;  %v5747_v29 = vld [vmem:[%s9715_s12 + $0x4] ss:$0 sm:$0xff] }
0x3045   : > { %v5016_v7 = vmul.f32 %v8086_v6, %v4986_v38  ;;  %v5247_v6 = vld [vmem:[%s9720_s17] sm:$0x1] }
0x3046   : > { %v5025_v15 = vmul.f32 %v5740_v11, %v5017_v30  ;;  %v5254_v30 = vlaneseq }
0x3047   : > { %v5024_v16 = vmul.f32 %v5740_v11, %v5016_v7 }
0x3048   : > { %v5033_v56 = vadd.f32 %v5741_v9, %v5025_v15 }
0x3049   : > { %v5032_v10 = vadd.f32 %v5741_v9, %v5024_v16  ;;  %v5334_v16 = vld [vmem:[%s644_s3] sm:$0x1] }
0x304a   : > { %vm5335_vm10 = vcmp.eq.f32.partialorder %v5334_v16, 0.0 }
0x304b   : > { %7054 = vmatprep.mubr.msk.f32.mxu1 %vm655_vm0, %v5032_v10 }
0x304c   : > { %7055 = vmatmul.mubr.msk.f32.vlgmr.msra.gmra.mrb[28].mxu1 %vm655_vm0, %v5033_v56 }
0x304d   : > { %7908 = vmatpush3.bf16.msra.mxu1 %v7905_v14 }
0x304e   : > { %7910 = vmatprep.subr.bf16.mxu1 %v7909_v22 }
0x3051   : > { %7912 = vmatpush3.bf16.msra.mxu1 %v7909_v22 }
0x3052   : > { %7914 = vmatprep.subr.bf16.mxu1 %v7913_v33 }
0x3055   : > { %7916 = vmatpush3.bf16.msra.mxu1 %v7913_v33 }
0x3056   : > { %7918 = vmatprep.subr.bf16.mxu1 %v7917_v5 }
0x3059   : > { %7920 = vmatpush3.bf16.msra.mxu1 %v7917_v5 }
0x305a   : > { %7922 = vmatprep.subr.bf16.mxu1 %v7921_v35 }
0x305d   : > { %7924 = vmatpush3.bf16.msra.mxu1 %v7921_v35 }
0x305e   : > { %7926 = vmatprep.subr.bf16.mxu1 %v7925_v37 }
0x3061   : > { %7928 = vmatpush3.bf16.msra.mxu1 %v7925_v37 }
0x3062   : > { %7930 = vmatprep.subr.bf16.mxu1 %v7929_v23 }
0x3065   : > { %7932 = vmatpush3.bf16.msra.mxu1 %v7929_v23 }
0x3066   : > { %7934 = vmatprep.subr.bf16.mxu1 %v7933_v58 }
0x3069   : > { %7936 = vmatpush3.bf16.msra.mxu1 %v7933_v58 }
0x30b8   : > { %v5252_v9 = vpop.permute.xlu0 %5251 }
0x311f   : > { %v7056_v38 = vpop.f32.mrb[28].mxu1 }
0x3120   : > { %v5125_v44 = vadd.f32 %v7056_v38, %v5747_v29  ;;  %v5119_v48 = vpop.f32.mrb[29].mxu1 }
0x3121   : > { %v5120_v1 = vadd.f32 %v5747_v29, %v5119_v48 }
0x3122   : > { %v5129_v39 = vmul.f32 %v5125_v44, %v5125_v44 }
0x3123   : > { %v5128_v40 = vmul.f32 %v5120_v1, %v5120_v1 }
0x3124   : > { %v5131_v41 = vmul.f32 %v5129_v39, %v5125_v44 }
0x3125   : > { %v5130_v43 = vmul.f32 %v5128_v40, %v5120_v1 }
0x3126   : > { %v5133_v45 = vmul.f32 0.044715, %v5131_v41 }
0x3127   : > { %v5132_v52 = vmul.f32 0.044715, %v5130_v43 }
0x3128   : > { %v5135_v53 = vadd.f32 %v5133_v45, %v5125_v44 }
0x3129   : > { %v5134_v49 = vadd.f32 %v5132_v52, %v5120_v1 }
0x312a   : > { %v5137_v51 = vmul.f32 0.7978846, %v5135_v53 }
0x312b   : > { %v5136_v54 = vmul.f32 0.7978846, %v5134_v49 }
0x312c   : > { %8087 = vtanh.f32 %v5137_v51 }
0x312d   : > { %8089 = vtanh.f32 %v5136_v54 }
0x3136   : > { %v8088_v59 = vpop.eup %8087 }
0x3137   : > { %v8090_v60 = vpop.eup %8089  ;;  %v5141_v63 = vadd.f32 1.0, %v8088_v59 }
0x3138   : > { %v5140_v0 = vadd.f32 1.0, %v8090_v60 }
0x3139   : > { %v5143_v3 = vmul.f32 0.5, %v5141_v63 }
0x313a   : > { %v5142_v42 = vmul.f32 0.5, %v5140_v0 }
0x313b   : > { %v5145_v50 = vmul.f32 %v5143_v3, %v5125_v44 }
0x313c   : > { %v5144_v46 = vmul.f32 %v5142_v42, %v5120_v1 }
0x313e   : > { %7089 = vmatprep.mubr.f32.mxu1 %v5144_v46 }
0x313f   : > { %7090 = vmatmul.mubr.f32.vlgmr.msra.gmra.mrb[30].mxu1 %v5145_v50 }
0x3212   : > { %v7091_v20 = vpop.f32.mrb[30].mxu1 }
0x3213   : > { %v5229_v61 = vpop.f32.mrb[31].mxu1 }
0x3214   : > { %v5237_v8 = vadd.f32 %v5229_v61, %v9591_v21  ;;  %v5255_v21 = vshrl.u32 %v5254_v30, 7 }
0x3216   : > { %v5246_v47 = vadd.f32 %v5767_v4, %v5237_v8  ;;  %v5256_v7 = vsub.s32 0, %v5255_v21 }
0x3218   : > { %v5359_v11 = vsel %vm655_vm0, %v5246_v47, 0.0  ;;  %7093 = vmatpush3.xpose.msk.msra.mxu0 %vm655_vm0, %v5246_v47  ;;  %v5257_v15 = vrot.slane %v5252_v9, %v5256_v7 }
0x3219   : > { %5366 = vst [vmem:[%s9679_s30] sm:$0xff] %v5359_v11 }
0x321b   : > { %7095 = vmatmul.mubr.msk.f32.vlgmr.msra.gmra.mrb[38].mxu0 %vm655_vm0, %v5247_v6  ;;  %vm5360_vm0 = vcmask 64512  }
0x32ee   : > { %v5330_v10 = vpop.f32.mrb[38].mxu0 }
0x32ef   : > { %v5331_v56 = vadd.f32 %v5330_v10, %v5257_v15  ;;  %v7096_v12 = vpop.f32.mrb[39].mxu0 }
0x32f1   : > { %v5336_v13 = vsel %vm5335_vm10, -1e+09, %v5331_v56 }
0x32f2   : > { %v5338_v14 = vsel %vm5337_vm11, %v5336_v13, -inf }
0x32f3   : > { %5339 = vmax.xlane.f32.xlu1 %v5338_v14 }
0x3380   : > { %v5340_v17 = vpop.xlane.xlu1 %5339 }
0x3381   : > { %v5341_v18 = vsub.f32 %v5336_v13, %v5340_v17 }
0x3383   : > { %v5342_v22 = vmul.f32 1.442695, %v5341_v18 }
0x3385   : > { %8091 = vpow2.f32 %v5342_v22 }
0x338f   : > { %v8092_v24 = vpop.eup %8091 }
0x3390   : > { %v5344_v25 = vsel %vm5337_vm11, %v8092_v24, 0.0 }
0x3391   : > { %5345 = vadd.xlane.f32.xlu1 %v5344_v25 }
0x341e   : > { %v5346_v33 = vpop.xlane.xlu1 %5345 }
0x341f   : > { %8093 = vrcp.f32 %v5346_v33 }
0x3429   : > { %v8094_v27 = vpop.eup %8093 }
0x342a   : > { %v5348_v28 = vmul.f32 %v8094_v27, %v8092_v24 }
0x342c   : > { %v5349_v34 = vmax.f32 %v5348_v28, 1e-10 }
0x342e   : > { %v5350_v5 = vmin.f32 %v5349_v34, 1.0 }
0x3430   : > { %8095 = vlog2.f32 %v5350_v5 }
0x343a   : > { %v8096_v32 = vpop.eup %8095 }
0x343b   : > { %v5352_v35 = vmul.f32 0.6931472, %v8096_v32 }
0x343d   : > { %v5353_v36 = vsub.f32 0.0, %v5352_v35 }
0x343f   : > { %v5355_v37 = vmul.f32 %v5354_v31, %v5353_v36 }
0x3441   : > { %v5356_v2 = vsel %vm5337_vm11, %v5355_v37, 0.0 }
0x3442   : > { %5357 = vadd.xlane.f32.xlu1 %v5356_v2 }
0x34cf   : > { %v5358_v62 = vpop.xlane.xlu1 %5357 }
0x34d0   : > { %v5361_v23 = vsel %vm5360_vm0, %v5348_v28, %v5358_v62 }
0x34d1   : > { %v5363_v26 = vsel %vm5362_vm12, %v5361_v23, 0.0 }
0x34d2   : > { %v5365_v57 = vsel %vm5364_vm13, %v5363_v26, 0.0 }
0x34d3   : > { %5367 = vst [vmem:[%s9679_s30 + $0x8] sm:$0xff] %v5365_v57 }
0x34d4 PF: > { %s31_s20 = sadd.s32 1, %s8103_s20  }
0x34d5   : > { %p28_p4 = scmp.ge.s32.totalorder %s31_s20, 4  }
0x34d7   :  { %30 = sbr.rel (!%p28_p4) target bundleno = 5 (0x5), region = 183 }

</bundles_post_ra>
